<compile_context>
chip_gen: v6e
topology: v6e:2x2x1
jax: 0.10.0
libtpu: 0.0.40
codegen_flags: <defaults>
</compile_context>

<pallas_src>
import jax
import jax.numpy as jnp
from jax.experimental import pallas as pl
from jax.experimental.pallas import tpu as pltpu


# ----------------------------- kernel -----------------------------

def _cond_gru_attn_kernel(
        x_ref, h0_ref, ctx_ref, scores_ref,
        w_ih1_ref, w_hh1_ref, b_ih1_ref, b_hh1_ref,
        w_h1c_ref, b_h1c_ref, w_hh2_ref, b_hh2_ref,
        tan_w_ref, tan_b_ref,
        out_ref, attn_ref, cvec_ref,
        gi1_ref):
    TB = out_ref.shape[0]
    B = h0_ref.shape[0]
    T = TB // B
    H = out_ref.shape[1]

    # Loop-invariant operands, loaded from VMEM once and pinned for the whole recurrence.
    ctx = ctx_ref[...]                               # (B, S, E)
    scores = scores_ref[...]                         # (B, S, H)
    w_hh1, b_hh1 = w_hh1_ref[...], b_hh1_ref[...]
    w_h1c, b_h1c = w_h1c_ref[...], b_h1c_ref[...]    # fused [tgt_w | w_ih2] -> (H, 4H)
    w_hh2, b_hh2 = w_hh2_ref[...], b_hh2_ref[...]
    tan_w = tan_w_ref[...][None, :, :]               # (1, 1, H), hoisted broadcast operand
    tan_b = tan_b_ref[0, 0]                          # true scalar, lives in SMEM

    # x does not depend on the recurrent state: hoist cell-1's input projection for all T steps
    # into a single (T*B, I) x (I, 3H) matmul and slice it per step from VMEM scratch.
    gi1_ref[...] = jnp.dot(x_ref[...], w_ih1_ref[...],
                           preferred_element_type=jnp.float32) + b_ih1_ref[...]

    def gates(gi, gh, h):
        # r and z are lane-contiguous ([r|z|n] gate order): one fused EUP sigmoid push.
        rz = jax.nn.sigmoid(gi[:, :2 * H] + gh[:, :2 * H])
        r, z = rz[:, :H], rz[:, H:]
        n = jnp.tanh(gi[:, 2 * H:] + r * gh[:, 2 * H:])
        return (1.0 - z) * n + z * h

    def step(t, h):
        row = t * B

        # ---- first GRU cell (input projection precomputed) ----
        gi1 = gi1_ref[pl.ds(row, B)]                                          # (B, 3H)
        gh1 = jnp.dot(h, w_hh1, preferred_element_type=jnp.float32) + b_hh1   # (B, 3H)
        h1 = gates(gi1, gh1, h)

        # ---- fused h1 projection: [tgt_linear | cell-2 input gates] in one 128-lane matmul ----
        g = jnp.dot(h1, w_h1c, preferred_element_type=jnp.float32) + b_h1c    # (B, 4H)
        tgt = g[:, :H]                                                        # (B, H)
        gi2 = g[:, H:]                                                        # (B, 3H)

        # ---- Tanh attention: softmax_S( w . tanh(scores + tgt) ) ----
        act = jnp.tanh(scores + tgt[:, None, :])                              # (B, S, H)
        e = jnp.sum(act * tan_w, axis=-1) + tan_b                             # (B, S)
        e = e - jnp.max(e, axis=1, keepdims=True)
        p = jnp.exp(e)
        attn = p / jnp.sum(p, axis=1, keepdims=True)                          # (B, S)

        # attended context on VPU/XLU (tiny S*E; keeps MXU push/pop off the c -> gh2 chain)
        c = jnp.sum(attn[:, :, None] * ctx, axis=1)                           # (B, E)

        # ---- second GRU cell: input = h1 (gi2 above), hidden state = attended context ----
        gh2 = jnp.dot(c, w_hh2, preferred_element_type=jnp.float32) + b_hh2   # (B, 3H)
        h2 = gates(gi2, gh2, c)

        # Outputs stay VMEM-resident; HBM writeback happens once at kernel end.
        out_ref[pl.ds(row, B)] = h2
        attn_ref[pl.ds(row, B)] = attn
        cvec_ref[pl.ds(row, B)] = c
        return h2

    jax.lax.fori_loop(0, T, step, h0_ref[...], unroll=True)


# ----------------------------- wrapper -----------------------------

def conditional_gru_attn(x, hidden, context, attn_scores, params, *, batch_first=False):
    if batch_first:
        x = jnp.transpose(x, (1, 0, 2))
    T, B, I = x.shape
    S = context.shape[1]
    E = context.shape[2]
    H = params["tgt_w"].shape[0]
    assert E == H, "second GRU cell requires 2*context_size == hidden_size"

    x_flat = x.reshape(T * B, I).astype(jnp.float32)
    h0 = jnp.squeeze(hidden, axis=1).astype(jnp.float32)

    # Fuse the two h1-consuming projections into one 128-lane-wide matmul operand.
    w_h1c = jnp.concatenate([params["tgt_w"], params["w_ih2"]], axis=1)   # (H, 4H)
    b_h1c = jnp.concatenate([params["tgt_b"], params["b_ih2"]], axis=1)   # (1, 4H)

    def full(shape):
        n = len(shape)
        return pl.BlockSpec(shape, lambda i, _n=n: (0,) * _n)

    in_arrays = (
        x_flat, h0, context, attn_scores,
        params["w_ih1"], params["w_hh1"], params["b_ih1"], params["b_hh1"],
        w_h1c, b_h1c, params["w_hh2"], params["b_hh2"],
        params["tan_w"], params["tan_b"],
    )
    in_specs = [full(a.shape) for a in in_arrays[:-1]]
    in_specs.append(pl.BlockSpec(memory_space=pltpu.MemorySpace.SMEM))    # tan_b scalar -> SMEM

    grid_spec = pltpu.PrefetchScalarGridSpec(
        num_scalar_prefetch=0,
        grid=(1,),                  # single invocation; the serial T recurrence runs in-kernel
        in_specs=in_specs,
        out_specs=[full((T * B, H)), full((T * B, S)), full((T * B, E))],
        scratch_shapes=[pltpu.VMEM((T * B, 3 * H), jnp.float32)],
    )

    # TODO(synk): for production-scale T/B/S, stream x and the outputs over a chunked-T grid axis
    # (weights/ctx/scores resident, h carried in VMEM scratch) and add a "parallel" batch axis so
    # v7x's second TensorCore is used; at these sizes everything fits comfortably in VMEM.
    outs_f, attn_f, cvec_f = pl.pallas_call(
        _cond_gru_attn_kernel,
        out_shape=(
            jax.ShapeDtypeStruct((T * B, H), jnp.float32),
            jax.ShapeDtypeStruct((T * B, S), jnp.float32),
            jax.ShapeDtypeStruct((T * B, E), jnp.float32),
        ),
        grid_spec=grid_spec,
        compiler_params=pltpu.CompilerParams(
            dimension_semantics=("arbitrary",),
            vmem_limit_bytes=32 * 1024 * 1024),
    )(*in_arrays)

    outs = outs_f.reshape(T, B, H)
    attention = attn_f.reshape(T, B, S)[:, :, None, :]    # (T, B, 1, S), matches torch.stack of (B,1,S)
    contexts = cvec_f.reshape(T, B, E)[:, :, None, :]     # (T, B, 1, E)
    hidden_final = outs[-1]
    if T == 1:                                            # torch .squeeze(0) only removes a size-1 dim
        attention = attention[0]
        contexts = contexts[0]
    output = jnp.transpose(outs, (1, 0, 2)) if batch_first else outs
    return output, attention, hidden_final, contexts


def calc_attn_scores(encoder_outputs, params):
    # TanhAttn.calc_attn_scores == src_linear (plain-JAX glue)
    return encoder_outputs @ params["src_w"] + params["src_b"]


# ----------------------------- params -----------------------------

def init_params(key, input_size, hidden_size, context_size):
    H = hidden_size
    E = 2 * context_size
    ks = jax.random.split(key, 14)

    def u(k, shape, bound):
        return jax.random.uniform(k, shape, jnp.float32, minval=-bound, maxval=bound)

    kg = 1.0 / float(H) ** 0.5
    ksrc = 1.0 / float(E) ** 0.5
    ktgt = 1.0 / float(H) ** 0.5
    return dict(
        # GRUCell 1, gate-fused & transposed: columns [r | z | n]
        w_ih1=u(ks[0], (input_size, 3 * H), kg),
        w_hh1=u(ks[1], (H, 3 * H), kg),
        b_ih1=u(ks[2], (1, 3 * H), kg),
        b_hh1=u(ks[3], (1, 3 * H), kg),
        # GRUCell 2 (input = interim hidden (H), hx = attended context (E == H))
        w_ih2=u(ks[4], (H, 3 * H), kg),
        w_hh2=u(ks[5], (E, 3 * H), kg),
        b_ih2=u(ks[6], (1, 3 * H), kg),
        b_hh2=u(ks[7], (1, 3 * H), kg),
        # TanhAttn: src_linear (E->H), tgt_linear (H->H), tanh_linear (H->1)
        src_w=u(ks[8], (E, H), ksrc),
        src_b=u(ks[9], (1, H), ksrc),
        tgt_w=u(ks[10], (H, H), ktgt),
        tgt_b=u(ks[11], (1, H), ktgt),
        tan_w=u(ks[12], (1, H), ktgt),
        tan_b=u(ks[13], (1, 1), ktgt),
    )


# ----------------------------- pure-JAX reference -----------------------------

def _reference_forward(x, hidden, context, attn_scores, p):
    H = p["tgt_w"].shape[0]

    def gru(xx, hh, wih, whh, bih, bhh):
        gi = xx @ wih + bih
        gh = hh @ whh + bhh
        r = jax.nn.sigmoid(gi[:, :H] + gh[:, :H])
        z = jax.nn.sigmoid(gi[:, H:2 * H] + gh[:, H:2 * H])
        n = jnp.tanh(gi[:, 2 * H:] + r * gh[:, 2 * H:])
        return (1.0 - z) * n + z * hh

    h = jnp.squeeze(hidden, axis=1)
    outs, attns, cvs = [], [], []
    for t in range(x.shape[0]):
        h1 = gru(x[t], h, p["w_ih1"], p["w_hh1"], p["b_ih1"], p["b_hh1"])
        tgt = h1 @ p["tgt_w"] + p["tgt_b"]
        act = jnp.tanh(attn_scores + tgt[:, None, :])
        e = jnp.sum(act * p["tan_w"][None, :, :], axis=-1) + p["tan_b"][0, 0]
        a = jax.nn.softmax(e, axis=1)
        c = jnp.sum(a[:, :, None] * context, axis=1)
        h2 = gru(h1, c, p["w_ih2"], p["w_hh2"], p["b_ih2"], p["b_hh2"])
        outs.append(h2); attns.append(a); cvs.append(c)
        h = h2
    output = jnp.stack(outs, 0)
    attention = jnp.stack(attns, 0)[:, :, None, :]
    contexts = jnp.stack(cvs, 0)[:, :, None, :]
    if x.shape[0] == 1:
        attention, contexts = attention[0], contexts[0]
    return output, attention, h, contexts


# ----------------------------- main -----------------------------

if __name__ == "__main__":
    key = jax.random.PRNGKey(0)
    T, B, S = 8, 2, 8
    input_size, hidden_size, context_size = 16, 32, 16     # 2*context_size == hidden_size
    E = 2 * context_size

    kp, kx, kh, kc = jax.random.split(key, 4)
    params = init_params(kp, input_size, hidden_size, context_size)

    x = jax.random.normal(kx, (T, B, input_size), jnp.float32)
    hidden = jax.random.normal(kh, (B, 1, hidden_size), jnp.float32)
    context = jax.random.normal(kc, (B, S, E), jnp.float32)
    attn_scores = calc_attn_scores(context, params)

    out, attention, h_final, contexts = conditional_gru_attn(
        x, hidden, context, attn_scores, params, batch_first=False)
    jax.block_until_ready((out, attention, h_final, contexts))

    # correctness check against a pure-JAX reference of the PyTorch forward
    out_r, attn_r, h_r, ctx_r = _reference_forward(x, hidden, context, attn_scores, params)
    for got, ref in ((out, out_r), (attention, attn_r), (h_final, h_r), (contexts, ctx_r)):
        assert got.shape == ref.shape, (got.shape, ref.shape)
        assert jnp.allclose(got, ref, atol=1e-4, rtol=1e-4), "kernel/reference mismatch"

    print("KERNEL_OK")
</pallas_src>

<mosaic_0001>
module attributes {stable_mosaic.version = 11 : i64} {
  func.func @_cond_gru_attn_kernel(%arg0: i32, %arg1: memref<16x16xf32, #tpu.memory_space<vmem>>, %arg2: memref<2x32xf32, #tpu.memory_space<vmem>>, %arg3: memref<2x8x32xf32, #tpu.memory_space<vmem>>, %arg4: memref<2x8x32xf32, #tpu.memory_space<vmem>>, %arg5: memref<16x96xf32, #tpu.memory_space<vmem>>, %arg6: memref<32x96xf32, #tpu.memory_space<vmem>>, %arg7: memref<1x96xf32, #tpu.memory_space<vmem>>, %arg8: memref<1x96xf32, #tpu.memory_space<vmem>>, %arg9: memref<32x128xf32, #tpu.memory_space<vmem>>, %arg10: memref<1x128xf32, #tpu.memory_space<vmem>>, %arg11: memref<32x96xf32, #tpu.memory_space<vmem>>, %arg12: memref<1x96xf32, #tpu.memory_space<vmem>>, %arg13: memref<1x32xf32, #tpu.memory_space<vmem>>, %arg14: memref<1x1xf32, #tpu.memory_space<smem>>, %arg15: memref<16x32xf32, #tpu.memory_space<vmem>>, %arg16: memref<16x8xf32, #tpu.memory_space<vmem>>, %arg17: memref<16x32xf32, #tpu.memory_space<vmem>>, %arg18: memref<16x96xf32, #tpu.memory_space<vmem>>) attributes {dimension_semantics = [#tpu.dimension_semantics<arbitrary>], iteration_bounds = array<i64: 1>, scalar_prefetch = 0 : i64, scratch_operands = 1 : i64, tpu.core_type = #tpu.core_type<tc>, window_params = [{pipeline_mode = #tpu.pipeline_mode<synchronous>, transform_indices = @transform_0, window_bounds = array<i64: 16, 16>}, {pipeline_mode = #tpu.pipeline_mode<synchronous>, transform_indices = @transform_1, window_bounds = array<i64: 2, 32>}, {pipeline_mode = #tpu.pipeline_mode<synchronous>, transform_indices = @transform_2, window_bounds = array<i64: 2, 8, 32>}, {pipeline_mode = #tpu.pipeline_mode<synchronous>, transform_indices = @transform_3, window_bounds = array<i64: 2, 8, 32>}, {pipeline_mode = #tpu.pipeline_mode<synchronous>, transform_indices = @transform_4, window_bounds = array<i64: 16, 96>}, {pipeline_mode = #tpu.pipeline_mode<synchronous>, transform_indices = @transform_5, window_bounds = array<i64: 32, 96>}, {pipeline_mode = #tpu.pipeline_mode<synchronous>, transform_indices = @transform_6, window_bounds = array<i64: 1, 96>}, {pipeline_mode = #tpu.pipeline_mode<synchronous>, transform_indices = @transform_7, window_bounds = array<i64: 1, 96>}, {pipeline_mode = #tpu.pipeline_mode<synchronous>, transform_indices = @transform_8, window_bounds = array<i64: 32, 128>}, {pipeline_mode = #tpu.pipeline_mode<synchronous>, transform_indices = @transform_9, window_bounds = array<i64: 1, 128>}, {pipeline_mode = #tpu.pipeline_mode<synchronous>, transform_indices = @transform_10, window_bounds = array<i64: 32, 96>}, {pipeline_mode = #tpu.pipeline_mode<synchronous>, transform_indices = @transform_11, window_bounds = array<i64: 1, 96>}, {pipeline_mode = #tpu.pipeline_mode<synchronous>, transform_indices = @transform_12, window_bounds = array<i64: 1, 32>}, {transform_indices = @transform_13, window_bounds = array<i64: 1, 1>}, {pipeline_mode = #tpu.pipeline_mode<synchronous>, transform_indices = @transform_14, window_bounds = array<i64: 16, 32>}, {pipeline_mode = #tpu.pipeline_mode<synchronous>, transform_indices = @transform_15, window_bounds = array<i64: 16, 8>}, {pipeline_mode = #tpu.pipeline_mode<synchronous>, transform_indices = @transform_16, window_bounds = array<i64: 16, 32>}]} {
    %c0 = arith.constant 0 : index
    %c0_0 = arith.constant 0 : index
    %c0_1 = arith.constant 0 : index
    %0 = vector.load %arg3[%c0, %c0_0, %c0_1] : memref<2x8x32xf32, #tpu.memory_space<vmem>>, vector<2x8x32xf32>
    %c0_2 = arith.constant 0 : index
    %c0_3 = arith.constant 0 : index
    %c0_4 = arith.constant 0 : index
    %1 = vector.load %arg4[%c0_2, %c0_3, %c0_4] : memref<2x8x32xf32, #tpu.memory_space<vmem>>, vector<2x8x32xf32>
    %c0_5 = arith.constant 0 : index
    %c0_6 = arith.constant 0 : index
    %2 = vector.load %arg6[%c0_5, %c0_6] : memref<32x96xf32, #tpu.memory_space<vmem>>, vector<32x96xf32>
    %c0_7 = arith.constant 0 : index
    %c0_8 = arith.constant 0 : index
    %3 = vector.load %arg8[%c0_7, %c0_8] : memref<1x96xf32, #tpu.memory_space<vmem>>, vector<1x96xf32>
    %c0_9 = arith.constant 0 : index
    %c0_10 = arith.constant 0 : index
    %4 = vector.load %arg9[%c0_9, %c0_10] : memref<32x128xf32, #tpu.memory_space<vmem>>, vector<32x128xf32>
    %c0_11 = arith.constant 0 : index
    %c0_12 = arith.constant 0 : index
    %5 = vector.load %arg10[%c0_11, %c0_12] : memref<1x128xf32, #tpu.memory_space<vmem>>, vector<1x128xf32>
    %c0_13 = arith.constant 0 : index
    %c0_14 = arith.constant 0 : index
    %6 = vector.load %arg11[%c0_13, %c0_14] : memref<32x96xf32, #tpu.memory_space<vmem>>, vector<32x96xf32>
    %c0_15 = arith.constant 0 : index
    %c0_16 = arith.constant 0 : index
    %7 = vector.load %arg12[%c0_15, %c0_16] : memref<1x96xf32, #tpu.memory_space<vmem>>, vector<1x96xf32>
    %c0_17 = arith.constant 0 : index
    %c0_18 = arith.constant 0 : index
    %8 = vector.load %arg13[%c0_17, %c0_18] : memref<1x32xf32, #tpu.memory_space<vmem>>, vector<1x32xf32>
    %9 = vector.shape_cast %8 : vector<1x32xf32> to vector<1x1x32xf32>
    %c0_19 = arith.constant 0 : index
    %c0_20 = arith.constant 0 : index
    %10 = memref.load %arg14[%c0_19, %c0_20] : memref<1x1xf32, #tpu.memory_space<smem>>
    %c0_21 = arith.constant 0 : index
    %c0_22 = arith.constant 0 : index
    %11 = vector.load %arg1[%c0_21, %c0_22] : memref<16x16xf32, #tpu.memory_space<vmem>>, vector<16x16xf32>
    %c0_23 = arith.constant 0 : index
    %c0_24 = arith.constant 0 : index
    %12 = vector.load %arg5[%c0_23, %c0_24] : memref<16x96xf32, #tpu.memory_space<vmem>>, vector<16x96xf32>
    %cst = arith.constant dense<0.000000e+00> : vector<16x96xf32>
    %13 = tpu.matmul %11, %12, %cst {dimension_numbers = #tpu.dot_dimension_numbers<[1], [0], [0], [1], [0, 0, 1, 1], [], []>} : vector<16x16xf32>, vector<16x96xf32>, vector<16x96xf32> -> vector<16x96xf32>
    %c0_25 = arith.constant 0 : index
    %c0_26 = arith.constant 0 : index
    %14 = vector.load %arg7[%c0_25, %c0_26] : memref<1x96xf32, #tpu.memory_space<vmem>>, vector<1x96xf32>
    %15 = vector.broadcast %14 : vector<1x96xf32> to vector<16x96xf32>
    %16 = arith.addf %13, %15 : vector<16x96xf32>
    %c0_27 = arith.constant 0 : index
    %c0_28 = arith.constant 0 : index
    %17 = vector.load %arg18[%c0_27, %c0_28] : memref<16x96xf32, #tpu.memory_space<vmem>>, vector<16x96xf32>
    tpu.vector_store %arg18[%c0_27, %c0_28], %16 {strides = array<i32>} : memref<16x96xf32, #tpu.memory_space<vmem>>, vector<16x96xf32>,
    %c0_29 = arith.constant 0 : index
    %c0_30 = arith.constant 0 : index
    %18 = vector.load %arg2[%c0_29, %c0_30] : memref<2x32xf32, #tpu.memory_space<vmem>>, vector<2x32xf32>
    %c0_i32 = arith.constant 0 : i32
    %c2_i32 = arith.constant 2 : i32
    %19 = arith.muli %c0_i32, %c2_i32 : i32
    %20 = arith.index_cast %19 : i32 to index
    %c0_31 = arith.constant 0 : index
    %21 = vector.load %arg18[%20, %c0_31] : memref<16x96xf32, #tpu.memory_space<vmem>>, vector<2x96xf32>
    %cst_32 = arith.constant dense<0.000000e+00> : vector<2x96xf32>
    %22 = tpu.matmul %18, %2, %cst_32 {dimension_numbers = #tpu.dot_dimension_numbers<[1], [0], [0], [1], [0, 0, 1, 1], [], []>} : vector<2x32xf32>, vector<32x96xf32>, vector<2x96xf32> -> vector<2x96xf32>
    %23 = vector.broadcast %3 : vector<1x96xf32> to vector<2x96xf32>
    %24 = arith.addf %22, %23 : vector<2x96xf32>
    %25 = vector.extract_strided_slice %21 {offsets = [0, 0], sizes = [2, 64], strides = [1, 1]} : vector<2x96xf32> to vector<2x64xf32>
    %26 = vector.extract_strided_slice %24 {offsets = [0, 0], sizes = [2, 64], strides = [1, 1]} : vector<2x96xf32> to vector<2x64xf32>
    %27 = arith.addf %25, %26 : vector<2x64xf32>
    %28 = arith.negf %27 : vector<2x64xf32>
    %29 = math.exp %28 : vector<2x64xf32>
    %cst_33 = arith.constant 1.000000e+00 : f32
    %30 = vector.broadcast %cst_33 : f32 to vector<2x64xf32>
    %31 = arith.addf %30, %29 : vector<2x64xf32>
    %32 = arith.divf %30, %31 : vector<2x64xf32>
    %33 = vector.extract_strided_slice %32 {offsets = [0, 0], sizes = [2, 32], strides = [1, 1]} : vector<2x64xf32> to vector<2x32xf32>
    %34 = vector.extract_strided_slice %32 {offsets = [0, 32], sizes = [2, 32], strides = [1, 1]} : vector<2x64xf32> to vector<2x32xf32>
    %35 = vector.extract_strided_slice %21 {offsets = [0, 64], sizes = [2, 32], strides = [1, 1]} : vector<2x96xf32> to vector<2x32xf32>
    %36 = vector.extract_strided_slice %24 {offsets = [0, 64], sizes = [2, 32], strides = [1, 1]} : vector<2x96xf32> to vector<2x32xf32>
    %37 = arith.mulf %33, %36 : vector<2x32xf32>
    %38 = arith.addf %35, %37 : vector<2x32xf32>
    %39 = math.tanh %38 : vector<2x32xf32>
    %cst_34 = arith.constant 1.000000e+00 : f32
    %40 = vector.broadcast %cst_34 : f32 to vector<2x32xf32>
    %41 = arith.subf %40, %34 : vector<2x32xf32>
    %42 = arith.mulf %41, %39 : vector<2x32xf32>
    %43 = arith.mulf %34, %18 : vector<2x32xf32>
    %44 = arith.addf %42, %43 : vector<2x32xf32>
    %cst_35 = arith.constant dense<0.000000e+00> : vector<2x128xf32>
    %45 = tpu.matmul %44, %4, %cst_35 {dimension_numbers = #tpu.dot_dimension_numbers<[1], [0], [0], [1], [0, 0, 1, 1], [], []>} : vector<2x32xf32>, vector<32x128xf32>, vector<2x128xf32> -> vector<2x128xf32>
    %46 = vector.broadcast %5 : vector<1x128xf32> to vector<2x128xf32>
    %47 = arith.addf %45, %46 : vector<2x128xf32>
    %48 = vector.extract_strided_slice %47 {offsets = [0, 0], sizes = [2, 32], strides = [1, 1]} : vector<2x128xf32> to vector<2x32xf32>
    %49 = vector.extract_strided_slice %47 {offsets = [0, 32], sizes = [2, 96], strides = [1, 1]} : vector<2x128xf32> to vector<2x96xf32>
    %50 = vector.shape_cast %48 : vector<2x32xf32> to vector<2x1x32xf32>
    %51 = vector.broadcast %50 : vector<2x1x32xf32> to vector<2x8x32xf32>
    %52 = arith.addf %1, %51 : vector<2x8x32xf32>
    %53 = math.tanh %52 : vector<2x8x32xf32>
    %54 = vector.broadcast %9 : vector<1x1x32xf32> to vector<2x8x32xf32>
    %55 = arith.mulf %53, %54 : vector<2x8x32xf32>
    %cst_36 = arith.constant dense<0.000000e+00> : vector<2x8xf32>
    %56 = vector.multi_reduction <add>, %55, %cst_36 [2] : vector<2x8x32xf32> to vector<2x8xf32>
    %57 = vector.broadcast %10 : f32 to vector<2x8xf32>
    %58 = arith.addf %56, %57 : vector<2x8xf32>
    %cst_37 = arith.constant dense<0xFF800000> : vector<2xf32>
    %59 = vector.multi_reduction <maximumf>, %58, %cst_37 [1] : vector<2x8xf32> to vector<2xf32>
    %60 = vector.shape_cast %59 : vector<2xf32> to vector<2x1xf32>
    %61 = vector.broadcast %60 : vector<2x1xf32> to vector<2x8xf32>
    %62 = arith.subf %58, %61 : vector<2x8xf32>
    %63 = math.exp %62 : vector<2x8xf32>
    %cst_38 = arith.constant dense<0.000000e+00> : vector<2xf32>
    %64 = vector.multi_reduction <add>, %63, %cst_38 [1] : vector<2x8xf32> to vector<2xf32>
    %65 = vector.shape_cast %64 : vector<2xf32> to vector<2x1xf32>
    %66 = vector.broadcast %65 : vector<2x1xf32> to vector<2x8xf32>
    %67 = arith.divf %63, %66 : vector<2x8xf32>
    %68 = vector.shape_cast %67 : vector<2x8xf32> to vector<2x8x1xf32>
    %69 = vector.broadcast %68 : vector<2x8x1xf32> to vector<2x8x32xf32>
    %70 = arith.mulf %69, %0 : vector<2x8x32xf32>
    %cst_39 = arith.constant dense<0.000000e+00> : vector<2x32xf32>
    %71 = vector.multi_reduction <add>, %70, %cst_39 [1] : vector<2x8x32xf32> to vector<2x32xf32>
    %cst_40 = arith.constant dense<0.000000e+00> : vector<2x96xf32>
    %72 = tpu.matmul %71, %6, %cst_40 {dimension_numbers = #tpu.dot_dimension_numbers<[1], [0], [0], [1], [0, 0, 1, 1], [], []>} : vector<2x32xf32>, vector<32x96xf32>, vector<2x96xf32> -> vector<2x96xf32>
    %73 = vector.broadcast %7 : vector<1x96xf32> to vector<2x96xf32>
    %74 = arith.addf %72, %73 : vector<2x96xf32>
    %75 = vector.extract_strided_slice %49 {offsets = [0, 0], sizes = [2, 64], strides = [1, 1]} : vector<2x96xf32> to vector<2x64xf32>
    %76 = vector.extract_strided_slice %74 {offsets = [0, 0], sizes = [2, 64], strides = [1, 1]} : vector<2x96xf32> to vector<2x64xf32>
    %77 = arith.addf %75, %76 : vector<2x64xf32>
    %78 = arith.negf %77 : vector<2x64xf32>
    %79 = math.exp %78 : vector<2x64xf32>
    %cst_41 = arith.constant 1.000000e+00 : f32
    %80 = vector.broadcast %cst_41 : f32 to vector<2x64xf32>
    %81 = arith.addf %80, %79 : vector<2x64xf32>
    %82 = arith.divf %80, %81 : vector<2x64xf32>
    %83 = vector.extract_strided_slice %82 {offsets = [0, 0], sizes = [2, 32], strides = [1, 1]} : vector<2x64xf32> to vector<2x32xf32>
    %84 = vector.extract_strided_slice %82 {offsets = [0, 32], sizes = [2, 32], strides = [1, 1]} : vector<2x64xf32> to vector<2x32xf32>
    %85 = vector.extract_strided_slice %49 {offsets = [0, 64], sizes = [2, 32], strides = [1, 1]} : vector<2x96xf32> to vector<2x32xf32>
    %86 = vector.extract_strided_slice %74 {offsets = [0, 64], sizes = [2, 32], strides = [1, 1]} : vector<2x96xf32> to vector<2x32xf32>
    %87 = arith.mulf %83, %86 : vector<2x32xf32>
    %88 = arith.addf %85, %87 : vector<2x32xf32>
    %89 = math.tanh %88 : vector<2x32xf32>
    %cst_42 = arith.constant 1.000000e+00 : f32
    %90 = vector.broadcast %cst_42 : f32 to vector<2x32xf32>
    %91 = arith.subf %90, %84 : vector<2x32xf32>
    %92 = arith.mulf %91, %89 : vector<2x32xf32>
    %93 = arith.mulf %84, %71 : vector<2x32xf32>
    %94 = arith.addf %92, %93 : vector<2x32xf32>
    %95 = arith.index_cast %19 : i32 to index
    %c0_43 = arith.constant 0 : index
    %96 = vector.load %arg15[%95, %c0_43] : memref<16x32xf32, #tpu.memory_space<vmem>>, vector<2x32xf32>
    tpu.vector_store %arg15[%95, %c0_43], %94 {strides = array<i32>} : memref<16x32xf32, #tpu.memory_space<vmem>>, vector<2x32xf32>,
    %97 = arith.index_cast %19 : i32 to index
    %c0_44 = arith.constant 0 : index
    %98 = vector.load %arg16[%97, %c0_44] : memref<16x8xf32, #tpu.memory_space<vmem>>, vector<2x8xf32>
    tpu.vector_store %arg16[%97, %c0_44], %67 {strides = array<i32>} : memref<16x8xf32, #tpu.memory_space<vmem>>, vector<2x8xf32>,
    %99 = arith.index_cast %19 : i32 to index
    %c0_45 = arith.constant 0 : index
    %100 = vector.load %arg17[%99, %c0_45] : memref<16x32xf32, #tpu.memory_space<vmem>>, vector<2x32xf32>
    tpu.vector_store %arg17[%99, %c0_45], %71 {strides = array<i32>} : memref<16x32xf32, #tpu.memory_space<vmem>>, vector<2x32xf32>,
    %c1_i32 = arith.constant 1 : i32
    %c2_i32_46 = arith.constant 2 : i32
    %101 = arith.muli %c1_i32, %c2_i32_46 : i32
    %102 = arith.index_cast %101 : i32 to index
    %c0_47 = arith.constant 0 : index
    %103 = vector.load %arg18[%102, %c0_47] : memref<16x96xf32, #tpu.memory_space<vmem>>, vector<2x96xf32>
    %cst_48 = arith.constant dense<0.000000e+00> : vector<2x96xf32>
    %104 = tpu.matmul %94, %2, %cst_48 {dimension_numbers = #tpu.dot_dimension_numbers<[1], [0], [0], [1], [0, 0, 1, 1], [], []>} : vector<2x32xf32>, vector<32x96xf32>, vector<2x96xf32> -> vector<2x96xf32>
    %105 = vector.broadcast %3 : vector<1x96xf32> to vector<2x96xf32>
    %106 = arith.addf %104, %105 : vector<2x96xf32>
    %107 = vector.extract_strided_slice %103 {offsets = [0, 0], sizes = [2, 64], strides = [1, 1]} : vector<2x96xf32> to vector<2x64xf32>
    %108 = vector.extract_strided_slice %106 {offsets = [0, 0], sizes = [2, 64], strides = [1, 1]} : vector<2x96xf32> to vector<2x64xf32>
    %109 = arith.addf %107, %108 : vector<2x64xf32>
    %110 = arith.negf %109 : vector<2x64xf32>
    %111 = math.exp %110 : vector<2x64xf32>
    %cst_49 = arith.constant 1.000000e+00 : f32
    %112 = vector.broadcast %cst_49 : f32 to vector<2x64xf32>
    %113 = arith.addf %112, %111 : vector<2x64xf32>
    %114 = arith.divf %112, %113 : vector<2x64xf32>
    %115 = vector.extract_strided_slice %114 {offsets = [0, 0], sizes = [2, 32], strides = [1, 1]} : vector<2x64xf32> to vector<2x32xf32>
    %116 = vector.extract_strided_slice %114 {offsets = [0, 32], sizes = [2, 32], strides = [1, 1]} : vector<2x64xf32> to vector<2x32xf32>
    %117 = vector.extract_strided_slice %103 {offsets = [0, 64], sizes = [2, 32], strides = [1, 1]} : vector<2x96xf32> to vector<2x32xf32>
    %118 = vector.extract_strided_slice %106 {offsets = [0, 64], sizes = [2, 32], strides = [1, 1]} : vector<2x96xf32> to vector<2x32xf32>
    %119 = arith.mulf %115, %118 : vector<2x32xf32>
    %120 = arith.addf %117, %119 : vector<2x32xf32>
    %121 = math.tanh %120 : vector<2x32xf32>
    %cst_50 = arith.constant 1.000000e+00 : f32
    %122 = vector.broadcast %cst_50 : f32 to vector<2x32xf32>
    %123 = arith.subf %122, %116 : vector<2x32xf32>
    %124 = arith.mulf %123, %121 : vector<2x32xf32>
    %125 = arith.mulf %116, %94 : vector<2x32xf32>
    %126 = arith.addf %124, %125 : vector<2x32xf32>
    %cst_51 = arith.constant dense<0.000000e+00> : vector<2x128xf32>
    %127 = tpu.matmul %126, %4, %cst_51 {dimension_numbers = #tpu.dot_dimension_numbers<[1], [0], [0], [1], [0, 0, 1, 1], [], []>} : vector<2x32xf32>, vector<32x128xf32>, vector<2x128xf32> -> vector<2x128xf32>
    %128 = vector.broadcast %5 : vector<1x128xf32> to vector<2x128xf32>
    %129 = arith.addf %127, %128 : vector<2x128xf32>
    %130 = vector.extract_strided_slice %129 {offsets = [0, 0], sizes = [2, 32], strides = [1, 1]} : vector<2x128xf32> to vector<2x32xf32>
    %131 = vector.extract_strided_slice %129 {offsets = [0, 32], sizes = [2, 96], strides = [1, 1]} : vector<2x128xf32> to vector<2x96xf32>
    %132 = vector.shape_cast %130 : vector<2x32xf32> to vector<2x1x32xf32>
    %133 = vector.broadcast %132 : vector<2x1x32xf32> to vector<2x8x32xf32>
    %134 = arith.addf %1, %133 : vector<2x8x32xf32>
    %135 = math.tanh %134 : vector<2x8x32xf32>
    %136 = vector.broadcast %9 : vector<1x1x32xf32> to vector<2x8x32xf32>
    %137 = arith.mulf %135, %136 : vector<2x8x32xf32>
    %cst_52 = arith.constant dense<0.000000e+00> : vector<2x8xf32>
    %138 = vector.multi_reduction <add>, %137, %cst_52 [2] : vector<2x8x32xf32> to vector<2x8xf32>
    %139 = vector.broadcast %10 : f32 to vector<2x8xf32>
    %140 = arith.addf %138, %139 : vector<2x8xf32>
    %cst_53 = arith.constant dense<0xFF800000> : vector<2xf32>
    %141 = vector.multi_reduction <maximumf>, %140, %cst_53 [1] : vector<2x8xf32> to vector<2xf32>
    %142 = vector.shape_cast %141 : vector<2xf32> to vector<2x1xf32>
    %143 = vector.broadcast %142 : vector<2x1xf32> to vector<2x8xf32>
    %144 = arith.subf %140, %143 : vector<2x8xf32>
    %145 = math.exp %144 : vector<2x8xf32>
    %cst_54 = arith.constant dense<0.000000e+00> : vector<2xf32>
    %146 = vector.multi_reduction <add>, %145, %cst_54 [1] : vector<2x8xf32> to vector<2xf32>
    %147 = vector.shape_cast %146 : vector<2xf32> to vector<2x1xf32>
    %148 = vector.broadcast %147 : vector<2x1xf32> to vector<2x8xf32>
    %149 = arith.divf %145, %148 : vector<2x8xf32>
    %150 = vector.shape_cast %149 : vector<2x8xf32> to vector<2x8x1xf32>
    %151 = vector.broadcast %150 : vector<2x8x1xf32> to vector<2x8x32xf32>
    %152 = arith.mulf %151, %0 : vector<2x8x32xf32>
    %cst_55 = arith.constant dense<0.000000e+00> : vector<2x32xf32>
    %153 = vector.multi_reduction <add>, %152, %cst_55 [1] : vector<2x8x32xf32> to vector<2x32xf32>
    %cst_56 = arith.constant dense<0.000000e+00> : vector<2x96xf32>
    %154 = tpu.matmul %153, %6, %cst_56 {dimension_numbers = #tpu.dot_dimension_numbers<[1], [0], [0], [1], [0, 0, 1, 1], [], []>} : vector<2x32xf32>, vector<32x96xf32>, vector<2x96xf32> -> vector<2x96xf32>
    %155 = vector.broadcast %7 : vector<1x96xf32> to vector<2x96xf32>
    %156 = arith.addf %154, %155 : vector<2x96xf32>
    %157 = vector.extract_strided_slice %131 {offsets = [0, 0], sizes = [2, 64], strides = [1, 1]} : vector<2x96xf32> to vector<2x64xf32>
    %158 = vector.extract_strided_slice %156 {offsets = [0, 0], sizes = [2, 64], strides = [1, 1]} : vector<2x96xf32> to vector<2x64xf32>
    %159 = arith.addf %157, %158 : vector<2x64xf32>
    %160 = arith.negf %159 : vector<2x64xf32>
    %161 = math.exp %160 : vector<2x64xf32>
    %cst_57 = arith.constant 1.000000e+00 : f32
    %162 = vector.broadcast %cst_57 : f32 to vector<2x64xf32>
    %163 = arith.addf %162, %161 : vector<2x64xf32>
    %164 = arith.divf %162, %163 : vector<2x64xf32>
    %165 = vector.extract_strided_slice %164 {offsets = [0, 0], sizes = [2, 32], strides = [1, 1]} : vector<2x64xf32> to vector<2x32xf32>
    %166 = vector.extract_strided_slice %164 {offsets = [0, 32], sizes = [2, 32], strides = [1, 1]} : vector<2x64xf32> to vector<2x32xf32>
    %167 = vector.extract_strided_slice %131 {offsets = [0, 64], sizes = [2, 32], strides = [1, 1]} : vector<2x96xf32> to vector<2x32xf32>
    %168 = vector.extract_strided_slice %156 {offsets = [0, 64], sizes = [2, 32], strides = [1, 1]} : vector<2x96xf32> to vector<2x32xf32>
    %169 = arith.mulf %165, %168 : vector<2x32xf32>
    %170 = arith.addf %167, %169 : vector<2x32xf32>
    %171 = math.tanh %170 : vector<2x32xf32>
    %cst_58 = arith.constant 1.000000e+00 : f32
    %172 = vector.broadcast %cst_58 : f32 to vector<2x32xf32>
    %173 = arith.subf %172, %166 : vector<2x32xf32>
    %174 = arith.mulf %173, %171 : vector<2x32xf32>
    %175 = arith.mulf %166, %153 : vector<2x32xf32>
    %176 = arith.addf %174, %175 : vector<2x32xf32>
    %177 = arith.index_cast %101 : i32 to index
    %c0_59 = arith.constant 0 : index
    %178 = vector.load %arg15[%177, %c0_59] : memref<16x32xf32, #tpu.memory_space<vmem>>, vector<2x32xf32>
    tpu.vector_store %arg15[%177, %c0_59], %176 {strides = array<i32>} : memref<16x32xf32, #tpu.memory_space<vmem>>, vector<2x32xf32>,
    %179 = arith.index_cast %101 : i32 to index
    %c0_60 = arith.constant 0 : index
    %180 = vector.load %arg16[%179, %c0_60] : memref<16x8xf32, #tpu.memory_space<vmem>>, vector<2x8xf32>
    tpu.vector_store %arg16[%179, %c0_60], %149 {strides = array<i32>} : memref<16x8xf32, #tpu.memory_space<vmem>>, vector<2x8xf32>,
    %181 = arith.index_cast %101 : i32 to index
    %c0_61 = arith.constant 0 : index
    %182 = vector.load %arg17[%181, %c0_61] : memref<16x32xf32, #tpu.memory_space<vmem>>, vector<2x32xf32>
    tpu.vector_store %arg17[%181, %c0_61], %153 {strides = array<i32>} : memref<16x32xf32, #tpu.memory_space<vmem>>, vector<2x32xf32>,
    %c2_i32_62 = arith.constant 2 : i32
    %c2_i32_63 = arith.constant 2 : i32
    %183 = arith.muli %c2_i32_62, %c2_i32_63 : i32
    %184 = arith.index_cast %183 : i32 to index
    %c0_64 = arith.constant 0 : index
    %185 = vector.load %arg18[%184, %c0_64] : memref<16x96xf32, #tpu.memory_space<vmem>>, vector<2x96xf32>
    %cst_65 = arith.constant dense<0.000000e+00> : vector<2x96xf32>
    %186 = tpu.matmul %176, %2, %cst_65 {dimension_numbers = #tpu.dot_dimension_numbers<[1], [0], [0], [1], [0, 0, 1, 1], [], []>} : vector<2x32xf32>, vector<32x96xf32>, vector<2x96xf32> -> vector<2x96xf32>
    %187 = vector.broadcast %3 : vector<1x96xf32> to vector<2x96xf32>
    %188 = arith.addf %186, %187 : vector<2x96xf32>
    %189 = vector.extract_strided_slice %185 {offsets = [0, 0], sizes = [2, 64], strides = [1, 1]} : vector<2x96xf32> to vector<2x64xf32>
    %190 = vector.extract_strided_slice %188 {offsets = [0, 0], sizes = [2, 64], strides = [1, 1]} : vector<2x96xf32> to vector<2x64xf32>
    %191 = arith.addf %189, %190 : vector<2x64xf32>
    %192 = arith.negf %191 : vector<2x64xf32>
    %193 = math.exp %192 : vector<2x64xf32>
    %cst_66 = arith.constant 1.000000e+00 : f32
    %194 = vector.broadcast %cst_66 : f32 to vector<2x64xf32>
    %195 = arith.addf %194, %193 : vector<2x64xf32>
    %196 = arith.divf %194, %195 : vector<2x64xf32>
    %197 = vector.extract_strided_slice %196 {offsets = [0, 0], sizes = [2, 32], strides = [1, 1]} : vector<2x64xf32> to vector<2x32xf32>
    %198 = vector.extract_strided_slice %196 {offsets = [0, 32], sizes = [2, 32], strides = [1, 1]} : vector<2x64xf32> to vector<2x32xf32>
    %199 = vector.extract_strided_slice %185 {offsets = [0, 64], sizes = [2, 32], strides = [1, 1]} : vector<2x96xf32> to vector<2x32xf32>
    %200 = vector.extract_strided_slice %188 {offsets = [0, 64], sizes = [2, 32], strides = [1, 1]} : vector<2x96xf32> to vector<2x32xf32>
    %201 = arith.mulf %197, %200 : vector<2x32xf32>
    %202 = arith.addf %199, %201 : vector<2x32xf32>
    %203 = math.tanh %202 : vector<2x32xf32>
    %cst_67 = arith.constant 1.000000e+00 : f32
    %204 = vector.broadcast %cst_67 : f32 to vector<2x32xf32>
    %205 = arith.subf %204, %198 : vector<2x32xf32>
    %206 = arith.mulf %205, %203 : vector<2x32xf32>
    %207 = arith.mulf %198, %176 : vector<2x32xf32>
    %208 = arith.addf %206, %207 : vector<2x32xf32>
    %cst_68 = arith.constant dense<0.000000e+00> : vector<2x128xf32>
    %209 = tpu.matmul %208, %4, %cst_68 {dimension_numbers = #tpu.dot_dimension_numbers<[1], [0], [0], [1], [0, 0, 1, 1], [], []>} : vector<2x32xf32>, vector<32x128xf32>, vector<2x128xf32> -> vector<2x128xf32>
    %210 = vector.broadcast %5 : vector<1x128xf32> to vector<2x128xf32>
    %211 = arith.addf %209, %210 : vector<2x128xf32>
    %212 = vector.extract_strided_slice %211 {offsets = [0, 0], sizes = [2, 32], strides = [1, 1]} : vector<2x128xf32> to vector<2x32xf32>
    %213 = vector.extract_strided_slice %211 {offsets = [0, 32], sizes = [2, 96], strides = [1, 1]} : vector<2x128xf32> to vector<2x96xf32>
    %214 = vector.shape_cast %212 : vector<2x32xf32> to vector<2x1x32xf32>
    %215 = vector.broadcast %214 : vector<2x1x32xf32> to vector<2x8x32xf32>
    %216 = arith.addf %1, %215 : vector<2x8x32xf32>
    %217 = math.tanh %216 : vector<2x8x32xf32>
    %218 = vector.broadcast %9 : vector<1x1x32xf32> to vector<2x8x32xf32>
    %219 = arith.mulf %217, %218 : vector<2x8x32xf32>
    %cst_69 = arith.constant dense<0.000000e+00> : vector<2x8xf32>
    %220 = vector.multi_reduction <add>, %219, %cst_69 [2] : vector<2x8x32xf32> to vector<2x8xf32>
    %221 = vector.broadcast %10 : f32 to vector<2x8xf32>
    %222 = arith.addf %220, %221 : vector<2x8xf32>
    %cst_70 = arith.constant dense<0xFF800000> : vector<2xf32>
    %223 = vector.multi_reduction <maximumf>, %222, %cst_70 [1] : vector<2x8xf32> to vector<2xf32>
    %224 = vector.shape_cast %223 : vector<2xf32> to vector<2x1xf32>
    %225 = vector.broadcast %224 : vector<2x1xf32> to vector<2x8xf32>
    %226 = arith.subf %222, %225 : vector<2x8xf32>
    %227 = math.exp %226 : vector<2x8xf32>
    %cst_71 = arith.constant dense<0.000000e+00> : vector<2xf32>
    %228 = vector.multi_reduction <add>, %227, %cst_71 [1] : vector<2x8xf32> to vector<2xf32>
    %229 = vector.shape_cast %228 : vector<2xf32> to vector<2x1xf32>
    %230 = vector.broadcast %229 : vector<2x1xf32> to vector<2x8xf32>
    %231 = arith.divf %227, %230 : vector<2x8xf32>
    %232 = vector.shape_cast %231 : vector<2x8xf32> to vector<2x8x1xf32>
    %233 = vector.broadcast %232 : vector<2x8x1xf32> to vector<2x8x32xf32>
    %234 = arith.mulf %233, %0 : vector<2x8x32xf32>
    %cst_72 = arith.constant dense<0.000000e+00> : vector<2x32xf32>
    %235 = vector.multi_reduction <add>, %234, %cst_72 [1] : vector<2x8x32xf32> to vector<2x32xf32>
    %cst_73 = arith.constant dense<0.000000e+00> : vector<2x96xf32>
    %236 = tpu.matmul %235, %6, %cst_73 {dimension_numbers = #tpu.dot_dimension_numbers<[1], [0], [0], [1], [0, 0, 1, 1], [], []>} : vector<2x32xf32>, vector<32x96xf32>, vector<2x96xf32> -> vector<2x96xf32>
    %237 = vector.broadcast %7 : vector<1x96xf32> to vector<2x96xf32>
    %238 = arith.addf %236, %237 : vector<2x96xf32>
    %239 = vector.extract_strided_slice %213 {offsets = [0, 0], sizes = [2, 64], strides = [1, 1]} : vector<2x96xf32> to vector<2x64xf32>
    %240 = vector.extract_strided_slice %238 {offsets = [0, 0], sizes = [2, 64], strides = [1, 1]} : vector<2x96xf32> to vector<2x64xf32>
    %241 = arith.addf %239, %240 : vector<2x64xf32>
    %242 = arith.negf %241 : vector<2x64xf32>
    %243 = math.exp %242 : vector<2x64xf32>
    %cst_74 = arith.constant 1.000000e+00 : f32
    %244 = vector.broadcast %cst_74 : f32 to vector<2x64xf32>
    %245 = arith.addf %244, %243 : vector<2x64xf32>
    %246 = arith.divf %244, %245 : vector<2x64xf32>
    %247 = vector.extract_strided_slice %246 {offsets = [0, 0], sizes = [2, 32], strides = [1, 1]} : vector<2x64xf32> to vector<2x32xf32>
    %248 = vector.extract_strided_slice %246 {offsets = [0, 32], sizes = [2, 32], strides = [1, 1]} : vector<2x64xf32> to vector<2x32xf32>
    %249 = vector.extract_strided_slice %213 {offsets = [0, 64], sizes = [2, 32], strides = [1, 1]} : vector<2x96xf32> to vector<2x32xf32>
    %250 = vector.extract_strided_slice %238 {offsets = [0, 64], sizes = [2, 32], strides = [1, 1]} : vector<2x96xf32> to vector<2x32xf32>
    %251 = arith.mulf %247, %250 : vector<2x32xf32>
    %252 = arith.addf %249, %251 : vector<2x32xf32>
    %253 = math.tanh %252 : vector<2x32xf32>
    %cst_75 = arith.constant 1.000000e+00 : f32
    %254 = vector.broadcast %cst_75 : f32 to vector<2x32xf32>
    %255 = arith.subf %254, %248 : vector<2x32xf32>
    %256 = arith.mulf %255, %253 : vector<2x32xf32>
    %257 = arith.mulf %248, %235 : vector<2x32xf32>
    %258 = arith.addf %256, %257 : vector<2x32xf32>
    %259 = arith.index_cast %183 : i32 to index
    %c0_76 = arith.constant 0 : index
    %260 = vector.load %arg15[%259, %c0_76] : memref<16x32xf32, #tpu.memory_space<vmem>>, vector<2x32xf32>
    tpu.vector_store %arg15[%259, %c0_76], %258 {strides = array<i32>} : memref<16x32xf32, #tpu.memory_space<vmem>>, vector<2x32xf32>,
    %261 = arith.index_cast %183 : i32 to index
    %c0_77 = arith.constant 0 : index
    %262 = vector.load %arg16[%261, %c0_77] : memref<16x8xf32, #tpu.memory_space<vmem>>, vector<2x8xf32>
    tpu.vector_store %arg16[%261, %c0_77], %231 {strides = array<i32>} : memref<16x8xf32, #tpu.memory_space<vmem>>, vector<2x8xf32>,
    %263 = arith.index_cast %183 : i32 to index
    %c0_78 = arith.constant 0 : index
    %264 = vector.load %arg17[%263, %c0_78] : memref<16x32xf32, #tpu.memory_space<vmem>>, vector<2x32xf32>
    tpu.vector_store %arg17[%263, %c0_78], %235 {strides = array<i32>} : memref<16x32xf32, #tpu.memory_space<vmem>>, vector<2x32xf32>,
    %c3_i32 = arith.constant 3 : i32
    %c2_i32_79 = arith.constant 2 : i32
    %265 = arith.muli %c3_i32, %c2_i32_79 : i32
    %266 = arith.index_cast %265 : i32 to index
    %c0_80 = arith.constant 0 : index
    %267 = vector.load %arg18[%266, %c0_80] : memref<16x96xf32, #tpu.memory_space<vmem>>, vector<2x96xf32>
    %cst_81 = arith.constant dense<0.000000e+00> : vector<2x96xf32>
    %268 = tpu.matmul %258, %2, %cst_81 {dimension_numbers = #tpu.dot_dimension_numbers<[1], [0], [0], [1], [0, 0, 1, 1], [], []>} : vector<2x32xf32>, vector<32x96xf32>, vector<2x96xf32> -> vector<2x96xf32>
    %269 = vector.broadcast %3 : vector<1x96xf32> to vector<2x96xf32>
    %270 = arith.addf %268, %269 : vector<2x96xf32>
    %271 = vector.extract_strided_slice %267 {offsets = [0, 0], sizes = [2, 64], strides = [1, 1]} : vector<2x96xf32> to vector<2x64xf32>
    %272 = vector.extract_strided_slice %270 {offsets = [0, 0], sizes = [2, 64], strides = [1, 1]} : vector<2x96xf32> to vector<2x64xf32>
    %273 = arith.addf %271, %272 : vector<2x64xf32>
    %274 = arith.negf %273 : vector<2x64xf32>
    %275 = math.exp %274 : vector<2x64xf32>
    %cst_82 = arith.constant 1.000000e+00 : f32
    %276 = vector.broadcast %cst_82 : f32 to vector<2x64xf32>
    %277 = arith.addf %276, %275 : vector<2x64xf32>
    %278 = arith.divf %276, %277 : vector<2x64xf32>
    %279 = vector.extract_strided_slice %278 {offsets = [0, 0], sizes = [2, 32], strides = [1, 1]} : vector<2x64xf32> to vector<2x32xf32>
    %280 = vector.extract_strided_slice %278 {offsets = [0, 32], sizes = [2, 32], strides = [1, 1]} : vector<2x64xf32> to vector<2x32xf32>
    %281 = vector.extract_strided_slice %267 {offsets = [0, 64], sizes = [2, 32], strides = [1, 1]} : vector<2x96xf32> to vector<2x32xf32>
    %282 = vector.extract_strided_slice %270 {offsets = [0, 64], sizes = [2, 32], strides = [1, 1]} : vector<2x96xf32> to vector<2x32xf32>
    %283 = arith.mulf %279, %282 : vector<2x32xf32>
    %284 = arith.addf %281, %283 : vector<2x32xf32>
    %285 = math.tanh %284 : vector<2x32xf32>
    %cst_83 = arith.constant 1.000000e+00 : f32
    %286 = vector.broadcast %cst_83 : f32 to vector<2x32xf32>
    %287 = arith.subf %286, %280 : vector<2x32xf32>
    %288 = arith.mulf %287, %285 : vector<2x32xf32>
    %289 = arith.mulf %280, %258 : vector<2x32xf32>
    %290 = arith.addf %288, %289 : vector<2x32xf32>
    %cst_84 = arith.constant dense<0.000000e+00> : vector<2x128xf32>
    %291 = tpu.matmul %290, %4, %cst_84 {dimension_numbers = #tpu.dot_dimension_numbers<[1], [0], [0], [1], [0, 0, 1, 1], [], []>} : vector<2x32xf32>, vector<32x128xf32>, vector<2x128xf32> -> vector<2x128xf32>
    %292 = vector.broadcast %5 : vector<1x128xf32> to vector<2x128xf32>
    %293 = arith.addf %291, %292 : vector<2x128xf32>
    %294 = vector.extract_strided_slice %293 {offsets = [0, 0], sizes = [2, 32], strides = [1, 1]} : vector<2x128xf32> to vector<2x32xf32>
    %295 = vector.extract_strided_slice %293 {offsets = [0, 32], sizes = [2, 96], strides = [1, 1]} : vector<2x128xf32> to vector<2x96xf32>
    %296 = vector.shape_cast %294 : vector<2x32xf32> to vector<2x1x32xf32>
    %297 = vector.broadcast %296 : vector<2x1x32xf32> to vector<2x8x32xf32>
    %298 = arith.addf %1, %297 : vector<2x8x32xf32>
    %299 = math.tanh %298 : vector<2x8x32xf32>
    %300 = vector.broadcast %9 : vector<1x1x32xf32> to vector<2x8x32xf32>
    %301 = arith.mulf %299, %300 : vector<2x8x32xf32>
    %cst_85 = arith.constant dense<0.000000e+00> : vector<2x8xf32>
    %302 = vector.multi_reduction <add>, %301, %cst_85 [2] : vector<2x8x32xf32> to vector<2x8xf32>
    %303 = vector.broadcast %10 : f32 to vector<2x8xf32>
    %304 = arith.addf %302, %303 : vector<2x8xf32>
    %cst_86 = arith.constant dense<0xFF800000> : vector<2xf32>
    %305 = vector.multi_reduction <maximumf>, %304, %cst_86 [1] : vector<2x8xf32> to vector<2xf32>
    %306 = vector.shape_cast %305 : vector<2xf32> to vector<2x1xf32>
    %307 = vector.broadcast %306 : vector<2x1xf32> to vector<2x8xf32>
    %308 = arith.subf %304, %307 : vector<2x8xf32>
    %309 = math.exp %308 : vector<2x8xf32>
    %cst_87 = arith.constant dense<0.000000e+00> : vector<2xf32>
    %310 = vector.multi_reduction <add>, %309, %cst_87 [1] : vector<2x8xf32> to vector<2xf32>
    %311 = vector.shape_cast %310 : vector<2xf32> to vector<2x1xf32>
    %312 = vector.broadcast %311 : vector<2x1xf32> to vector<2x8xf32>
    %313 = arith.divf %309, %312 : vector<2x8xf32>
    %314 = vector.shape_cast %313 : vector<2x8xf32> to vector<2x8x1xf32>
    %315 = vector.broadcast %314 : vector<2x8x1xf32> to vector<2x8x32xf32>
    %316 = arith.mulf %315, %0 : vector<2x8x32xf32>
    %cst_88 = arith.constant dense<0.000000e+00> : vector<2x32xf32>
    %317 = vector.multi_reduction <add>, %316, %cst_88 [1] : vector<2x8x32xf32> to vector<2x32xf32>
    %cst_89 = arith.constant dense<0.000000e+00> : vector<2x96xf32>
    %318 = tpu.matmul %317, %6, %cst_89 {dimension_numbers = #tpu.dot_dimension_numbers<[1], [0], [0], [1], [0, 0, 1, 1], [], []>} : vector<2x32xf32>, vector<32x96xf32>, vector<2x96xf32> -> vector<2x96xf32>
    %319 = vector.broadcast %7 : vector<1x96xf32> to vector<2x96xf32>
    %320 = arith.addf %318, %319 : vector<2x96xf32>
    %321 = vector.extract_strided_slice %295 {offsets = [0, 0], sizes = [2, 64], strides = [1, 1]} : vector<2x96xf32> to vector<2x64xf32>
    %322 = vector.extract_strided_slice %320 {offsets = [0, 0], sizes = [2, 64], strides = [1, 1]} : vector<2x96xf32> to vector<2x64xf32>
    %323 = arith.addf %321, %322 : vector<2x64xf32>
    %324 = arith.negf %323 : vector<2x64xf32>
    %325 = math.exp %324 : vector<2x64xf32>
    %cst_90 = arith.constant 1.000000e+00 : f32
    %326 = vector.broadcast %cst_90 : f32 to vector<2x64xf32>
    %327 = arith.addf %326, %325 : vector<2x64xf32>
    %328 = arith.divf %326, %327 : vector<2x64xf32>
    %329 = vector.extract_strided_slice %328 {offsets = [0, 0], sizes = [2, 32], strides = [1, 1]} : vector<2x64xf32> to vector<2x32xf32>
    %330 = vector.extract_strided_slice %328 {offsets = [0, 32], sizes = [2, 32], strides = [1, 1]} : vector<2x64xf32> to vector<2x32xf32>
    %331 = vector.extract_strided_slice %295 {offsets = [0, 64], sizes = [2, 32], strides = [1, 1]} : vector<2x96xf32> to vector<2x32xf32>
    %332 = vector.extract_strided_slice %320 {offsets = [0, 64], sizes = [2, 32], strides = [1, 1]} : vector<2x96xf32> to vector<2x32xf32>
    %333 = arith.mulf %329, %332 : vector<2x32xf32>
    %334 = arith.addf %331, %333 : vector<2x32xf32>
    %335 = math.tanh %334 : vector<2x32xf32>
    %cst_91 = arith.constant 1.000000e+00 : f32
    %336 = vector.broadcast %cst_91 : f32 to vector<2x32xf32>
    %337 = arith.subf %336, %330 : vector<2x32xf32>
    %338 = arith.mulf %337, %335 : vector<2x32xf32>
    %339 = arith.mulf %330, %317 : vector<2x32xf32>
    %340 = arith.addf %338, %339 : vector<2x32xf32>
    %341 = arith.index_cast %265 : i32 to index
    %c0_92 = arith.constant 0 : index
    %342 = vector.load %arg15[%341, %c0_92] : memref<16x32xf32, #tpu.memory_space<vmem>>, vector<2x32xf32>
    tpu.vector_store %arg15[%341, %c0_92], %340 {strides = array<i32>} : memref<16x32xf32, #tpu.memory_space<vmem>>, vector<2x32xf32>,
    %343 = arith.index_cast %265 : i32 to index
    %c0_93 = arith.constant 0 : index
    %344 = vector.load %arg16[%343, %c0_93] : memref<16x8xf32, #tpu.memory_space<vmem>>, vector<2x8xf32>
    tpu.vector_store %arg16[%343, %c0_93], %313 {strides = array<i32>} : memref<16x8xf32, #tpu.memory_space<vmem>>, vector<2x8xf32>,
    %345 = arith.index_cast %265 : i32 to index
    %c0_94 = arith.constant 0 : index
    %346 = vector.load %arg17[%345, %c0_94] : memref<16x32xf32, #tpu.memory_space<vmem>>, vector<2x32xf32>
    tpu.vector_store %arg17[%345, %c0_94], %317 {strides = array<i32>} : memref<16x32xf32, #tpu.memory_space<vmem>>, vector<2x32xf32>,
    %c4_i32 = arith.constant 4 : i32
    %c2_i32_95 = arith.constant 2 : i32
    %347 = arith.muli %c4_i32, %c2_i32_95 : i32
    %348 = arith.index_cast %347 : i32 to index
    %c0_96 = arith.constant 0 : index
    %349 = vector.load %arg18[%348, %c0_96] : memref<16x96xf32, #tpu.memory_space<vmem>>, vector<2x96xf32>
    %cst_97 = arith.constant dense<0.000000e+00> : vector<2x96xf32>
    %350 = tpu.matmul %340, %2, %cst_97 {dimension_numbers = #tpu.dot_dimension_numbers<[1], [0], [0], [1], [0, 0, 1, 1], [], []>} : vector<2x32xf32>, vector<32x96xf32>, vector<2x96xf32> -> vector<2x96xf32>
    %351 = vector.broadcast %3 : vector<1x96xf32> to vector<2x96xf32>
    %352 = arith.addf %350, %351 : vector<2x96xf32>
    %353 = vector.extract_strided_slice %349 {offsets = [0, 0], sizes = [2, 64], strides = [1, 1]} : vector<2x96xf32> to vector<2x64xf32>
    %354 = vector.extract_strided_slice %352 {offsets = [0, 0], sizes = [2, 64], strides = [1, 1]} : vector<2x96xf32> to vector<2x64xf32>
    %355 = arith.addf %353, %354 : vector<2x64xf32>
    %356 = arith.negf %355 : vector<2x64xf32>
    %357 = math.exp %356 : vector<2x64xf32>
    %cst_98 = arith.constant 1.000000e+00 : f32
    %358 = vector.broadcast %cst_98 : f32 to vector<2x64xf32>
    %359 = arith.addf %358, %357 : vector<2x64xf32>
    %360 = arith.divf %358, %359 : vector<2x64xf32>
    %361 = vector.extract_strided_slice %360 {offsets = [0, 0], sizes = [2, 32], strides = [1, 1]} : vector<2x64xf32> to vector<2x32xf32>
    %362 = vector.extract_strided_slice %360 {offsets = [0, 32], sizes = [2, 32], strides = [1, 1]} : vector<2x64xf32> to vector<2x32xf32>
    %363 = vector.extract_strided_slice %349 {offsets = [0, 64], sizes = [2, 32], strides = [1, 1]} : vector<2x96xf32> to vector<2x32xf32>
    %364 = vector.extract_strided_slice %352 {offsets = [0, 64], sizes = [2, 32], strides = [1, 1]} : vector<2x96xf32> to vector<2x32xf32>
    %365 = arith.mulf %361, %364 : vector<2x32xf32>
    %366 = arith.addf %363, %365 : vector<2x32xf32>
    %367 = math.tanh %366 : vector<2x32xf32>
    %cst_99 = arith.constant 1.000000e+00 : f32
    %368 = vector.broadcast %cst_99 : f32 to vector<2x32xf32>
    %369 = arith.subf %368, %362 : vector<2x32xf32>
    %370 = arith.mulf %369, %367 : vector<2x32xf32>
    %371 = arith.mulf %362, %340 : vector<2x32xf32>
    %372 = arith.addf %370, %371 : vector<2x32xf32>
    %cst_100 = arith.constant dense<0.000000e+00> : vector<2x128xf32>
    %373 = tpu.matmul %372, %4, %cst_100 {dimension_numbers = #tpu.dot_dimension_numbers<[1], [0], [0], [1], [0, 0, 1, 1], [], []>} : vector<2x32xf32>, vector<32x128xf32>, vector<2x128xf32> -> vector<2x128xf32>
    %374 = vector.broadcast %5 : vector<1x128xf32> to vector<2x128xf32>
    %375 = arith.addf %373, %374 : vector<2x128xf32>
    %376 = vector.extract_strided_slice %375 {offsets = [0, 0], sizes = [2, 32], strides = [1, 1]} : vector<2x128xf32> to vector<2x32xf32>
    %377 = vector.extract_strided_slice %375 {offsets = [0, 32], sizes = [2, 96], strides = [1, 1]} : vector<2x128xf32> to vector<2x96xf32>
    %378 = vector.shape_cast %376 : vector<2x32xf32> to vector<2x1x32xf32>
    %379 = vector.broadcast %378 : vector<2x1x32xf32> to vector<2x8x32xf32>
    %380 = arith.addf %1, %379 : vector<2x8x32xf32>
    %381 = math.tanh %380 : vector<2x8x32xf32>
    %382 = vector.broadcast %9 : vector<1x1x32xf32> to vector<2x8x32xf32>
    %383 = arith.mulf %381, %382 : vector<2x8x32xf32>
    %cst_101 = arith.constant dense<0.000000e+00> : vector<2x8xf32>
    %384 = vector.multi_reduction <add>, %383, %cst_101 [2] : vector<2x8x32xf32> to vector<2x8xf32>
    %385 = vector.broadcast %10 : f32 to vector<2x8xf32>
    %386 = arith.addf %384, %385 : vector<2x8xf32>
    %cst_102 = arith.constant dense<0xFF800000> : vector<2xf32>
    %387 = vector.multi_reduction <maximumf>, %386, %cst_102 [1] : vector<2x8xf32> to vector<2xf32>
    %388 = vector.shape_cast %387 : vector<2xf32> to vector<2x1xf32>
    %389 = vector.broadcast %388 : vector<2x1xf32> to vector<2x8xf32>
    %390 = arith.subf %386, %389 : vector<2x8xf32>
    %391 = math.exp %390 : vector<2x8xf32>
    %cst_103 = arith.constant dense<0.000000e+00> : vector<2xf32>
    %392 = vector.multi_reduction <add>, %391, %cst_103 [1] : vector<2x8xf32> to vector<2xf32>
    %393 = vector.shape_cast %392 : vector<2xf32> to vector<2x1xf32>
    %394 = vector.broadcast %393 : vector<2x1xf32> to vector<2x8xf32>
    %395 = arith.divf %391, %394 : vector<2x8xf32>
    %396 = vector.shape_cast %395 : vector<2x8xf32> to vector<2x8x1xf32>
    %397 = vector.broadcast %396 : vector<2x8x1xf32> to vector<2x8x32xf32>
    %398 = arith.mulf %397, %0 : vector<2x8x32xf32>
    %cst_104 = arith.constant dense<0.000000e+00> : vector<2x32xf32>
    %399 = vector.multi_reduction <add>, %398, %cst_104 [1] : vector<2x8x32xf32> to vector<2x32xf32>
    %cst_105 = arith.constant dense<0.000000e+00> : vector<2x96xf32>
    %400 = tpu.matmul %399, %6, %cst_105 {dimension_numbers = #tpu.dot_dimension_numbers<[1], [0], [0], [1], [0, 0, 1, 1], [], []>} : vector<2x32xf32>, vector<32x96xf32>, vector<2x96xf32> -> vector<2x96xf32>
    %401 = vector.broadcast %7 : vector<1x96xf32> to vector<2x96xf32>
    %402 = arith.addf %400, %401 : vector<2x96xf32>
    %403 = vector.extract_strided_slice %377 {offsets = [0, 0], sizes = [2, 64], strides = [1, 1]} : vector<2x96xf32> to vector<2x64xf32>
    %404 = vector.extract_strided_slice %402 {offsets = [0, 0], sizes = [2, 64], strides = [1, 1]} : vector<2x96xf32> to vector<2x64xf32>
    %405 = arith.addf %403, %404 : vector<2x64xf32>
    %406 = arith.negf %405 : vector<2x64xf32>
    %407 = math.exp %406 : vector<2x64xf32>
    %cst_106 = arith.constant 1.000000e+00 : f32
    %408 = vector.broadcast %cst_106 : f32 to vector<2x64xf32>
    %409 = arith.addf %408, %407 : vector<2x64xf32>
    %410 = arith.divf %408, %409 : vector<2x64xf32>
    %411 = vector.extract_strided_slice %410 {offsets = [0, 0], sizes = [2, 32], strides = [1, 1]} : vector<2x64xf32> to vector<2x32xf32>
    %412 = vector.extract_strided_slice %410 {offsets = [0, 32], sizes = [2, 32], strides = [1, 1]} : vector<2x64xf32> to vector<2x32xf32>
    %413 = vector.extract_strided_slice %377 {offsets = [0, 64], sizes = [2, 32], strides = [1, 1]} : vector<2x96xf32> to vector<2x32xf32>
    %414 = vector.extract_strided_slice %402 {offsets = [0, 64], sizes = [2, 32], strides = [1, 1]} : vector<2x96xf32> to vector<2x32xf32>
    %415 = arith.mulf %411, %414 : vector<2x32xf32>
    %416 = arith.addf %413, %415 : vector<2x32xf32>
    %417 = math.tanh %416 : vector<2x32xf32>
    %cst_107 = arith.constant 1.000000e+00 : f32
    %418 = vector.broadcast %cst_107 : f32 to vector<2x32xf32>
    %419 = arith.subf %418, %412 : vector<2x32xf32>
    %420 = arith.mulf %419, %417 : vector<2x32xf32>
    %421 = arith.mulf %412, %399 : vector<2x32xf32>
    %422 = arith.addf %420, %421 : vector<2x32xf32>
    %423 = arith.index_cast %347 : i32 to index
    %c0_108 = arith.constant 0 : index
    %424 = vector.load %arg15[%423, %c0_108] : memref<16x32xf32, #tpu.memory_space<vmem>>, vector<2x32xf32>
    tpu.vector_store %arg15[%423, %c0_108], %422 {strides = array<i32>} : memref<16x32xf32, #tpu.memory_space<vmem>>, vector<2x32xf32>,
    %425 = arith.index_cast %347 : i32 to index
    %c0_109 = arith.constant 0 : index
    %426 = vector.load %arg16[%425, %c0_109] : memref<16x8xf32, #tpu.memory_space<vmem>>, vector<2x8xf32>
    tpu.vector_store %arg16[%425, %c0_109], %395 {strides = array<i32>} : memref<16x8xf32, #tpu.memory_space<vmem>>, vector<2x8xf32>,
    %427 = arith.index_cast %347 : i32 to index
    %c0_110 = arith.constant 0 : index
    %428 = vector.load %arg17[%427, %c0_110] : memref<16x32xf32, #tpu.memory_space<vmem>>, vector<2x32xf32>
    tpu.vector_store %arg17[%427, %c0_110], %399 {strides = array<i32>} : memref<16x32xf32, #tpu.memory_space<vmem>>, vector<2x32xf32>,
    %c5_i32 = arith.constant 5 : i32
    %c2_i32_111 = arith.constant 2 : i32
    %429 = arith.muli %c5_i32, %c2_i32_111 : i32
    %430 = arith.index_cast %429 : i32 to index
    %c0_112 = arith.constant 0 : index
    %431 = vector.load %arg18[%430, %c0_112] : memref<16x96xf32, #tpu.memory_space<vmem>>, vector<2x96xf32>
    %cst_113 = arith.constant dense<0.000000e+00> : vector<2x96xf32>
    %432 = tpu.matmul %422, %2, %cst_113 {dimension_numbers = #tpu.dot_dimension_numbers<[1], [0], [0], [1], [0, 0, 1, 1], [], []>} : vector<2x32xf32>, vector<32x96xf32>, vector<2x96xf32> -> vector<2x96xf32>
    %433 = vector.broadcast %3 : vector<1x96xf32> to vector<2x96xf32>
    %434 = arith.addf %432, %433 : vector<2x96xf32>
    %435 = vector.extract_strided_slice %431 {offsets = [0, 0], sizes = [2, 64], strides = [1, 1]} : vector<2x96xf32> to vector<2x64xf32>
    %436 = vector.extract_strided_slice %434 {offsets = [0, 0], sizes = [2, 64], strides = [1, 1]} : vector<2x96xf32> to vector<2x64xf32>
    %437 = arith.addf %435, %436 : vector<2x64xf32>
    %438 = arith.negf %437 : vector<2x64xf32>
    %439 = math.exp %438 : vector<2x64xf32>
    %cst_114 = arith.constant 1.000000e+00 : f32
    %440 = vector.broadcast %cst_114 : f32 to vector<2x64xf32>
    %441 = arith.addf %440, %439 : vector<2x64xf32>
    %442 = arith.divf %440, %441 : vector<2x64xf32>
    %443 = vector.extract_strided_slice %442 {offsets = [0, 0], sizes = [2, 32], strides = [1, 1]} : vector<2x64xf32> to vector<2x32xf32>
    %444 = vector.extract_strided_slice %442 {offsets = [0, 32], sizes = [2, 32], strides = [1, 1]} : vector<2x64xf32> to vector<2x32xf32>
    %445 = vector.extract_strided_slice %431 {offsets = [0, 64], sizes = [2, 32], strides = [1, 1]} : vector<2x96xf32> to vector<2x32xf32>
    %446 = vector.extract_strided_slice %434 {offsets = [0, 64], sizes = [2, 32], strides = [1, 1]} : vector<2x96xf32> to vector<2x32xf32>
    %447 = arith.mulf %443, %446 : vector<2x32xf32>
    %448 = arith.addf %445, %447 : vector<2x32xf32>
    %449 = math.tanh %448 : vector<2x32xf32>
    %cst_115 = arith.constant 1.000000e+00 : f32
    %450 = vector.broadcast %cst_115 : f32 to vector<2x32xf32>
    %451 = arith.subf %450, %444 : vector<2x32xf32>
    %452 = arith.mulf %451, %449 : vector<2x32xf32>
    %453 = arith.mulf %444, %422 : vector<2x32xf32>
    %454 = arith.addf %452, %453 : vector<2x32xf32>
    %cst_116 = arith.constant dense<0.000000e+00> : vector<2x128xf32>
    %455 = tpu.matmul %454, %4, %cst_116 {dimension_numbers = #tpu.dot_dimension_numbers<[1], [0], [0], [1], [0, 0, 1, 1], [], []>} : vector<2x32xf32>, vector<32x128xf32>, vector<2x128xf32> -> vector<2x128xf32>
    %456 = vector.broadcast %5 : vector<1x128xf32> to vector<2x128xf32>
    %457 = arith.addf %455, %456 : vector<2x128xf32>
    %458 = vector.extract_strided_slice %457 {offsets = [0, 0], sizes = [2, 32], strides = [1, 1]} : vector<2x128xf32> to vector<2x32xf32>
    %459 = vector.extract_strided_slice %457 {offsets = [0, 32], sizes = [2, 96], strides = [1, 1]} : vector<2x128xf32> to vector<2x96xf32>
    %460 = vector.shape_cast %458 : vector<2x32xf32> to vector<2x1x32xf32>
    %461 = vector.broadcast %460 : vector<2x1x32xf32> to vector<2x8x32xf32>
    %462 = arith.addf %1, %461 : vector<2x8x32xf32>
    %463 = math.tanh %462 : vector<2x8x32xf32>
    %464 = vector.broadcast %9 : vector<1x1x32xf32> to vector<2x8x32xf32>
    %465 = arith.mulf %463, %464 : vector<2x8x32xf32>
    %cst_117 = arith.constant dense<0.000000e+00> : vector<2x8xf32>
    %466 = vector.multi_reduction <add>, %465, %cst_117 [2] : vector<2x8x32xf32> to vector<2x8xf32>
    %467 = vector.broadcast %10 : f32 to vector<2x8xf32>
    %468 = arith.addf %466, %467 : vector<2x8xf32>
    %cst_118 = arith.constant dense<0xFF800000> : vector<2xf32>
    %469 = vector.multi_reduction <maximumf>, %468, %cst_118 [1] : vector<2x8xf32> to vector<2xf32>
    %470 = vector.shape_cast %469 : vector<2xf32> to vector<2x1xf32>
    %471 = vector.broadcast %470 : vector<2x1xf32> to vector<2x8xf32>
    %472 = arith.subf %468, %471 : vector<2x8xf32>
    %473 = math.exp %472 : vector<2x8xf32>
    %cst_119 = arith.constant dense<0.000000e+00> : vector<2xf32>
    %474 = vector.multi_reduction <add>, %473, %cst_119 [1] : vector<2x8xf32> to vector<2xf32>
    %475 = vector.shape_cast %474 : vector<2xf32> to vector<2x1xf32>
    %476 = vector.broadcast %475 : vector<2x1xf32> to vector<2x8xf32>
    %477 = arith.divf %473, %476 : vector<2x8xf32>
    %478 = vector.shape_cast %477 : vector<2x8xf32> to vector<2x8x1xf32>
    %479 = vector.broadcast %478 : vector<2x8x1xf32> to vector<2x8x32xf32>
    %480 = arith.mulf %479, %0 : vector<2x8x32xf32>
    %cst_120 = arith.constant dense<0.000000e+00> : vector<2x32xf32>
    %481 = vector.multi_reduction <add>, %480, %cst_120 [1] : vector<2x8x32xf32> to vector<2x32xf32>
    %cst_121 = arith.constant dense<0.000000e+00> : vector<2x96xf32>
    %482 = tpu.matmul %481, %6, %cst_121 {dimension_numbers = #tpu.dot_dimension_numbers<[1], [0], [0], [1], [0, 0, 1, 1], [], []>} : vector<2x32xf32>, vector<32x96xf32>, vector<2x96xf32> -> vector<2x96xf32>
    %483 = vector.broadcast %7 : vector<1x96xf32> to vector<2x96xf32>
    %484 = arith.addf %482, %483 : vector<2x96xf32>
    %485 = vector.extract_strided_slice %459 {offsets = [0, 0], sizes = [2, 64], strides = [1, 1]} : vector<2x96xf32> to vector<2x64xf32>
    %486 = vector.extract_strided_slice %484 {offsets = [0, 0], sizes = [2, 64], strides = [1, 1]} : vector<2x96xf32> to vector<2x64xf32>
    %487 = arith.addf %485, %486 : vector<2x64xf32>
    %488 = arith.negf %487 : vector<2x64xf32>
    %489 = math.exp %488 : vector<2x64xf32>
    %cst_122 = arith.constant 1.000000e+00 : f32
    %490 = vector.broadcast %cst_122 : f32 to vector<2x64xf32>
    %491 = arith.addf %490, %489 : vector<2x64xf32>
    %492 = arith.divf %490, %491 : vector<2x64xf32>
    %493 = vector.extract_strided_slice %492 {offsets = [0, 0], sizes = [2, 32], strides = [1, 1]} : vector<2x64xf32> to vector<2x32xf32>
    %494 = vector.extract_strided_slice %492 {offsets = [0, 32], sizes = [2, 32], strides = [1, 1]} : vector<2x64xf32> to vector<2x32xf32>
    %495 = vector.extract_strided_slice %459 {offsets = [0, 64], sizes = [2, 32], strides = [1, 1]} : vector<2x96xf32> to vector<2x32xf32>
    %496 = vector.extract_strided_slice %484 {offsets = [0, 64], sizes = [2, 32], strides = [1, 1]} : vector<2x96xf32> to vector<2x32xf32>
    %497 = arith.mulf %493, %496 : vector<2x32xf32>
    %498 = arith.addf %495, %497 : vector<2x32xf32>
    %499 = math.tanh %498 : vector<2x32xf32>
    %cst_123 = arith.constant 1.000000e+00 : f32
    %500 = vector.broadcast %cst_123 : f32 to vector<2x32xf32>
    %501 = arith.subf %500, %494 : vector<2x32xf32>
    %502 = arith.mulf %501, %499 : vector<2x32xf32>
    %503 = arith.mulf %494, %481 : vector<2x32xf32>
    %504 = arith.addf %502, %503 : vector<2x32xf32>
    %505 = arith.index_cast %429 : i32 to index
    %c0_124 = arith.constant 0 : index
    %506 = vector.load %arg15[%505, %c0_124] : memref<16x32xf32, #tpu.memory_space<vmem>>, vector<2x32xf32>
    tpu.vector_store %arg15[%505, %c0_124], %504 {strides = array<i32>} : memref<16x32xf32, #tpu.memory_space<vmem>>, vector<2x32xf32>,
    %507 = arith.index_cast %429 : i32 to index
    %c0_125 = arith.constant 0 : index
    %508 = vector.load %arg16[%507, %c0_125] : memref<16x8xf32, #tpu.memory_space<vmem>>, vector<2x8xf32>
    tpu.vector_store %arg16[%507, %c0_125], %477 {strides = array<i32>} : memref<16x8xf32, #tpu.memory_space<vmem>>, vector<2x8xf32>,
    %509 = arith.index_cast %429 : i32 to index
    %c0_126 = arith.constant 0 : index
    %510 = vector.load %arg17[%509, %c0_126] : memref<16x32xf32, #tpu.memory_space<vmem>>, vector<2x32xf32>
    tpu.vector_store %arg17[%509, %c0_126], %481 {strides = array<i32>} : memref<16x32xf32, #tpu.memory_space<vmem>>, vector<2x32xf32>,
    %c6_i32 = arith.constant 6 : i32
    %c2_i32_127 = arith.constant 2 : i32
    %511 = arith.muli %c6_i32, %c2_i32_127 : i32
    %512 = arith.index_cast %511 : i32 to index
    %c0_128 = arith.constant 0 : index
    %513 = vector.load %arg18[%512, %c0_128] : memref<16x96xf32, #tpu.memory_space<vmem>>, vector<2x96xf32>
    %cst_129 = arith.constant dense<0.000000e+00> : vector<2x96xf32>
    %514 = tpu.matmul %504, %2, %cst_129 {dimension_numbers = #tpu.dot_dimension_numbers<[1], [0], [0], [1], [0, 0, 1, 1], [], []>} : vector<2x32xf32>, vector<32x96xf32>, vector<2x96xf32> -> vector<2x96xf32>
    %515 = vector.broadcast %3 : vector<1x96xf32> to vector<2x96xf32>
    %516 = arith.addf %514, %515 : vector<2x96xf32>
    %517 = vector.extract_strided_slice %513 {offsets = [0, 0], sizes = [2, 64], strides = [1, 1]} : vector<2x96xf32> to vector<2x64xf32>
    %518 = vector.extract_strided_slice %516 {offsets = [0, 0], sizes = [2, 64], strides = [1, 1]} : vector<2x96xf32> to vector<2x64xf32>
    %519 = arith.addf %517, %518 : vector<2x64xf32>
    %520 = arith.negf %519 : vector<2x64xf32>
    %521 = math.exp %520 : vector<2x64xf32>
    %cst_130 = arith.constant 1.000000e+00 : f32
    %522 = vector.broadcast %cst_130 : f32 to vector<2x64xf32>
    %523 = arith.addf %522, %521 : vector<2x64xf32>
    %524 = arith.divf %522, %523 : vector<2x64xf32>
    %525 = vector.extract_strided_slice %524 {offsets = [0, 0], sizes = [2, 32], strides = [1, 1]} : vector<2x64xf32> to vector<2x32xf32>
    %526 = vector.extract_strided_slice %524 {offsets = [0, 32], sizes = [2, 32], strides = [1, 1]} : vector<2x64xf32> to vector<2x32xf32>
    %527 = vector.extract_strided_slice %513 {offsets = [0, 64], sizes = [2, 32], strides = [1, 1]} : vector<2x96xf32> to vector<2x32xf32>
    %528 = vector.extract_strided_slice %516 {offsets = [0, 64], sizes = [2, 32], strides = [1, 1]} : vector<2x96xf32> to vector<2x32xf32>
    %529 = arith.mulf %525, %528 : vector<2x32xf32>
    %530 = arith.addf %527, %529 : vector<2x32xf32>
    %531 = math.tanh %530 : vector<2x32xf32>
    %cst_131 = arith.constant 1.000000e+00 : f32
    %532 = vector.broadcast %cst_131 : f32 to vector<2x32xf32>
    %533 = arith.subf %532, %526 : vector<2x32xf32>
    %534 = arith.mulf %533, %531 : vector<2x32xf32>
    %535 = arith.mulf %526, %504 : vector<2x32xf32>
    %536 = arith.addf %534, %535 : vector<2x32xf32>
    %cst_132 = arith.constant dense<0.000000e+00> : vector<2x128xf32>
    %537 = tpu.matmul %536, %4, %cst_132 {dimension_numbers = #tpu.dot_dimension_numbers<[1], [0], [0], [1], [0, 0, 1, 1], [], []>} : vector<2x32xf32>, vector<32x128xf32>, vector<2x128xf32> -> vector<2x128xf32>
    %538 = vector.broadcast %5 : vector<1x128xf32> to vector<2x128xf32>
    %539 = arith.addf %537, %538 : vector<2x128xf32>
    %540 = vector.extract_strided_slice %539 {offsets = [0, 0], sizes = [2, 32], strides = [1, 1]} : vector<2x128xf32> to vector<2x32xf32>
    %541 = vector.extract_strided_slice %539 {offsets = [0, 32], sizes = [2, 96], strides = [1, 1]} : vector<2x128xf32> to vector<2x96xf32>
    %542 = vector.shape_cast %540 : vector<2x32xf32> to vector<2x1x32xf32>
    %543 = vector.broadcast %542 : vector<2x1x32xf32> to vector<2x8x32xf32>
    %544 = arith.addf %1, %543 : vector<2x8x32xf32>
    %545 = math.tanh %544 : vector<2x8x32xf32>
    %546 = vector.broadcast %9 : vector<1x1x32xf32> to vector<2x8x32xf32>
    %547 = arith.mulf %545, %546 : vector<2x8x32xf32>
    %cst_133 = arith.constant dense<0.000000e+00> : vector<2x8xf32>
    %548 = vector.multi_reduction <add>, %547, %cst_133 [2] : vector<2x8x32xf32> to vector<2x8xf32>
    %549 = vector.broadcast %10 : f32 to vector<2x8xf32>
    %550 = arith.addf %548, %549 : vector<2x8xf32>
    %cst_134 = arith.constant dense<0xFF800000> : vector<2xf32>
    %551 = vector.multi_reduction <maximumf>, %550, %cst_134 [1] : vector<2x8xf32> to vector<2xf32>
    %552 = vector.shape_cast %551 : vector<2xf32> to vector<2x1xf32>
    %553 = vector.broadcast %552 : vector<2x1xf32> to vector<2x8xf32>
    %554 = arith.subf %550, %553 : vector<2x8xf32>
    %555 = math.exp %554 : vector<2x8xf32>
    %cst_135 = arith.constant dense<0.000000e+00> : vector<2xf32>
    %556 = vector.multi_reduction <add>, %555, %cst_135 [1] : vector<2x8xf32> to vector<2xf32>
    %557 = vector.shape_cast %556 : vector<2xf32> to vector<2x1xf32>
    %558 = vector.broadcast %557 : vector<2x1xf32> to vector<2x8xf32>
    %559 = arith.divf %555, %558 : vector<2x8xf32>
    %560 = vector.shape_cast %559 : vector<2x8xf32> to vector<2x8x1xf32>
    %561 = vector.broadcast %560 : vector<2x8x1xf32> to vector<2x8x32xf32>
    %562 = arith.mulf %561, %0 : vector<2x8x32xf32>
    %cst_136 = arith.constant dense<0.000000e+00> : vector<2x32xf32>
    %563 = vector.multi_reduction <add>, %562, %cst_136 [1] : vector<2x8x32xf32> to vector<2x32xf32>
    %cst_137 = arith.constant dense<0.000000e+00> : vector<2x96xf32>
    %564 = tpu.matmul %563, %6, %cst_137 {dimension_numbers = #tpu.dot_dimension_numbers<[1], [0], [0], [1], [0, 0, 1, 1], [], []>} : vector<2x32xf32>, vector<32x96xf32>, vector<2x96xf32> -> vector<2x96xf32>
    %565 = vector.broadcast %7 : vector<1x96xf32> to vector<2x96xf32>
    %566 = arith.addf %564, %565 : vector<2x96xf32>
    %567 = vector.extract_strided_slice %541 {offsets = [0, 0], sizes = [2, 64], strides = [1, 1]} : vector<2x96xf32> to vector<2x64xf32>
    %568 = vector.extract_strided_slice %566 {offsets = [0, 0], sizes = [2, 64], strides = [1, 1]} : vector<2x96xf32> to vector<2x64xf32>
    %569 = arith.addf %567, %568 : vector<2x64xf32>
    %570 = arith.negf %569 : vector<2x64xf32>
    %571 = math.exp %570 : vector<2x64xf32>
    %cst_138 = arith.constant 1.000000e+00 : f32
    %572 = vector.broadcast %cst_138 : f32 to vector<2x64xf32>
    %573 = arith.addf %572, %571 : vector<2x64xf32>
    %574 = arith.divf %572, %573 : vector<2x64xf32>
    %575 = vector.extract_strided_slice %574 {offsets = [0, 0], sizes = [2, 32], strides = [1, 1]} : vector<2x64xf32> to vector<2x32xf32>
    %576 = vector.extract_strided_slice %574 {offsets = [0, 32], sizes = [2, 32], strides = [1, 1]} : vector<2x64xf32> to vector<2x32xf32>
    %577 = vector.extract_strided_slice %541 {offsets = [0, 64], sizes = [2, 32], strides = [1, 1]} : vector<2x96xf32> to vector<2x32xf32>
    %578 = vector.extract_strided_slice %566 {offsets = [0, 64], sizes = [2, 32], strides = [1, 1]} : vector<2x96xf32> to vector<2x32xf32>
    %579 = arith.mulf %575, %578 : vector<2x32xf32>
    %580 = arith.addf %577, %579 : vector<2x32xf32>
    %581 = math.tanh %580 : vector<2x32xf32>
    %cst_139 = arith.constant 1.000000e+00 : f32
    %582 = vector.broadcast %cst_139 : f32 to vector<2x32xf32>
    %583 = arith.subf %582, %576 : vector<2x32xf32>
    %584 = arith.mulf %583, %581 : vector<2x32xf32>
    %585 = arith.mulf %576, %563 : vector<2x32xf32>
    %586 = arith.addf %584, %585 : vector<2x32xf32>
    %587 = arith.index_cast %511 : i32 to index
    %c0_140 = arith.constant 0 : index
    %588 = vector.load %arg15[%587, %c0_140] : memref<16x32xf32, #tpu.memory_space<vmem>>, vector<2x32xf32>
    tpu.vector_store %arg15[%587, %c0_140], %586 {strides = array<i32>} : memref<16x32xf32, #tpu.memory_space<vmem>>, vector<2x32xf32>,
    %589 = arith.index_cast %511 : i32 to index
    %c0_141 = arith.constant 0 : index
    %590 = vector.load %arg16[%589, %c0_141] : memref<16x8xf32, #tpu.memory_space<vmem>>, vector<2x8xf32>
    tpu.vector_store %arg16[%589, %c0_141], %559 {strides = array<i32>} : memref<16x8xf32, #tpu.memory_space<vmem>>, vector<2x8xf32>,
    %591 = arith.index_cast %511 : i32 to index
    %c0_142 = arith.constant 0 : index
    %592 = vector.load %arg17[%591, %c0_142] : memref<16x32xf32, #tpu.memory_space<vmem>>, vector<2x32xf32>
    tpu.vector_store %arg17[%591, %c0_142], %563 {strides = array<i32>} : memref<16x32xf32, #tpu.memory_space<vmem>>, vector<2x32xf32>,
    %c7_i32 = arith.constant 7 : i32
    %c2_i32_143 = arith.constant 2 : i32
    %593 = arith.muli %c7_i32, %c2_i32_143 : i32
    %594 = arith.index_cast %593 : i32 to index
    %c0_144 = arith.constant 0 : index
    %595 = vector.load %arg18[%594, %c0_144] : memref<16x96xf32, #tpu.memory_space<vmem>>, vector<2x96xf32>
    %cst_145 = arith.constant dense<0.000000e+00> : vector<2x96xf32>
    %596 = tpu.matmul %586, %2, %cst_145 {dimension_numbers = #tpu.dot_dimension_numbers<[1], [0], [0], [1], [0, 0, 1, 1], [], []>} : vector<2x32xf32>, vector<32x96xf32>, vector<2x96xf32> -> vector<2x96xf32>
    %597 = vector.broadcast %3 : vector<1x96xf32> to vector<2x96xf32>
    %598 = arith.addf %596, %597 : vector<2x96xf32>
    %599 = vector.extract_strided_slice %595 {offsets = [0, 0], sizes = [2, 64], strides = [1, 1]} : vector<2x96xf32> to vector<2x64xf32>
    %600 = vector.extract_strided_slice %598 {offsets = [0, 0], sizes = [2, 64], strides = [1, 1]} : vector<2x96xf32> to vector<2x64xf32>
    %601 = arith.addf %599, %600 : vector<2x64xf32>
    %602 = arith.negf %601 : vector<2x64xf32>
    %603 = math.exp %602 : vector<2x64xf32>
    %cst_146 = arith.constant 1.000000e+00 : f32
    %604 = vector.broadcast %cst_146 : f32 to vector<2x64xf32>
    %605 = arith.addf %604, %603 : vector<2x64xf32>
    %606 = arith.divf %604, %605 : vector<2x64xf32>
    %607 = vector.extract_strided_slice %606 {offsets = [0, 0], sizes = [2, 32], strides = [1, 1]} : vector<2x64xf32> to vector<2x32xf32>
    %608 = vector.extract_strided_slice %606 {offsets = [0, 32], sizes = [2, 32], strides = [1, 1]} : vector<2x64xf32> to vector<2x32xf32>
    %609 = vector.extract_strided_slice %595 {offsets = [0, 64], sizes = [2, 32], strides = [1, 1]} : vector<2x96xf32> to vector<2x32xf32>
    %610 = vector.extract_strided_slice %598 {offsets = [0, 64], sizes = [2, 32], strides = [1, 1]} : vector<2x96xf32> to vector<2x32xf32>
    %611 = arith.mulf %607, %610 : vector<2x32xf32>
    %612 = arith.addf %609, %611 : vector<2x32xf32>
    %613 = math.tanh %612 : vector<2x32xf32>
    %cst_147 = arith.constant 1.000000e+00 : f32
    %614 = vector.broadcast %cst_147 : f32 to vector<2x32xf32>
    %615 = arith.subf %614, %608 : vector<2x32xf32>
    %616 = arith.mulf %615, %613 : vector<2x32xf32>
    %617 = arith.mulf %608, %586 : vector<2x32xf32>
    %618 = arith.addf %616, %617 : vector<2x32xf32>
    %cst_148 = arith.constant dense<0.000000e+00> : vector<2x128xf32>
    %619 = tpu.matmul %618, %4, %cst_148 {dimension_numbers = #tpu.dot_dimension_numbers<[1], [0], [0], [1], [0, 0, 1, 1], [], []>} : vector<2x32xf32>, vector<32x128xf32>, vector<2x128xf32> -> vector<2x128xf32>
    %620 = vector.broadcast %5 : vector<1x128xf32> to vector<2x128xf32>
    %621 = arith.addf %619, %620 : vector<2x128xf32>
    %622 = vector.extract_strided_slice %621 {offsets = [0, 0], sizes = [2, 32], strides = [1, 1]} : vector<2x128xf32> to vector<2x32xf32>
    %623 = vector.extract_strided_slice %621 {offsets = [0, 32], sizes = [2, 96], strides = [1, 1]} : vector<2x128xf32> to vector<2x96xf32>
    %624 = vector.shape_cast %622 : vector<2x32xf32> to vector<2x1x32xf32>
    %625 = vector.broadcast %624 : vector<2x1x32xf32> to vector<2x8x32xf32>
    %626 = arith.addf %1, %625 : vector<2x8x32xf32>
    %627 = math.tanh %626 : vector<2x8x32xf32>
    %628 = vector.broadcast %9 : vector<1x1x32xf32> to vector<2x8x32xf32>
    %629 = arith.mulf %627, %628 : vector<2x8x32xf32>
    %cst_149 = arith.constant dense<0.000000e+00> : vector<2x8xf32>
    %630 = vector.multi_reduction <add>, %629, %cst_149 [2] : vector<2x8x32xf32> to vector<2x8xf32>
    %631 = vector.broadcast %10 : f32 to vector<2x8xf32>
    %632 = arith.addf %630, %631 : vector<2x8xf32>
    %cst_150 = arith.constant dense<0xFF800000> : vector<2xf32>
    %633 = vector.multi_reduction <maximumf>, %632, %cst_150 [1] : vector<2x8xf32> to vector<2xf32>
    %634 = vector.shape_cast %633 : vector<2xf32> to vector<2x1xf32>
    %635 = vector.broadcast %634 : vector<2x1xf32> to vector<2x8xf32>
    %636 = arith.subf %632, %635 : vector<2x8xf32>
    %637 = math.exp %636 : vector<2x8xf32>
    %cst_151 = arith.constant dense<0.000000e+00> : vector<2xf32>
    %638 = vector.multi_reduction <add>, %637, %cst_151 [1] : vector<2x8xf32> to vector<2xf32>
    %639 = vector.shape_cast %638 : vector<2xf32> to vector<2x1xf32>
    %640 = vector.broadcast %639 : vector<2x1xf32> to vector<2x8xf32>
    %641 = arith.divf %637, %640 : vector<2x8xf32>
    %642 = vector.shape_cast %641 : vector<2x8xf32> to vector<2x8x1xf32>
    %643 = vector.broadcast %642 : vector<2x8x1xf32> to vector<2x8x32xf32>
    %644 = arith.mulf %643, %0 : vector<2x8x32xf32>
    %cst_152 = arith.constant dense<0.000000e+00> : vector<2x32xf32>
    %645 = vector.multi_reduction <add>, %644, %cst_152 [1] : vector<2x8x32xf32> to vector<2x32xf32>
    %cst_153 = arith.constant dense<0.000000e+00> : vector<2x96xf32>
    %646 = tpu.matmul %645, %6, %cst_153 {dimension_numbers = #tpu.dot_dimension_numbers<[1], [0], [0], [1], [0, 0, 1, 1], [], []>} : vector<2x32xf32>, vector<32x96xf32>, vector<2x96xf32> -> vector<2x96xf32>
    %647 = vector.broadcast %7 : vector<1x96xf32> to vector<2x96xf32>
    %648 = arith.addf %646, %647 : vector<2x96xf32>
    %649 = vector.extract_strided_slice %623 {offsets = [0, 0], sizes = [2, 64], strides = [1, 1]} : vector<2x96xf32> to vector<2x64xf32>
    %650 = vector.extract_strided_slice %648 {offsets = [0, 0], sizes = [2, 64], strides = [1, 1]} : vector<2x96xf32> to vector<2x64xf32>
    %651 = arith.addf %649, %650 : vector<2x64xf32>
    %652 = arith.negf %651 : vector<2x64xf32>
    %653 = math.exp %652 : vector<2x64xf32>
    %cst_154 = arith.constant 1.000000e+00 : f32
    %654 = vector.broadcast %cst_154 : f32 to vector<2x64xf32>
    %655 = arith.addf %654, %653 : vector<2x64xf32>
    %656 = arith.divf %654, %655 : vector<2x64xf32>
    %657 = vector.extract_strided_slice %656 {offsets = [0, 0], sizes = [2, 32], strides = [1, 1]} : vector<2x64xf32> to vector<2x32xf32>
    %658 = vector.extract_strided_slice %656 {offsets = [0, 32], sizes = [2, 32], strides = [1, 1]} : vector<2x64xf32> to vector<2x32xf32>
    %659 = vector.extract_strided_slice %623 {offsets = [0, 64], sizes = [2, 32], strides = [1, 1]} : vector<2x96xf32> to vector<2x32xf32>
    %660 = vector.extract_strided_slice %648 {offsets = [0, 64], sizes = [2, 32], strides = [1, 1]} : vector<2x96xf32> to vector<2x32xf32>
    %661 = arith.mulf %657, %660 : vector<2x32xf32>
    %662 = arith.addf %659, %661 : vector<2x32xf32>
    %663 = math.tanh %662 : vector<2x32xf32>
    %cst_155 = arith.constant 1.000000e+00 : f32
    %664 = vector.broadcast %cst_155 : f32 to vector<2x32xf32>
    %665 = arith.subf %664, %658 : vector<2x32xf32>
    %666 = arith.mulf %665, %663 : vector<2x32xf32>
    %667 = arith.mulf %658, %645 : vector<2x32xf32>
    %668 = arith.addf %666, %667 : vector<2x32xf32>
    %669 = arith.index_cast %593 : i32 to index
    %c0_156 = arith.constant 0 : index
    %670 = vector.load %arg15[%669, %c0_156] : memref<16x32xf32, #tpu.memory_space<vmem>>, vector<2x32xf32>
    tpu.vector_store %arg15[%669, %c0_156], %668 {strides = array<i32>} : memref<16x32xf32, #tpu.memory_space<vmem>>, vector<2x32xf32>,
    %671 = arith.index_cast %593 : i32 to index
    %c0_157 = arith.constant 0 : index
    %672 = vector.load %arg16[%671, %c0_157] : memref<16x8xf32, #tpu.memory_space<vmem>>, vector<2x8xf32>
    tpu.vector_store %arg16[%671, %c0_157], %641 {strides = array<i32>} : memref<16x8xf32, #tpu.memory_space<vmem>>, vector<2x8xf32>,
    %673 = arith.index_cast %593 : i32 to index
    %c0_158 = arith.constant 0 : index
    %674 = vector.load %arg17[%673, %c0_158] : memref<16x32xf32, #tpu.memory_space<vmem>>, vector<2x32xf32>
    tpu.vector_store %arg17[%673, %c0_158], %645 {strides = array<i32>} : memref<16x32xf32, #tpu.memory_space<vmem>>, vector<2x32xf32>,
    %c8_i32 = arith.constant 8 : i32
    return
  }
  func.func @transform_0(%arg0: i32) -> (i32, i32) {
    %c0_i32 = arith.constant 0 : i32
    %c0_i32_0 = arith.constant 0 : i32
    %c0_i32_1 = arith.constant 0 : i32
    return %c0_i32, %c0_i32_0 : i32, i32
  }
  func.func @transform_1(%arg0: i32) -> (i32, i32) {
    %c0_i32 = arith.constant 0 : i32
    %c0_i32_0 = arith.constant 0 : i32
    %c0_i32_1 = arith.constant 0 : i32
    return %c0_i32, %c0_i32_0 : i32, i32
  }
  func.func @transform_2(%arg0: i32) -> (i32, i32, i32) {
    %c0_i32 = arith.constant 0 : i32
    %c0_i32_0 = arith.constant 0 : i32
    %c0_i32_1 = arith.constant 0 : i32
    %c0_i32_2 = arith.constant 0 : i32
    return %c0_i32, %c0_i32_0, %c0_i32_1 : i32, i32, i32
  }
  func.func @transform_3(%arg0: i32) -> (i32, i32, i32) {
    %c0_i32 = arith.constant 0 : i32
    %c0_i32_0 = arith.constant 0 : i32
    %c0_i32_1 = arith.constant 0 : i32
    %c0_i32_2 = arith.constant 0 : i32
    return %c0_i32, %c0_i32_0, %c0_i32_1 : i32, i32, i32
  }
  func.func @transform_4(%arg0: i32) -> (i32, i32) {
    %c0_i32 = arith.constant 0 : i32
    %c0_i32_0 = arith.constant 0 : i32
    %c0_i32_1 = arith.constant 0 : i32
    return %c0_i32, %c0_i32_0 : i32, i32
  }
  func.func @transform_5(%arg0: i32) -> (i32, i32) {
    %c0_i32 = arith.constant 0 : i32
    %c0_i32_0 = arith.constant 0 : i32
    %c0_i32_1 = arith.constant 0 : i32
    return %c0_i32, %c0_i32_0 : i32, i32
  }
  func.func @transform_6(%arg0: i32) -> (i32, i32) {
    %c0_i32 = arith.constant 0 : i32
    %c0_i32_0 = arith.constant 0 : i32
    %c0_i32_1 = arith.constant 0 : i32
    return %c0_i32, %c0_i32_0 : i32, i32
  }
  func.func @transform_7(%arg0: i32) -> (i32, i32) {
    %c0_i32 = arith.constant 0 : i32
    %c0_i32_0 = arith.constant 0 : i32
    %c0_i32_1 = arith.constant 0 : i32
    return %c0_i32, %c0_i32_0 : i32, i32
  }
  func.func @transform_8(%arg0: i32) -> (i32, i32) {
    %c0_i32 = arith.constant 0 : i32
    %c0_i32_0 = arith.constant 0 : i32
    %c0_i32_1 = arith.constant 0 : i32
    return %c0_i32, %c0_i32_0 : i32, i32
  }
  func.func @transform_9(%arg0: i32) -> (i32, i32) {
    %c0_i32 = arith.constant 0 : i32
    %c0_i32_0 = arith.constant 0 : i32
    %c0_i32_1 = arith.constant 0 : i32
    return %c0_i32, %c0_i32_0 : i32, i32
  }
  func.func @transform_10(%arg0: i32) -> (i32, i32) {
    %c0_i32 = arith.constant 0 : i32
    %c0_i32_0 = arith.constant 0 : i32
    %c0_i32_1 = arith.constant 0 : i32
    return %c0_i32, %c0_i32_0 : i32, i32
  }
  func.func @transform_11(%arg0: i32) -> (i32, i32) {
    %c0_i32 = arith.constant 0 : i32
    %c0_i32_0 = arith.constant 0 : i32
    %c0_i32_1 = arith.constant 0 : i32
    return %c0_i32, %c0_i32_0 : i32, i32
  }
  func.func @transform_12(%arg0: i32) -> (i32, i32) {
    %c0_i32 = arith.constant 0 : i32
    %c0_i32_0 = arith.constant 0 : i32
    %c0_i32_1 = arith.constant 0 : i32
    return %c0_i32, %c0_i32_0 : i32, i32
  }
  func.func @transform_13(%arg0: i32) -> (i32, i32) {
    %c0_i32 = arith.constant 0 : i32
    %c0_i32_0 = arith.constant 0 : i32
    %c0_i32_1 = arith.constant 0 : i32
    return %c0_i32, %c0_i32_0 : i32, i32
  }
  func.func @transform_14(%arg0: i32) -> (i32, i32) {
    %c0_i32 = arith.constant 0 : i32
    %c0_i32_0 = arith.constant 0 : i32
    %c0_i32_1 = arith.constant 0 : i32
    return %c0_i32, %c0_i32_0 : i32, i32
  }
  func.func @transform_15(%arg0: i32) -> (i32, i32) {
    %c0_i32 = arith.constant 0 : i32
    %c0_i32_0 = arith.constant 0 : i32
    %c0_i32_1 = arith.constant 0 : i32
    return %c0_i32, %c0_i32_0 : i32, i32
  }
  func.func @transform_16(%arg0: i32) -> (i32, i32) {
    %c0_i32 = arith.constant 0 : i32
    %c0_i32_0 = arith.constant 0 : i32
    %c0_i32_1 = arith.constant 0 : i32
    return %c0_i32, %c0_i32_0 : i32, i32
  }
}

</mosaic_0001>

<bundles_post_ra>
// kernel: tpu_custom_call.1
= control target key start
LH: loop header
LB: loop body
LE: loop exit
PB: predicated region body
PF: predicated region fallthrough
CT: control target
= control target key end

     0   :  { %s5792_s0 = inlined_call_operand.hbm [shape: f32[16,16], index: 0, kind: input, shape index: {}]   ;;  %s5793_s1 = inlined_call_operand.vmem [shape: f32[2,32], index: 1, kind: input, shape index: {}]   ;;  %s5794_s2 = inlined_call_operand.hbm [shape: f32[2,8,32], index: 2, kind: input, shape index: {}]   ;;  %s5795_s3 = inlined_call_operand.hbm [shape: f32[2,8,32], index: 3, kind: input, shape index: {}]   ;;  %s5796_s4 = inlined_call_operand.hbm [shape: f32[16,96], index: 4, kind: input, shape index: {}]   ;;  %s5797_s5 = inlined_call_operand.hbm [shape: f32[32,96], index: 5, kind: input, shape index: {}]   ;;  %s5798_s6 = inlined_call_operand.vmem [shape: f32[1,96], index: 6, kind: input, shape index: {}]   ;;  %s5799_s7 = inlined_call_operand.vmem [shape: f32[1,96], index: 7, kind: input, shape index: {}]   ;;  %s5800_s8 = inlined_call_operand.hbm [shape: f32[32,128], index: 8, kind: input, shape index: {}]   ;;  %s5801_s9 = inlined_call_operand.vmem [shape: f32[1,128], index: 9, kind: input, shape index: {}]   ;;  %s5802_s10 = inlined_call_operand.hbm [shape: f32[32,96], index: 10, kind: input, shape index: {}]   ;;  %s5803_s11 = inlined_call_operand.vmem [shape: f32[1,96], index: 11, kind: input, shape index: {}]   ;;  %s5804_s12 = inlined_call_operand.vmem [shape: f32[1,32], index: 12, kind: input, shape index: {}]   ;;  %s5805_s13 = inlined_call_operand.<no memory space> [shape: f32[1,1], index: 13, kind: input, shape index: {}]   ;;  %s5806_s14 = inlined_call_operand.hbm [shape: f32[16,32], index: 14, kind: output, shape index: {0}]   ;;  %s5807_s15 = inlined_call_operand.vmem [shape: f32[16,8], index: 15, kind: output, shape index: {1}]   ;;  %s5808_s16 = inlined_call_operand.hbm [shape: f32[16,32], index: 16, kind: output, shape index: {2}]  }
   0x1   :  { %5809 = sst [smem:[#allocation25_spill]] %s5792_s0 }
   0x2   :  { %23 = vsyncpa [#allocation5], 0 }
   0x3   :  { %24 = vsyncpa [#allocation8], 0 }
   0x4   :  { %25 = vsyncpa [#allocation11], 0 }
   0x5   :  { %26 = vsyncpa [#allocation14], 0 }
   0x6   :  { %27 = vsyncpa [#allocation6], 0 }
   0x7   :  { %28 = vsyncpa [#allocation18], 0  ;;  %s4768_s21 = smov [#allocation7]   ;;  %s4769_s23 = smov [#allocation10]  }
   0x8   :  { %s48_s22 = sshll.u32 %s4768_s21, 4  ;;  %s72_s24 = sshll.u32 %s4769_s23, 4  ;;  %s49_s22 = int_to_ptr.vmem [resolvable:$true] %s48_s22  ;;  %s73_s24 = int_to_ptr.vmem [resolvable:$true] %s72_s24 }
   0x9   :  { %s4584_s25 = scalar_lea.vmem %s49_s22, 256  ;;  %p4589_p1 = scmp.lt.s32.totalorder %s49_s22, %s49_s22 }
   0xa   :  { %p4585_p0 = scmp.ne.s32.totalorder %s49_s22, %s4584_s25  ;;  %p4590_p2 = scmp.lt.s32.totalorder %s4584_s25, %s4584_s25 }
   0xc   :  { %p4591_p3 = por %p4590_p2, %p4589_p1 }
   0xe   :  { %p4592_p4 = pnand %p4591_p3, %p4585_p0 }
  0x10   :  { %4595 = shalt.err (!%p4592_p4)
}
  0x11   :  { %s4770_s26 = smov 128   ;;  %s4771_s27 = smov 8  }
  0x12   :  { %54 = dma.hbm_to_vmem [thread:$0]  %s5794_s2, 256, %s49_s22, [#allocation8], %s4770_s26, %s4770_s26, %s4771_s27  }
  0x13   :  { %s4604_s30 = scalar_lea.vmem %s73_s24, 256  ;;  %p4609_p6 = scmp.lt.s32.totalorder %s73_s24, %s73_s24 }
  0x14   :  { %p4605_p5 = scmp.ne.s32.totalorder %s73_s24, %s4604_s30  ;;  %p4610_p7 = scmp.lt.s32.totalorder %s4604_s30, %s4604_s30 }
  0x16   :  { %p4611_p8 = por %p4610_p7, %p4609_p6 }
  0x18   :  { %p4612_p9 = pnand %p4611_p8, %p4605_p5 }
  0x1a   :  { %4615 = shalt.err (!%p4612_p9)
}
  0x1b   :  { %78 = dma.hbm_to_vmem [thread:$0]  %s5796_s4, 256, %s73_s24, [#allocation11], %s4770_s26, %s4770_s26, %s4771_s27  }
  0x1c   :  { %s4772_s18 = smov [#allocation13]   ;;  %s4773_s20 = smov [#allocation4]  }
  0x1d   :  { %s100_s19 = sshll.u32 %s4772_s18, 4  ;;  %s34_s21 = sshll.u32 %s4773_s20, 4  ;;  %s101_s19 = int_to_ptr.vmem [resolvable:$true] %s100_s19  ;;  %s35_s21 = int_to_ptr.vmem [resolvable:$true] %s34_s21 }
  0x1e   :  { %s4624_s2 = scalar_lea.vmem %s101_s19, 512  ;;  %p4629_p11 = scmp.lt.s32.totalorder %s101_s19, %s101_s19 }
  0x1f   :  { %p4625_p10 = scmp.ne.s32.totalorder %s101_s19, %s4624_s2  ;;  %p4630_p12 = scmp.lt.s32.totalorder %s4624_s2, %s4624_s2 }
  0x21   :  { %p4631_p13 = por %p4630_p12, %p4629_p11 }
  0x23   :  { %p4632_p0 = pnand %p4631_p13, %p4625_p10 }
  0x25   :  { %4635 = shalt.err (!%p4632_p0)
}
  0x26   :  { %106 = dma.hbm_to_vmem [thread:$0]  %s5800_s8, 512, %s101_s19, [#allocation14], %s4770_s26, %s4770_s26, %s4771_s27  }
  0x27   :  { %s4644_s4 = scalar_lea.vmem %s35_s21, 256  ;;  %p4649_p2 = scmp.lt.s32.totalorder %s35_s21, %s35_s21 }
  0x28   :  { %p4645_p1 = scmp.ne.s32.totalorder %s35_s21, %s4644_s4  ;;  %p4650_p3 = scmp.lt.s32.totalorder %s4644_s4, %s4644_s4 }
  0x2a   :  { %p4651_p4 = por %p4650_p3, %p4649_p2 }
  0x2c   :  { %p4652_p5 = pnand %p4651_p4, %p4645_p1 }
  0x2e   :  { %4655 = shalt.err (!%p4652_p5)
}
  0x2f   :  { %s5810_s28 = sld [smem:[#allocation25_spill]]  ;;  %s4774_s29 = smov [#allocation9]  }
  0x30   :  { %s60_s30 = sshll.u32 %s4774_s29, 4  ;;  %s4775_s0 = smov [#allocation12]   ;;  %s61_s30 = int_to_ptr.vmem [resolvable:$true] %s60_s30 }
  0x31   :  { %s84_s17 = sshll.u32 %s4775_s0, 4  ;;  %s4664_s8 = scalar_lea.vmem %s61_s30, 256  ;;  %s85_s17 = int_to_ptr.vmem [resolvable:$true] %s84_s17 }
  0x32   :  { %p4665_p6 = scmp.ne.s32.totalorder %s61_s30, %s4664_s8  ;;  %p4669_p7 = scmp.lt.s32.totalorder %s61_s30, %s61_s30 }
  0x33   :  { %p4670_p8 = scmp.lt.s32.totalorder %s4664_s8, %s4664_s8 }
  0x35   :  { %40 = dma.hbm_to_vmem [thread:$0]  %s5810_s28, 256, %s35_s21, [#allocation5], %s4770_s26, %s4770_s26, %s4771_s27  }
  0x36   :  { %p4671_p9 = por %p4670_p8, %p4669_p7 }
  0x38   :  { %p4672_p10 = pnand %p4671_p9, %p4665_p6 }
  0x3a   :  { %4675 = shalt.err (!%p4672_p10)
}
  0x3b   :  { %66 = dma.hbm_to_vmem [thread:$0]  %s5795_s3, 256, %s61_s30, [#allocation8], %s4770_s26, %s4770_s26, %s4771_s27  }
  0x3c   :  { %s4684_s20 = scalar_lea.vmem %s85_s17, 512  ;;  %p4689_p12 = scmp.lt.s32.totalorder %s85_s17, %s85_s17 }
  0x3d   :  { %p4685_p11 = scmp.ne.s32.totalorder %s85_s17, %s4684_s20  ;;  %p4690_p13 = scmp.lt.s32.totalorder %s4684_s20, %s4684_s20 }
  0x3f   :  { %p4691_p0 = por %p4690_p13, %p4689_p12 }
  0x41   :  { %p4692_p1 = pnand %p4691_p0, %p4685_p11 }
  0x43   :  { %4695 = shalt.err (!%p4692_p1)
}
  0x44   :  { %90 = dma.hbm_to_vmem [thread:$0]  %s5797_s5, 512, %s85_s17, [#allocation11], %s4770_s26, %s4770_s26, %s4771_s27  }
  0x45   :  { %s4776_s22 = smov [#allocation15]  }
  0x46   :  { %s114_s23 = sshll.u32 %s4776_s22, 4  ;;  %s115_s23 = int_to_ptr.vmem [resolvable:$true] %s114_s23 }
  0x47   :  { %s4704_s4 = scalar_lea.vmem %s115_s23, 512  ;;  %p4709_p3 = scmp.lt.s32.totalorder %s115_s23, %s115_s23 }
  0x48   :  { %p4705_p2 = scmp.ne.s32.totalorder %s115_s23, %s4704_s4  ;;  %p4710_p4 = scmp.lt.s32.totalorder %s4704_s4, %s4704_s4 }
  0x4a   :  { %p4711_p5 = por %p4710_p4, %p4709_p3 }
  0x4c   :  { %p4712_p6 = pnand %p4711_p5, %p4705_p2 }
  0x4e   :  { %4715 = shalt.err (!%p4712_p6)
}
  0x4f   :  { %120 = dma.hbm_to_vmem [thread:$0]  %s5802_s10, 512, %s115_s23, [#allocation14], %s4770_s26, %s4770_s26, %s4771_s27  }
  0x50   :  { %4756 = dma.done.wait [#allocation5], 256  }
  0x51   :  { %4757 = vsyncadd [#allocation5], 4294967040 }
  0x52   :  { %4758 = dma.done.wait [#allocation8], 512  }
  0x53   :  { %4759 = vsyncadd [#allocation8], 4294966784 }
  0x54   :  { %4760 = dma.done.wait [#allocation11], 768  }
  0x55   :  { %4761 = vsyncadd [#allocation11], 4294966528 }
  0x56   :  { %4762 = dma.done.wait [#allocation14], 1024  }
  0x57   :  { %4763 = vsyncadd [#allocation14], 4294966272  ;;  %v4777_v0 = vmov 0.0   ;;  %vm4778_vm0 = vmmov 0   ;;  %v172_v1 = vld [vmem:[#allocation10 + $0x8] sm:$0xff]  ;;  %v171_v3 = vld [vmem:[#allocation10] sm:$0xff]  ;;  %v461_v43 = vlaneseq }
  0x58   :  { %4060 = vmatprep.subr.mxu1 %v4777_v0  ;;  %4068 = vmatprep.mubr.msk.f32.mxu1 %vm4778_vm0, %v4777_v0  ;;  %v4916_v2 = vld [vmem:[#allocation12 + $0x18] sm:$0xff]  ;;  %v4919_v4 = vld [vmem:[#allocation12 + $0x10] sm:$0xff]  ;;  %v169_v5 = vld [vmem:[#allocation4] sm:$0xff]  ;;  %vm180_vm1 = vcmask 130048   ;;  %vm273_vm2 = vcmask 261120   ;;  %vm262_vm3 = vcmask 785408  }
  0x59   :  { %4053 = vmatprep.subr.mxu0 %v172_v1  ;;  %4061 = vmatpush3.msra.mxu1 %v4916_v2  ;;  %v170_v6 = vld [vmem:[#allocation4 + $0x8] sm:$0xff]  ;;  %v4926_v8 = vld [vmem:[#allocation12] sm:$0xff]  ;;  %v265_v9 = vld [vmem:[%s5793_s1] sm:$0x3]  ;;  %s4779_s30 = smov 64   ;;  %s4781_s0 = smov 32  }
  0x5a   :  { %4054 = vmatpush3.msra.mxu0 %v172_v1  ;;  %4062 = vmatprep.subr.mxu1 %v4777_v0  ;;  %v4923_v7 = vld [vmem:[#allocation12 + $0x8] sm:$0xff]  ;;  %v3882_v11 = vld [vmem:[%s5798_s6] ss:$0 sm:$0xff]  ;;  %v4952_v29 = vld [vmem:[#allocation13 + $0x18] sm:$0xff]  ;;  %s4780_s6 = smov 96   ;;  %v462_v45 = vshrl.u32 %v461_v43, 7 }
  0x5b   :  { %4055 = vmatprep.subr.mxu0 %v171_v3  ;;  %4063 = vmatpush3.msra.mxu1 %v4919_v4  ;;  %v4947_v14 = vld [vmem:[%s5799_s7] ss:$0 sm:$0xff]  ;;  %v4958_v31 = vld [vmem:[#allocation13 + $0x8] sm:$0xff]  ;;  %v4962_v33 = vld [vmem:[#allocation13] sm:$0xff]  ;;  %v4782_v41 = vmov 1966171168  }
  0x5c   :  { %4056 = vmatpush3.msra.mxu0 %v171_v3  ;;  %4057 = vmatprep.mubr.msk.f32.mxu0 %vm180_vm1, %v169_v5  ;;  %v4954_v30 = vld [vmem:[#allocation13 + $0x10] sm:$0xff]  ;;  %v459_v42 = vunpack.c.l.s4 %v4782_v41  ;;  %v4994_v52 = vsub.s32 0, %v462_v45  ;;  %v4997_v55 = vld [vmem:[#allocation9] sm:$0xff]  ;;  %v5001_v58 = vld [vmem:[#allocation9 + $0x8] sm:$0xff]  ;;  %vm523_vm4 = vcmask 1041409   ;;  %vm526_vm5 = vcmask 58368  }
  0x5d   :  { %4064 = vmatprep.subr.mxu1 %v4777_v0  ;;  %4058 = vmatmul.mubr.msk.f32.vlgmr.msra.gmra.mxu0 %vm180_vm1, %v170_v6  ;;  %v4985_v46 = vld [vmem:[%s5801_s9] ss:$0 sm:$0xff]  ;;  %vm726_vm6 = vcmask 254976  }
  0x5e   :  { %4065 = vmatpush3.msra.mxu1 %v4923_v7  ;;  %4071 = vmatprep.subr.mxu0 %v4777_v0  ;;  %v460_v44 = vunpack.c.0.s8 %v459_v42  ;;  %v5009_v62 = vld [vmem:[%s5804_s12] ss:$0 sm:$0xff] }
  0x5f   :  { %4066 = vmatprep.subr.mxu1 %v4777_v0  ;;  %4079 = vmatprep.mubr.msk.f32.mxu0 %vm4778_vm0, %v4777_v0 }
  0x60   :  { %4067 = vmatpush3.msra.mxu1 %v4926_v8  ;;  %4072 = vmatpush3.msra.mxu0 %v4952_v29  ;;  %v4987_v47 = vsub.s32 %v460_v44, %v462_v45 }
  0x61   :  { %4069 = vmatmul.mubr.msk.f32.vlgmr.msra.gmra.mxu1 %vm273_vm2, %v265_v9  ;;  %4082 = vmatprep.subr.mxu1 %v4777_v0 }
  0x62   :  { %4090 = vmatprep.mubr.msk.f32.mxu1 %vm4778_vm0, %v4777_v0  ;;  %4073 = vmatprep.subr.mxu0 %v4777_v0 }
  0x63   :  { %4074 = vmatpush3.msra.mxu0 %v4954_v30 }
  0x64   :  { %4075 = vmatprep.subr.mxu0 %v4777_v0 }
  0x65   :  { %4076 = vmatpush3.msra.mxu0 %v4958_v31 }
  0x66   :  { %4077 = vmatprep.subr.mxu0 %v4777_v0 }
  0x67   :  { %4078 = vmatpush3.msra.mxu0 %v4962_v33 }
  0x68   :  { %4093 = vmatprep.subr.mxu0 %v4777_v0 }
 0x11d   :  { %v4059_v10 = vpop.f32.mrf.mxu0 }
 0x11e   :  { %v259_v12 = vadd.f32 %v4059_v10, %v3882_v11  ;;  %v514_v10 = vand.u32 127, %v461_v43 }
 0x11f   :  { %v253_v13 = vpop.f32.mrf.mxu0 }
 0x120   :  { %264 = vst.msk [vmem:[#allocation2 + $0x8] sm:$0xff] %vm262_vm3, %v259_v12  ;;  %v254_v15 = vadd.f32 %v3882_v11, %v253_v13  ;;  %v5018_v11 = vstv %s5805_s13  ;;  %v5020_v13 = vsub.s32 %v514_v10, %v462_v45 }
 0x121   :  { %v343_v16 = vpop.f32.mrf.mxu1 }
 0x122   :  { %263 = vst.msk [vmem:[#allocation2] sm:$0xff] %vm262_vm3, %v254_v15  ;;  %v344_v17 = vadd.f32 %v4947_v14, %v343_v16 }
 0x123   :  { %v4070_v18 = vpop.f32.mrf.mxu1 }
 0x124   :  { %355 = vrot.lane.b32.xlu0 %v344_v17, %s4779_s30 }
 0x129   :  { %v266_v19 = vld [vmem:[#allocation2] sm:$0x3] }
 0x12a   :  { %v347_v20 = vadd.f32 %v344_v17, %v266_v19 }
 0x12c   :  { %v3887_v21 = vmul.f32 -1.442695, %v347_v20 }
 0x12e   :  { %4344 = vpow2.f32 %v3887_v21 }
 0x13b   :  { %v4345_v22 = vpop.eup %4344 }
 0x13c   :  { %v351_v23 = vadd.f32 1.0, %v4345_v22  ;;  %v4783_v22 = vmov 0  }
 0x13d   :  { %4343 = vset.pattern.permute.xlu0 %v4783_v22  ;;  %4342 = vset.pattern.permute.xlu1 %v4783_v22 }
 0x13e   :  { %4346 = vrcp.f32 %v351_v23  ;;  %v5028_v23 = vsub.s32 1, %v462_v45 }
 0x14b   :  { %v4347_v24 = vpop.eup %4346 }
 0x14c   :  { %v365_v35 = vsub.f32 1.0, %v4347_v24 }
 0x196   :  { %v356_v25 = vpop.permute.xlu0 %355 }
 0x197   :  { %v358_v26 = vmul.f32 %v4347_v24, %v356_v25 }
 0x199   :  { %360 = vrot.lane.b32.xlu0 %v358_v26, %s4779_s30 }
 0x20b   :  { %v361_v27 = vpop.permute.xlu0 %360 }
 0x20c   :  { %v363_v28 = vadd.f32 %v361_v27, %v266_v19 }
 0x20e   :  { %4348 = vtanh.f32 %v363_v28 }
 0x21b   :  { %v4349_v32 = vpop.eup %4348 }
 0x21c   :  { %367 = vrot.lane.b32.xlu1 %v4349_v32, %s4780_s6 }
 0x220   :  { %371 = vrot.lane.b32.xlu1 %v265_v9, %s4781_s0 }
 0x28e   :  { %v368_v34 = vpop.permute.xlu1 %367 }
 0x28f   :  { %v370_v37 = vmul.f32 %v368_v34, %v365_v35 }
 0x292   :  { %v372_v36 = vpop.permute.xlu1 %371 }
 0x293   :  { %v374_v38 = vmul.f32 %v4347_v24, %v372_v36 }
 0x295   :  { %v375_v39 = vadd.f32 %v374_v38, %v370_v37 }
 0x297   :  { %383 = vrot.lane.b32.xlu0 %v375_v39, %s4780_s6 }
 0x309   :  { %v384_v40 = vpop.permute.xlu0 %383 }
 0x30a   :  { %4080 = vmatmul.mubr.msk.f32.vlgmr.msra.gmra.mxu0 %vm273_vm2, %v384_v40 }
 0x30b   :  { %4094 = vmatpush3.msra.mxu0 %v4916_v2  ;;  %4101 = vmatprep.mubr.msk.f32.mxu0 %vm4778_vm0, %v4777_v0 }
 0x30c   :  { %4095 = vmatprep.subr.mxu0 %v4777_v0 }
 0x30d   :  { %4096 = vmatpush3.msra.mxu0 %v4919_v4 }
 0x30e   :  { %4097 = vmatprep.subr.mxu0 %v4777_v0 }
 0x30f   :  { %4098 = vmatpush3.msra.mxu0 %v4923_v7 }
 0x310   :  { %4099 = vmatprep.subr.mxu0 %v4777_v0 }
 0x311   :  { %4100 = vmatpush3.msra.mxu0 %v4926_v8 }
 0x312   :  { %4115 = vmatprep.subr.mxu0 %v4777_v0 }
 0x3ca   :  { %v453_v48 = vpop.f32.mrf.mxu0 }
 0x3cb   :  { %v4990_v49 = vadd.f32 %v4985_v46, %v453_v48 }
 0x3cc   :  { %v4081_v50 = vpop.f32.mrf.mxu0 }
 0x3cd   :  { %v464_v51 = vrot.slane %v4990_v49, %v4987_v47 }
 0x3cf   :  { %v465_v53 = vcombine.high %v464_v51, %v464_v51  ;;  %v472_v54 = vrot.slane %v464_v51, %v4987_v47 }
 0x3d1   :  { %v479_v56 = vrot.slane %v465_v53, %v4987_v47  ;;  %v483_v57 = vrot.slane %v472_v54, %v4994_v52  ;;  %v5038_v54 = vld [vmem:[#allocation15 + $0x18] sm:$0xff] }
 0x3d2   :  { %4083 = vmatpush3.msra.mxu1 %v5038_v54 }
 0x3d3   :  { %v487_v59 = vrot.slane %v479_v56, %v4994_v52  ;;  %v490_v60 = vadd.f32 %v483_v57, %v4997_v55  ;;  %4084 = vmatprep.subr.mxu1 %v4777_v0  ;;  %v5042_v56 = vld [vmem:[#allocation15 + $0x10] sm:$0xff]  ;;  %v5044_v57 = vld [vmem:[#allocation15 + $0x8] sm:$0xff] }
 0x3d4   :  { %4085 = vmatpush3.msra.mxu1 %v5042_v56 }
 0x3d5   :  { %v491_v61 = vadd.f32 %v487_v59, %v5001_v58  ;;  %4350 = vtanh.f32 %v490_v60  ;;  %4086 = vmatprep.subr.mxu1 %v4777_v0  ;;  %v5048_v59 = vld [vmem:[#allocation15] sm:$0xff]  ;;  %v5054_v60 = vld [vmem:[#allocation7] sm:$0xff] }
 0x3d6   :  { %4087 = vmatpush3.msra.mxu1 %v5044_v57 }
 0x3d7   :  { %4352 = vtanh.f32 %v491_v61  ;;  %4088 = vmatprep.subr.mxu1 %v4777_v0 }
 0x3d8   :  { %4089 = vmatpush3.msra.mxu1 %v5048_v59 }
 0x3d9   :  { %4104 = vmatprep.subr.mxu1 %v4777_v0 }
 0x3e2   :  { %v4351_v63 = vpop.eup %4350 }
 0x3e3   :  { %v500_v1 = vmul.f32 %v4351_v63, %v5009_v62 }
 0x3e4   :  { %v4353_v3 = vpop.eup %4352 }
 0x3e5   :  { %v502_v5 = vsel %vm273_vm2, %v500_v1, 0.0  ;;  %v501_v6 = vmul.f32 %v4353_v3, %v5009_v62  ;;  %v5057_v1 = vld [vmem:[#allocation7 + $0x8] sm:$0xff] }
 0x3e6   :  { %503 = vadd.xlane.f32.xlu1 %v502_v5 }
 0x3e7   :  { %v505_v9 = vsel %vm273_vm2, %v501_v6, 0.0 }
 0x3e8   :  { %506 = vadd.xlane.f32.xlu0 %v505_v9 }
 0x46f   :  { %v504_v12 = vpop.xlane.xlu1 %503 }
 0x470   :  { %v509_v15 = vadd.f32 %v5018_v11, %v504_v12 }
 0x471   :  { %v507_v16 = vpop.xlane.xlu0 %506 }
 0x472   :  { %v510_v17 = vadd.f32 %v5018_v11, %v507_v16  ;;  %v518_v18 = vrot.slane %v509_v15, %v5020_v13 }
 0x474   :  { %v522_v19 = vrot.slane %v510_v17, %v5020_v13 }
 0x476   :  { %v524_v20 = vsel %vm523_vm4, %v522_v19, %v518_v18 }
 0x477   :  { %v527_v21 = vsel %vm526_vm5, %v524_v20, -inf }
 0x478   :  { %528 = vmax.xlane.f32.xlu0 %v527_v21 }
 0x501   :  { %v529_v24 = vpop.xlane.xlu0 %528 }
 0x502   :  { %v534_v25 = vrot.slane %v529_v24, %v4994_v52  ;;  %v538_v26 = vrot.slane %v529_v24, %v5028_v23 }
 0x504   :  { %v541_v27 = vsub.f32 %v509_v15, %v534_v25  ;;  %v542_v28 = vsub.f32 %v510_v17, %v538_v26 }
 0x506   :  { %v543_v32 = vmul.f32 1.442695, %v541_v27  ;;  %v545_v34 = vmul.f32 1.442695, %v542_v28 }
 0x508   :  { %4354 = vpow2.f32 %v543_v32 }
 0x509   :  { %4356 = vpow2.f32 %v545_v34  ;;  %v5085_v34 = vld [vmem:[%s5803_s11] ss:$0 sm:$0xff] }
 0x515   :  { %v4355_v35 = vpop.eup %4354 }
 0x516   :  { %v4357_v36 = vpop.eup %4356  ;;  %550 = vperm.xlu1 %4342, %v4355_v35  }
 0x517   :  { %553 = vperm.xlu0 %4343, %v4357_v36  }
 0x591   :  { %v551_v37 = vpop.permute.xlu1 %550 }
 0x592   :  { %v554_v38 = vpop.permute.xlu0 %553  ;;  %v558_v39 = vrot.slane %v551_v37, %v5020_v13 }
 0x593   :  { %v562_v40 = vrot.slane %v554_v38, %v5020_v13 }
 0x595   :  { %v563_v41 = vsel %vm523_vm4, %v562_v40, %v558_v39 }
 0x596   :  { %v565_v42 = vsel %vm526_vm5, %v563_v41, 0.0 }
 0x597   :  { %566 = vadd.xlane.f32.xlu1 %v565_v42 }
 0x620   :  { %v567_v43 = vpop.xlane.xlu1 %566 }
 0x621   :  { %v572_v44 = vrot.slane %v567_v43, %v4994_v52  ;;  %v576_v45 = vrot.slane %v567_v43, %v5028_v23 }
 0x623   :  { %4358 = vrcp.f32 %v572_v44 }
 0x624   :  { %4360 = vrcp.f32 %v576_v45 }
 0x630   :  { %v4359_v48 = vpop.eup %4358 }
 0x631   :  { %v580_v50 = vmul.f32 %v4359_v48, %v4355_v35  ;;  %v4361_v51 = vpop.eup %4360 }
 0x632   :  { %v582_v53 = vmul.f32 %v4361_v51, %v4357_v36 }
 0x633   :  { %585 = vperm.xlu0 %4343, %v580_v50  }
 0x637   :  { %590 = vperm.xlu0 %4343, %v582_v53  }
 0x6ae   :  { %v586_v61 = vpop.permute.xlu0 %585 }
 0x6af   :  { %v593_v63 = vmul.f32 %v586_v61, %v5054_v60  ;;  %v731_v9 = vrot.slane %v586_v61, %v5020_v13 }
 0x6b1   :  { %v595_v3 = vsel %vm273_vm2, %v593_v63, 0.0 }
 0x6b2   :  { %v596_v5 = vrot.slane %v595_v3, 4  ;;  %v591_v6 = vpop.permute.xlu0 %590 }
 0x6b3   :  { %v594_v10 = vmul.f32 %v591_v6, %v5057_v1  ;;  %v735_v12 = vrot.slane %v591_v6, %v5020_v13 }
 0x6b4   :  { %v597_v15 = vadd.f32 %v596_v5, %v595_v3 }
 0x6b5   :  { %v602_v16 = vsel %vm273_vm2, %v594_v10, 0.0  ;;  %v736_v17 = vsel %vm523_vm4, %v735_v12, %v731_v9 }
 0x6b6   :  { %v598_v18 = vrot.slane %v597_v15, 2  ;;  %v603_v19 = vrot.slane %v602_v16, 4  ;;  %738 = vst.msk [vmem:[%s5807_s15] sm:$0x3] %vm526_vm5, %v736_v17 }
 0x6b8   :  { %v599_v20 = vadd.f32 %v598_v18, %v597_v15  ;;  %v604_v21 = vadd.f32 %v603_v19, %v602_v16  ;;  %v741_v15 = vld [vmem:[#allocation2 + $0x2] sm:$0x3] }
 0x6ba   :  { %v605_v22 = vrot.slane %v604_v21, 2  ;;  %v600_v24 = vrot.slane %v599_v20, 1 }
 0x6bc   :  { %v606_v25 = vadd.f32 %v605_v22, %v604_v21  ;;  %v601_v27 = vadd.f32 %v600_v24, %v599_v20 }
 0x6be   :  { %v607_v26 = vrot.slane %v606_v25, 1 }
 0x6c0   :  { %v608_v28 = vadd.f32 %v607_v26, %v606_v25 }
 0x6c2   :  { %v617_v32 = vsel %vm523_vm4, %v608_v28, %v601_v27 }
 0x6c3   :  { %4091 = vmatmul.mubr.msk.f32.vlgmr.msra.gmra.mxu1 %vm273_vm2, %v617_v32  ;;  %740 = vst.msk [vmem:[#allocation17] sm:$0x3] %vm726_vm6, %v617_v32 }
 0x6c4   :  { %4105 = vmatpush3.msra.mxu1 %v4952_v29  ;;  %4112 = vmatprep.mubr.msk.f32.mxu1 %vm4778_vm0, %v4777_v0 }
 0x6c5   :  { %4106 = vmatprep.subr.mxu1 %v4777_v0 }
 0x6c6   :  { %4107 = vmatpush3.msra.mxu1 %v4954_v30 }
 0x6c7   :  { %4108 = vmatprep.subr.mxu1 %v4777_v0 }
 0x6c8   :  { %4109 = vmatpush3.msra.mxu1 %v4958_v31 }
 0x6c9   :  { %4110 = vmatprep.subr.mxu1 %v4777_v0 }
 0x6ca   :  { %4111 = vmatpush3.msra.mxu1 %v4962_v33 }
 0x6cb   :  { %4126 = vmatprep.subr.mxu1 %v4777_v0 }
 0x783   :  { %v686_v35 = vpop.f32.mrf.mxu1 }
 0x784   :  { %v687_v36 = vadd.f32 %v5085_v34, %v686_v35 }
 0x785   :  { %v4092_v37 = vpop.f32.mrf.mxu1 }
 0x786   :  { %701 = vrot.lane.b32.xlu0 %v687_v36, %s4780_s6  ;;  %691 = vrot.lane.b32.xlu1 %v687_v36, %s4781_s0 }
 0x7f8   :  { %v692_v38 = vpop.permute.xlu1 %691  ;;  %v702_v44 = vpop.permute.xlu0 %701 }
 0x7f9   :  { %v694_v39 = vadd.f32 %v692_v38, %v4990_v49 }
 0x7fb   :  { %v3893_v40 = vmul.f32 -1.442695, %v694_v39 }
 0x7fd   :  { %4362 = vpow2.f32 %v3893_v40 }
 0x80a   :  { %v4363_v41 = vpop.eup %4362 }
 0x80b   :  { %v698_v42 = vadd.f32 1.0, %v4363_v41 }
 0x80d   :  { %4364 = vrcp.f32 %v698_v42 }
 0x81a   :  { %v4365_v43 = vpop.eup %4364 }
 0x81b   :  { %v704_v45 = vmul.f32 %v4365_v43, %v702_v44  ;;  %v711_v61 = vsub.f32 1.0, %v4365_v43 }
 0x81d   :  { %706 = vrot.lane.b32.xlu0 %v704_v45, %s4779_s30 }
 0x88f   :  { %v707_v48 = vpop.permute.xlu0 %706 }
 0x890   :  { %v709_v50 = vadd.f32 %v707_v48, %v4990_v49 }
 0x892   :  { %4366 = vtanh.f32 %v709_v50 }
 0x89f   :  { %v4367_v51 = vpop.eup %4366 }
 0x8a0   :  { %713 = vrot.lane.b32.xlu0 %v4367_v51, %s4780_s6 }
 0x8a4   :  { %717 = vrot.lane.b32.xlu0 %v617_v32, %s4779_s30 }
 0x912   :  { %v714_v53 = vpop.permute.xlu0 %713 }
 0x913   :  { %v716_v3 = vmul.f32 %v714_v53, %v711_v61 }
 0x916   :  { %v718_v63 = vpop.permute.xlu0 %717 }
 0x917   :  { %v720_v5 = vmul.f32 %v4365_v43, %v718_v63 }
 0x919   :  { %v721_v6 = vadd.f32 %v720_v5, %v716_v3 }
 0x91b   :  { %723 = vrot.lane.b32.xlu1 %v721_v6, %s4779_s30 }
 0x98d   :  { %v724_v9 = vpop.permute.xlu1 %723 }
 0x98e   :  { %727 = vst.msk [vmem:[#allocation16] sm:$0x3] %vm726_vm6, %v724_v9  ;;  %4102 = vmatmul.mubr.msk.f32.vlgmr.msra.gmra.mxu0 %vm273_vm2, %v724_v9 }
 0x98f   :  { %4116 = vmatpush3.msra.mxu0 %v5038_v54  ;;  %4123 = vmatprep.mubr.msk.f32.mxu0 %vm4778_vm0, %v4777_v0 }
 0x990   :  { %4117 = vmatprep.subr.mxu0 %v4777_v0 }
 0x991   :  { %4118 = vmatpush3.msra.mxu0 %v5042_v56 }
 0x992   :  { %4119 = vmatprep.subr.mxu0 %v4777_v0 }
 0x993   :  { %4120 = vmatpush3.msra.mxu0 %v5044_v57 }
 0x994   :  { %4121 = vmatprep.subr.mxu0 %v4777_v0 }
 0x995   :  { %4122 = vmatpush3.msra.mxu0 %v5048_v59 }
 0x996   :  { %4137 = vmatprep.subr.mxu0 %v4777_v0 }
 0xa4e   :  { %v810_v49 = vpop.f32.mrf.mxu0 }
 0xa4f   :  { %v811_v10 = vadd.f32 %v4947_v14, %v810_v49 }
 0xa50   :  { %v4103_v12 = vpop.f32.mrf.mxu0 }
 0xa51   :  { %822 = vrot.lane.b32.xlu0 %v811_v10, %s4779_s30  ;;  %v814_v16 = vadd.f32 %v811_v10, %v741_v15 }
 0xa53   :  { %v3895_v17 = vmul.f32 -1.442695, %v814_v16 }
 0xa55   :  { %4368 = vpow2.f32 %v3895_v17 }
 0xa62   :  { %v4369_v18 = vpop.eup %4368 }
 0xa63   :  { %v818_v19 = vadd.f32 1.0, %v4369_v18 }
 0xa65   :  { %4370 = vrcp.f32 %v818_v19 }
 0xa72   :  { %v4371_v20 = vpop.eup %4370 }
 0xa73   :  { %v832_v28 = vsub.f32 1.0, %v4371_v20 }
 0xac3   :  { %v823_v21 = vpop.permute.xlu0 %822 }
 0xac4   :  { %v825_v22 = vmul.f32 %v4371_v20, %v823_v21 }
 0xac6   :  { %827 = vrot.lane.b32.xlu1 %v825_v22, %s4779_s30 }
 0xaca   :  { %838 = vrot.lane.b32.xlu1 %v721_v6, %s4780_s6 }
 0xb38   :  { %v828_v24 = vpop.permute.xlu1 %827 }
 0xb39   :  { %v830_v25 = vadd.f32 %v828_v24, %v741_v15 }
 0xb3b   :  { %4372 = vtanh.f32 %v830_v25 }
 0xb3c   :  { %v839_v27 = vpop.permute.xlu1 %838 }
 0xb3d   :  { %v841_v35 = vmul.f32 %v4371_v20, %v839_v27 }
 0xb48   :  { %v4373_v26 = vpop.eup %4372 }
 0xb49   :  { %834 = vrot.lane.b32.xlu0 %v4373_v26, %s4780_s6 }
 0xbbb   :  { %v835_v32 = vpop.permute.xlu0 %834 }
 0xbbc   :  { %v837_v36 = vmul.f32 %v835_v32, %v832_v28 }
 0xbbe   :  { %v842_v37 = vadd.f32 %v841_v35, %v837_v36 }
 0xbc0   :  { %844 = vrot.lane.b32.xlu0 %v842_v37, %s4780_s6 }
 0xc32   :  { %v845_v38 = vpop.permute.xlu0 %844 }
 0xc33   :  { %4113 = vmatmul.mubr.msk.f32.vlgmr.msra.gmra.mxu1 %vm273_vm2, %v845_v38 }
 0xc34   :  { %4127 = vmatpush3.msra.mxu1 %v4916_v2  ;;  %4134 = vmatprep.mubr.msk.f32.mxu1 %vm4778_vm0, %v4777_v0 }
 0xc35   :  { %4128 = vmatprep.subr.mxu1 %v4777_v0 }
 0xc36   :  { %4129 = vmatpush3.msra.mxu1 %v4919_v4 }
 0xc37   :  { %4130 = vmatprep.subr.mxu1 %v4777_v0 }
 0xc38   :  { %4131 = vmatpush3.msra.mxu1 %v4923_v7 }
 0xc39   :  { %4132 = vmatprep.subr.mxu1 %v4777_v0 }
 0xc3a   :  { %4133 = vmatpush3.msra.mxu1 %v4926_v8 }
 0xc3b   :  { %4148 = vmatprep.subr.mxu1 %v4777_v0 }
 0xcf3   :  { %v914_v39 = vpop.f32.mrf.mxu1 }
 0xcf4   :  { %v5126_v40 = vadd.f32 %v4985_v46, %v914_v39 }
 0xcf5   :  { %v4114_v41 = vpop.f32.mrf.mxu1 }
 0xcf6   :  { %v925_v42 = vrot.slane %v5126_v40, %v4987_v47 }
 0xcf8   :  { %v926_v43 = vcombine.high %v925_v42, %v925_v42  ;;  %v933_v44 = vrot.slane %v925_v42, %v4987_v47 }
 0xcfa   :  { %v940_v45 = vrot.slane %v926_v43, %v4987_v47  ;;  %v944_v48 = vrot.slane %v933_v44, %v4994_v52 }
 0xcfc   :  { %v948_v50 = vrot.slane %v940_v45, %v4994_v52  ;;  %v951_v51 = vadd.f32 %v944_v48, %v4997_v55 }
 0xcfe   :  { %v952_v53 = vadd.f32 %v948_v50, %v5001_v58  ;;  %4374 = vtanh.f32 %v951_v51 }
 0xd00   :  { %4376 = vtanh.f32 %v952_v53 }
 0xd0b   :  { %v4375_v61 = vpop.eup %4374 }
 0xd0c   :  { %v955_v63 = vmul.f32 %v4375_v61, %v5009_v62 }
 0xd0d   :  { %v4377_v3 = vpop.eup %4376 }
 0xd0e   :  { %v957_v5 = vsel %vm273_vm2, %v955_v63, 0.0  ;;  %v956_v6 = vmul.f32 %v4377_v3, %v5009_v62 }
 0xd0f   :  { %958 = vadd.xlane.f32.xlu1 %v957_v5 }
 0xd10   :  { %v960_v9 = vsel %vm273_vm2, %v956_v6, 0.0 }
 0xd11   :  { %961 = vadd.xlane.f32.xlu0 %v960_v9 }
 0xd98   :  { %v959_v49 = vpop.xlane.xlu1 %958 }
 0xd99   :  { %v963_v10 = vadd.f32 %v959_v49, %v5018_v11 }
 0xd9a   :  { %v962_v12 = vpop.xlane.xlu0 %961 }
 0xd9b   :  { %v964_v15 = vadd.f32 %v962_v12, %v5018_v11  ;;  %v970_v16 = vrot.slane %v963_v10, %v5020_v13 }
 0xd9d   :  { %v974_v17 = vrot.slane %v964_v15, %v5020_v13 }
 0xd9f   :  { %v975_v18 = vsel %vm523_vm4, %v974_v17, %v970_v16 }
 0xda0   :  { %v977_v19 = vsel %vm526_vm5, %v975_v18, -inf }
 0xda1   :  { %978 = vmax.xlane.f32.xlu0 %v977_v19 }
 0xe2a   :  { %v979_v20 = vpop.xlane.xlu0 %978 }
 0xe2b   :  { %v984_v21 = vrot.slane %v979_v20, %v4994_v52  ;;  %v988_v22 = vrot.slane %v979_v20, %v5028_v23 }
 0xe2d   :  { %v991_v24 = vsub.f32 %v963_v10, %v984_v21  ;;  %v992_v25 = vsub.f32 %v964_v15, %v988_v22 }
 0xe2f   :  { %v993_v26 = vmul.f32 1.442695, %v991_v24  ;;  %v995_v27 = vmul.f32 1.442695, %v992_v25 }
 0xe31   :  { %4378 = vpow2.f32 %v993_v26 }
 0xe32   :  { %4380 = vpow2.f32 %v995_v27 }
 0xe3e   :  { %v4379_v28 = vpop.eup %4378 }
 0xe3f   :  { %v4381_v32 = vpop.eup %4380  ;;  %1000 = vperm.xlu0 %4343, %v4379_v28  }
 0xe40   :  { %1003 = vperm.xlu1 %4342, %v4381_v32  }
 0xeba   :  { %v1001_v35 = vpop.permute.xlu0 %1000 }
 0xebb   :  { %v1004_v36 = vpop.permute.xlu1 %1003  ;;  %v1008_v37 = vrot.slane %v1001_v35, %v5020_v13 }
 0xebc   :  { %v1012_v38 = vrot.slane %v1004_v36, %v5020_v13 }
 0xebe   :  { %v1013_v39 = vsel %vm523_vm4, %v1012_v38, %v1008_v37 }
 0xebf   :  { %v1015_v41 = vsel %vm526_vm5, %v1013_v39, 0.0 }
 0xec0   :  { %1016 = vadd.xlane.f32.xlu1 %v1015_v41 }
 0xf49   :  { %v1017_v42 = vpop.xlane.xlu1 %1016 }
 0xf4a   :  { %v1022_v43 = vrot.slane %v1017_v42, %v4994_v52  ;;  %v1026_v44 = vrot.slane %v1017_v42, %v5028_v23 }
 0xf4c   :  { %4382 = vrcp.f32 %v1022_v43 }
 0xf4d   :  { %4384 = vrcp.f32 %v1026_v44 }
 0xf59   :  { %v4383_v45 = vpop.eup %4382 }
 0xf5a   :  { %v1030_v48 = vmul.f32 %v4383_v45, %v4379_v28  ;;  %v4385_v50 = vpop.eup %4384 }
 0xf5b   :  { %v1032_v51 = vmul.f32 %v4385_v50, %v4381_v32 }
 0xf5c   :  { %1035 = vperm.xlu0 %4343, %v1030_v48  }
 0xf60   :  { %1040 = vperm.xlu0 %4343, %v1032_v51  }
 0xfd7   :  { %v1036_v53 = vpop.permute.xlu0 %1035 }
 0xfd8   :  { %v1043_v61 = vmul.f32 %v1036_v53, %v5054_v60  ;;  %v1174_v6 = vrot.slane %v1036_v53, %v5020_v13 }
 0xfda   :  { %v1045_v63 = vsel %vm273_vm2, %v1043_v61, 0.0 }
 0xfdb   :  { %v1046_v3 = vrot.slane %v1045_v63, 4  ;;  %v1041_v5 = vpop.permute.xlu0 %1040 }
 0xfdc   :  { %v1044_v9 = vmul.f32 %v1041_v5, %v5057_v1  ;;  %v1178_v49 = vrot.slane %v1041_v5, %v5020_v13 }
 0xfdd   :  { %v1047_v10 = vadd.f32 %v1046_v3, %v1045_v63 }
 0xfde   :  { %v1052_v12 = vsel %vm273_vm2, %v1044_v9, 0.0  ;;  %v1179_v15 = vsel %vm523_vm4, %v1178_v49, %v1174_v6 }
 0xfdf   :  { %v1048_v16 = vrot.slane %v1047_v10, 2  ;;  %v1053_v17 = vrot.slane %v1052_v12, 4  ;;  %1181 = vst.msk [vmem:[%s5807_s15 + $0x2] sm:$0x3] %vm526_vm5, %v1179_v15 }
 0xfe1   :  { %v1049_v18 = vadd.f32 %v1048_v16, %v1047_v10  ;;  %v1054_v19 = vadd.f32 %v1053_v17, %v1052_v12  ;;  %v1184_v10 = vld [vmem:[#allocation2 + $0x4] sm:$0x3] }
 0xfe3   :  { %v1055_v20 = vrot.slane %v1054_v19, 2  ;;  %v1050_v21 = vrot.slane %v1049_v18, 1 }
 0xfe5   :  { %v1056_v22 = vadd.f32 %v1055_v20, %v1054_v19  ;;  %v1051_v25 = vadd.f32 %v1050_v21, %v1049_v18 }
 0xfe7   :  { %v1057_v24 = vrot.slane %v1056_v22, 1 }
 0xfe9   :  { %v1058_v26 = vadd.f32 %v1057_v24, %v1056_v22 }
 0xfeb   :  { %v1061_v27 = vsel %vm523_vm4, %v1058_v26, %v1051_v25 }
 0xfec   :  { %4124 = vmatmul.mubr.msk.f32.vlgmr.msra.gmra.mxu0 %vm273_vm2, %v1061_v27  ;;  %1183 = vst.msk [vmem:[#allocation17 + $0x2] sm:$0x3] %vm726_vm6, %v1061_v27 }
 0xfed   :  { %4138 = vmatpush3.msra.mxu0 %v4952_v29  ;;  %4145 = vmatprep.mubr.msk.f32.mxu0 %vm4778_vm0, %v4777_v0 }
 0xfee   :  { %4139 = vmatprep.subr.mxu0 %v4777_v0 }
 0xfef   :  { %4140 = vmatpush3.msra.mxu0 %v4954_v30 }
 0xff0   :  { %4141 = vmatprep.subr.mxu0 %v4777_v0 }
 0xff1   :  { %4142 = vmatpush3.msra.mxu0 %v4958_v31 }
 0xff2   :  { %4143 = vmatprep.subr.mxu0 %v4777_v0 }
 0xff3   :  { %4144 = vmatpush3.msra.mxu0 %v4962_v33 }
 0xff4   :  { %4159 = vmatprep.subr.mxu0 %v4777_v0 }
0x10ac   :  { %v1130_v28 = vpop.f32.mrf.mxu0 }
0x10ad   :  { %v1131_v32 = vadd.f32 %v5085_v34, %v1130_v28 }
0x10ae   :  { %v4125_v35 = vpop.f32.mrf.mxu0 }
0x10af   :  { %1135 = vrot.lane.b32.xlu0 %v1131_v32, %s4781_s0 }
0x10b3   :  { %1145 = vrot.lane.b32.xlu0 %v1131_v32, %s4780_s6 }
0x1121   :  { %v1136_v36 = vpop.permute.xlu0 %1135 }
0x1122   :  { %v1138_v37 = vadd.f32 %v1136_v36, %v5126_v40 }
0x1124   :  { %v3898_v38 = vmul.f32 -1.442695, %v1138_v37 }
0x1125   :  { %v1146_v43 = vpop.permute.xlu0 %1145 }
0x1126   :  { %4386 = vpow2.f32 %v3898_v38 }
0x1133   :  { %v4387_v39 = vpop.eup %4386 }
0x1134   :  { %v1142_v41 = vadd.f32 1.0, %v4387_v39 }
0x1136   :  { %4388 = vrcp.f32 %v1142_v41 }
0x1143   :  { %v4389_v42 = vpop.eup %4388 }
0x1144   :  { %v1148_v44 = vmul.f32 %v4389_v42, %v1146_v43  ;;  %v1155_v53 = vsub.f32 1.0, %v4389_v42 }
0x1146   :  { %1150 = vrot.lane.b32.xlu0 %v1148_v44, %s4779_s30 }
0x11b8   :  { %v1151_v45 = vpop.permute.xlu0 %1150 }
0x11b9   :  { %v1153_v48 = vadd.f32 %v1151_v45, %v5126_v40 }
0x11bb   :  { %4390 = vtanh.f32 %v1153_v48 }
0x11c8   :  { %v4391_v50 = vpop.eup %4390 }
0x11c9   :  { %1157 = vrot.lane.b32.xlu0 %v4391_v50, %s4780_s6 }
0x11cd   :  { %1161 = vrot.lane.b32.xlu0 %v1061_v27, %s4779_s30 }
0x123b   :  { %v1158_v51 = vpop.permute.xlu0 %1157 }
0x123c   :  { %v1160_v63 = vmul.f32 %v1158_v51, %v1155_v53 }
0x123f   :  { %v1162_v61 = vpop.permute.xlu0 %1161 }
0x1240   :  { %v1164_v3 = vmul.f32 %v4389_v42, %v1162_v61 }
0x1242   :  { %v1165_v5 = vadd.f32 %v1164_v3, %v1160_v63 }
0x1244   :  { %1167 = vrot.lane.b32.xlu0 %v1165_v5, %s4779_s30 }
0x12b6   :  { %v1168_v6 = vpop.permute.xlu0 %1167 }
0x12b7   :  { %1170 = vst.msk [vmem:[#allocation16 + $0x2] sm:$0x3] %vm726_vm6, %v1168_v6  ;;  %4135 = vmatmul.mubr.msk.f32.vlgmr.msra.gmra.mxu1 %vm273_vm2, %v1168_v6 }
0x12b8   :  { %4149 = vmatpush3.msra.mxu1 %v5038_v54  ;;  %4156 = vmatprep.mubr.msk.f32.mxu1 %vm4778_vm0, %v4777_v0 }
0x12b9   :  { %4150 = vmatprep.subr.mxu1 %v4777_v0 }
0x12ba   :  { %4151 = vmatpush3.msra.mxu1 %v5042_v56 }
0x12bb   :  { %4152 = vmatprep.subr.mxu1 %v4777_v0 }
0x12bc   :  { %4153 = vmatpush3.msra.mxu1 %v5044_v57 }
0x12bd   :  { %4154 = vmatprep.subr.mxu1 %v4777_v0 }
0x12be   :  { %4155 = vmatpush3.msra.mxu1 %v5048_v59 }
0x12bf   :  { %4170 = vmatprep.subr.mxu1 %v4777_v0 }
0x1377   :  { %v1253_v40 = vpop.f32.mrf.mxu1 }
0x1378   :  { %v1254_v9 = vadd.f32 %v4947_v14, %v1253_v40 }
0x1379   :  { %v4136_v49 = vpop.f32.mrf.mxu1 }
0x137a   :  { %1265 = vrot.lane.b32.xlu1 %v1254_v9, %s4779_s30  ;;  %v1257_v12 = vadd.f32 %v1254_v9, %v1184_v10 }
0x137c   :  { %v3900_v15 = vmul.f32 -1.442695, %v1257_v12 }
0x137e   :  { %4392 = vpow2.f32 %v3900_v15 }
0x138b   :  { %v4393_v16 = vpop.eup %4392 }
0x138c   :  { %v1261_v17 = vadd.f32 1.0, %v4393_v16 }
0x138e   :  { %4394 = vrcp.f32 %v1261_v17 }
0x139b   :  { %v4395_v18 = vpop.eup %4394 }
0x139c   :  { %v1275_v25 = vsub.f32 1.0, %v4395_v18 }
0x13ec   :  { %v1266_v19 = vpop.permute.xlu1 %1265 }
0x13ed   :  { %v1268_v20 = vmul.f32 %v4395_v18, %v1266_v19 }
0x13ef   :  { %1270 = vrot.lane.b32.xlu0 %v1268_v20, %s4779_s30 }
0x1461   :  { %v1271_v21 = vpop.permute.xlu0 %1270 }
0x1462   :  { %v1273_v22 = vadd.f32 %v1271_v21, %v1184_v10 }
0x1464   :  { %4396 = vtanh.f32 %v1273_v22 }
0x1471   :  { %v4397_v24 = vpop.eup %4396 }
0x1472   :  { %1277 = vrot.lane.b32.xlu0 %v4397_v24, %s4780_s6 }
0x1476   :  { %1281 = vrot.lane.b32.xlu0 %v1165_v5, %s4780_s6 }
0x14e4   :  { %v1278_v14 = vpop.permute.xlu0 %1277 }
0x14e5   :  { %v1280_v27 = vmul.f32 %v1278_v14, %v1275_v25 }
0x14e8   :  { %v1282_v26 = vpop.permute.xlu0 %1281 }
0x14e9   :  { %v1284_v28 = vmul.f32 %v4395_v18, %v1282_v26 }
0x14eb   :  { %v1285_v32 = vadd.f32 %v1284_v28, %v1280_v27 }
0x14ed   :  { %1287 = vrot.lane.b32.xlu0 %v1285_v32, %s4780_s6 }
0x155f   :  { %v1288_v35 = vpop.permute.xlu0 %1287 }
0x1560   :  { %4146 = vmatmul.mubr.msk.f32.vlgmr.msra.gmra.mxu0 %vm273_vm2, %v1288_v35 }
0x1561   :  { %4160 = vmatpush3.msra.mxu0 %v4916_v2  ;;  %4167 = vmatprep.mubr.msk.f32.mxu0 %vm4778_vm0, %v4777_v0 }
0x1562   :  { %4161 = vmatprep.subr.mxu0 %v4777_v0 }
0x1563   :  { %4162 = vmatpush3.msra.mxu0 %v4919_v4 }
0x1564   :  { %4163 = vmatprep.subr.mxu0 %v4777_v0 }
0x1565   :  { %4164 = vmatpush3.msra.mxu0 %v4923_v7 }
0x1566   :  { %4165 = vmatprep.subr.mxu0 %v4777_v0 }
0x1567   :  { %4166 = vmatpush3.msra.mxu0 %v4926_v8 }
0x1568   :  { %4181 = vmatprep.subr.mxu0 %v4777_v0 }
0x1620   :  { %v1357_v36 = vpop.f32.mrf.mxu0 }
0x1621   :  { %v5217_v2 = vadd.f32 %v4985_v46, %v1357_v36 }
0x1622   :  { %v4147_v37 = vpop.f32.mrf.mxu0 }
0x1623   :  { %v1368_v38 = vrot.slane %v5217_v2, %v4987_v47 }
0x1625   :  { %v1369_v39 = vcombine.high %v1368_v38, %v1368_v38  ;;  %v1376_v4 = vrot.slane %v1368_v38, %v4987_v47 }
0x1627   :  { %v1383_v41 = vrot.slane %v1369_v39, %v4987_v47  ;;  %v1387_v7 = vrot.slane %v1376_v4, %v4994_v52 }
0x1629   :  { %v1391_v42 = vrot.slane %v1383_v41, %v4994_v52  ;;  %v1394_v8 = vadd.f32 %v1387_v7, %v4997_v55 }
0x162b   :  { %v1395_v43 = vadd.f32 %v1391_v42, %v5001_v58  ;;  %4398 = vtanh.f32 %v1394_v8 }
0x162d   :  { %4400 = vtanh.f32 %v1395_v43 }
0x1638   :  { %v4399_v46 = vpop.eup %4398 }
0x1639   :  { %v1398_v44 = vmul.f32 %v4399_v46, %v5009_v62 }
0x163a   :  { %v4401_v45 = vpop.eup %4400 }
0x163b   :  { %v1400_v48 = vsel %vm273_vm2, %v1398_v44, 0.0  ;;  %v1399_v50 = vmul.f32 %v4401_v45, %v5009_v62 }
0x163c   :  { %1401 = vadd.xlane.f32.xlu0 %v1400_v48 }
0x163d   :  { %v1403_v51 = vsel %vm273_vm2, %v1399_v50, 0.0 }
0x163e   :  { %1404 = vadd.xlane.f32.xlu1 %v1403_v51 }
0x16c5   :  { %v1402_v53 = vpop.xlane.xlu0 %1401 }
0x16c6   :  { %v1406_v61 = vadd.f32 %v1402_v53, %v5018_v11 }
0x16c7   :  { %v1405_v55 = vpop.xlane.xlu1 %1404 }
0x16c8   :  { %v1407_v58 = vadd.f32 %v1405_v55, %v5018_v11  ;;  %v1413_v63 = vrot.slane %v1406_v61, %v5020_v13 }
0x16ca   :  { %v1417_v3 = vrot.slane %v1407_v58, %v5020_v13 }
0x16cc   :  { %v1418_v5 = vsel %vm523_vm4, %v1417_v3, %v1413_v63 }
0x16cd   :  { %v1420_v6 = vsel %vm526_vm5, %v1418_v5, -inf }
0x16ce   :  { %1421 = vmax.xlane.f32.xlu0 %v1420_v6 }
0x1757   :  { %v1422_v62 = vpop.xlane.xlu0 %1421 }
0x1758   :  { %v1427_v40 = vrot.slane %v1422_v62, %v4994_v52  ;;  %v1431_v9 = vrot.slane %v1422_v62, %v5028_v23 }
0x175a   :  { %v1434_v49 = vsub.f32 %v1406_v61, %v1427_v40  ;;  %v1435_v10 = vsub.f32 %v1407_v58, %v1431_v9 }
0x175c   :  { %v1436_v12 = vmul.f32 1.442695, %v1434_v49  ;;  %v1438_v15 = vmul.f32 1.442695, %v1435_v10 }
0x175e   :  { %4402 = vpow2.f32 %v1436_v12 }
0x175f   :  { %4404 = vpow2.f32 %v1438_v15 }
0x176b   :  { %v4403_v16 = vpop.eup %4402 }
0x176c   :  { %v4405_v17 = vpop.eup %4404  ;;  %1443 = vperm.xlu0 %4343, %v4403_v16  }
0x176d   :  { %1446 = vperm.xlu1 %4342, %v4405_v17  }
0x17e7   :  { %v1444_v18 = vpop.permute.xlu0 %1443 }
0x17e8   :  { %v1447_v19 = vpop.permute.xlu1 %1446  ;;  %v1451_v20 = vrot.slane %v1444_v18, %v5020_v13 }
0x17e9   :  { %v1455_v21 = vrot.slane %v1447_v19, %v5020_v13 }
0x17eb   :  { %v1456_v22 = vsel %vm523_vm4, %v1455_v21, %v1451_v20 }
0x17ec   :  { %v1458_v24 = vsel %vm526_vm5, %v1456_v22, 0.0 }
0x17ed   :  { %1459 = vadd.xlane.f32.xlu1 %v1458_v24 }
0x1876   :  { %v1460_v14 = vpop.xlane.xlu1 %1459 }
0x1877   :  { %v1465_v25 = vrot.slane %v1460_v14, %v4994_v52  ;;  %v1469_v26 = vrot.slane %v1460_v14, %v5028_v23 }
0x1879   :  { %4406 = vrcp.f32 %v1465_v25 }
0x187a   :  { %4408 = vrcp.f32 %v1469_v26 }
0x1886   :  { %v4407_v27 = vpop.eup %4406 }
0x1887   :  { %v1473_v28 = vmul.f32 %v4407_v27, %v4403_v16  ;;  %v4409_v32 = vpop.eup %4408 }
0x1888   :  { %v1475_v35 = vmul.f32 %v4409_v32, %v4405_v17 }
0x1889   :  { %1478 = vperm.xlu0 %4343, %v1473_v28  }
0x188d   :  { %1483 = vperm.xlu0 %4343, %v1475_v35  }
0x1904   :  { %v1479_v36 = vpop.permute.xlu0 %1478 }
0x1905   :  { %v1486_v37 = vmul.f32 %v1479_v36, %v5054_v60  ;;  %v1617_v41 = vrot.slane %v1479_v36, %v5020_v13 }
0x1907   :  { %v1488_v38 = vsel %vm273_vm2, %v1486_v37, 0.0 }
0x1908   :  { %v1489_v39 = vrot.slane %v1488_v38, 4  ;;  %v1484_v4 = vpop.permute.xlu0 %1483 }
0x1909   :  { %v1487_v7 = vmul.f32 %v1484_v4, %v5057_v1  ;;  %v1621_v42 = vrot.slane %v1484_v4, %v5020_v13 }
0x190a   :  { %v1490_v8 = vadd.f32 %v1489_v39, %v1488_v38 }
0x190b   :  { %v1495_v43 = vsel %vm273_vm2, %v1487_v7, 0.0  ;;  %v1622_v46 = vsel %vm523_vm4, %v1621_v42, %v1617_v41  ;;  %v5302_v42 = vld [vmem:[#allocation12 + $0x18] sm:$0xff] }
0x190c   :  { %v1491_v44 = vrot.slane %v1490_v8, 2  ;;  %v1496_v45 = vrot.slane %v1495_v43, 4  ;;  %1624 = vst.msk [vmem:[%s5807_s15 + $0x4] sm:$0x3] %vm526_vm5, %v1622_v46  ;;  %v5316_v46 = vld [vmem:[#allocation12] sm:$0xff] }
0x190e   :  { %v1492_v60 = vadd.f32 %v1491_v44, %v1490_v8  ;;  %v1497_v48 = vadd.f32 %v1496_v45, %v1495_v43  ;;  %v5308_v8 = vld [vmem:[#allocation12 + $0x10] sm:$0xff]  ;;  %v5312_v43 = vld [vmem:[#allocation12 + $0x8] sm:$0xff] }
0x190f   :  { %v5323_v45 = vld [vmem:[%s5801_s9] ss:$0 sm:$0xff] }
0x1910   :  { %v1498_v50 = vrot.slane %v1497_v48, 2  ;;  %v1493_v51 = vrot.slane %v1492_v60, 1 }
0x1912   :  { %v1499_v53 = vadd.f32 %v1498_v50, %v1497_v48  ;;  %v1494_v61 = vadd.f32 %v1493_v51, %v1492_v60 }
0x1914   :  { %v1500_v1 = vrot.slane %v1499_v53, 1 }
0x1916   :  { %v1501_v55 = vadd.f32 %v1500_v1, %v1499_v53 }
0x1918   :  { %v1504_v58 = vsel %vm523_vm4, %v1501_v55, %v1494_v61 }
0x1919   :  { %4157 = vmatmul.mubr.msk.f32.vlgmr.msra.gmra.mxu1 %vm273_vm2, %v1504_v58  ;;  %1626 = vst.msk [vmem:[#allocation17 + $0x4] sm:$0x3] %vm726_vm6, %v1504_v58 }
0x191a   :  { %4171 = vmatpush3.msra.mxu1 %v4952_v29  ;;  %4178 = vmatprep.mubr.msk.f32.mxu1 %vm4778_vm0, %v4777_v0 }
0x191b   :  { %4172 = vmatprep.subr.mxu1 %v4777_v0 }
0x191c   :  { %4173 = vmatpush3.msra.mxu1 %v4954_v30 }
0x191d   :  { %4174 = vmatprep.subr.mxu1 %v4777_v0 }
0x191e   :  { %4175 = vmatpush3.msra.mxu1 %v4958_v31 }
0x191f   :  { %4176 = vmatprep.subr.mxu1 %v4777_v0 }
0x1920   :  { %4177 = vmatpush3.msra.mxu1 %v4962_v33 }
0x1921   :  { %4192 = vmatprep.subr.mxu1 %v4777_v0 }
0x19d9   :  { %v1573_v63 = vpop.f32.mrf.mxu1 }
0x19da   :  { %v1574_v29 = vadd.f32 %v5085_v34, %v1573_v63 }
0x19db   :  { %v4158_v3 = vpop.f32.mrf.mxu1 }
0x19dc   :  { %1578 = vrot.lane.b32.xlu0 %v1574_v29, %s4781_s0 }
0x19e0   :  { %1588 = vrot.lane.b32.xlu0 %v1574_v29, %s4780_s6  ;;  %v5337_v29 = vld [vmem:[#allocation9 + $0x8] sm:$0xff] }
0x1a4e   :  { %v1579_v5 = vpop.permute.xlu0 %1578 }
0x1a4f   :  { %v1581_v30 = vadd.f32 %v1579_v5, %v5217_v2 }
0x1a51   :  { %v3903_v6 = vmul.f32 -1.442695, %v1581_v30  ;;  %v5343_v30 = vld [vmem:[%s5804_s12] ss:$0 sm:$0xff] }
0x1a52   :  { %v1589_v33 = vpop.permute.xlu0 %1588 }
0x1a53   :  { %4410 = vpow2.f32 %v3903_v6 }
0x1a60   :  { %v4411_v31 = vpop.eup %4410 }
0x1a61   :  { %v1585_v62 = vadd.f32 1.0, %v4411_v31 }
0x1a63   :  { %4412 = vrcp.f32 %v1585_v62 }
0x1a70   :  { %v4413_v40 = vpop.eup %4412 }
0x1a71   :  { %v1591_v9 = vmul.f32 %v4413_v40, %v1589_v33  ;;  %v1598_v15 = vsub.f32 1.0, %v4413_v40 }
0x1a73   :  { %1593 = vrot.lane.b32.xlu0 %v1591_v9, %s4779_s30 }
0x1ae5   :  { %v1594_v49 = vpop.permute.xlu0 %1593 }
0x1ae6   :  { %v1596_v34 = vadd.f32 %v1594_v49, %v5217_v2 }
0x1ae8   :  { %4414 = vtanh.f32 %v1596_v34 }
0x1af5   :  { %v4415_v10 = vpop.eup %4414 }
0x1af6   :  { %1600 = vrot.lane.b32.xlu0 %v4415_v10, %s4780_s6 }
0x1afa   :  { %1604 = vrot.lane.b32.xlu0 %v1504_v58, %s4779_s30  ;;  %v5334_v58 = vld [vmem:[#allocation9] sm:$0xff] }
0x1b68   :  { %v1601_v12 = vpop.permute.xlu0 %1600 }
0x1b69   :  { %v1603_v17 = vmul.f32 %v1601_v12, %v1598_v15 }
0x1b6c   :  { %v1605_v16 = vpop.permute.xlu0 %1604 }
0x1b6d   :  { %v1607_v18 = vmul.f32 %v4413_v40, %v1605_v16 }
0x1b6f   :  { %v1608_v19 = vadd.f32 %v1607_v18, %v1603_v17 }
0x1b71   :  { %1610 = vrot.lane.b32.xlu0 %v1608_v19, %s4779_s30 }
0x1be3   :  { %v1611_v20 = vpop.permute.xlu0 %1610 }
0x1be4   :  { %1613 = vst.msk [vmem:[#allocation16 + $0x4] sm:$0x3] %vm726_vm6, %v1611_v20  ;;  %4168 = vmatmul.mubr.msk.f32.vlgmr.msra.gmra.mxu0 %vm273_vm2, %v1611_v20 }
0x1be5   :  { %4182 = vmatpush3.msra.mxu0 %v5038_v54  ;;  %4189 = vmatprep.mubr.msk.f32.mxu0 %vm4778_vm0, %v4777_v0  ;;  %v5293_v54 = vld [vmem:[%s5799_s7] ss:$0 sm:$0xff] }
0x1be6   :  { %4183 = vmatprep.subr.mxu0 %v4777_v0 }
0x1be7   :  { %4184 = vmatpush3.msra.mxu0 %v5042_v56  ;;  %v1627_v56 = vld [vmem:[#allocation2 + $0x6] sm:$0x3] }
0x1be8   :  { %4185 = vmatprep.subr.mxu0 %v4777_v0 }
0x1be9   :  { %4186 = vmatpush3.msra.mxu0 %v5044_v57 }
0x1bea   :  { %4187 = vmatprep.subr.mxu0 %v4777_v0 }
0x1beb   :  { %4188 = vmatpush3.msra.mxu0 %v5048_v59 }
0x1bec   :  { %4203 = vmatprep.subr.mxu0 %v4777_v0 }
0x1ca4   :  { %v1696_v2 = vpop.f32.mrf.mxu0 }
0x1ca5   :  { %v1697_v21 = vadd.f32 %v5293_v54, %v1696_v2 }
0x1ca6   :  { %v4169_v22 = vpop.f32.mrf.mxu0 }
0x1ca7   :  { %1708 = vrot.lane.b32.xlu0 %v1697_v21, %s4779_s30  ;;  %v1700_v24 = vadd.f32 %v1697_v21, %v1627_v56 }
0x1ca9   :  { %v3905_v57 = vmul.f32 -1.442695, %v1700_v24 }
0x1cab   :  { %4416 = vpow2.f32 %v3905_v57 }
0x1cb8   :  { %v4417_v14 = vpop.eup %4416 }
0x1cb9   :  { %v1704_v25 = vadd.f32 1.0, %v4417_v14 }
0x1cbb   :  { %4418 = vrcp.f32 %v1704_v25 }
0x1cc8   :  { %v4419_v59 = vpop.eup %4418 }
0x1cc9   :  { %v1718_v37 = vsub.f32 1.0, %v4419_v59 }
0x1d19   :  { %v1709_v26 = vpop.permute.xlu0 %1708 }
0x1d1a   :  { %v1711_v27 = vmul.f32 %v4419_v59, %v1709_v26 }
0x1d1c   :  { %1713 = vrot.lane.b32.xlu1 %v1711_v27, %s4779_s30 }
0x1d8e   :  { %v1714_v28 = vpop.permute.xlu1 %1713 }
0x1d8f   :  { %v1716_v32 = vadd.f32 %v1714_v28, %v1627_v56 }
0x1d91   :  { %4420 = vtanh.f32 %v1716_v32 }
0x1d9e   :  { %v4421_v35 = vpop.eup %4420 }
0x1d9f   :  { %1720 = vrot.lane.b32.xlu0 %v4421_v35, %s4780_s6 }
0x1da3   :  { %1724 = vrot.lane.b32.xlu0 %v1608_v19, %s4780_s6 }
0x1e11   :  { %v1721_v36 = vpop.permute.xlu0 %1720 }
0x1e12   :  { %v1723_v39 = vmul.f32 %v1721_v36, %v1718_v37 }
0x1e15   :  { %v1725_v38 = vpop.permute.xlu0 %1724 }
0x1e16   :  { %v1727_v4 = vmul.f32 %v4419_v59, %v1725_v38 }
0x1e18   :  { %v1728_v41 = vadd.f32 %v1727_v4, %v1723_v39 }
0x1e1a   :  { %1730 = vrot.lane.b32.xlu0 %v1728_v41, %s4780_s6 }
0x1e8c   :  { %v1731_v7 = vpop.permute.xlu0 %1730 }
0x1e8d   :  { %4179 = vmatmul.mubr.msk.f32.vlgmr.msra.gmra.mxu1 %vm273_vm2, %v1731_v7  ;;  %v5363_v7 = vld [vmem:[#allocation7] sm:$0xff] }
0x1e8e   :  { %4193 = vmatpush3.msra.mxu1 %v5302_v42  ;;  %4200 = vmatprep.mubr.msk.f32.mxu1 %vm4778_vm0, %v4777_v0 }
0x1e8f   :  { %4194 = vmatprep.subr.mxu1 %v4777_v0 }
0x1e90   :  { %4195 = vmatpush3.msra.mxu1 %v5308_v8 }
0x1e91   :  { %4196 = vmatprep.subr.mxu1 %v4777_v0 }
0x1e92   :  { %4197 = vmatpush3.msra.mxu1 %v5312_v43 }
0x1e93   :  { %4198 = vmatprep.subr.mxu1 %v4777_v0 }
0x1e94   :  { %4199 = vmatpush3.msra.mxu1 %v5316_v46 }
0x1e95   :  { %4214 = vmatprep.subr.mxu1 %v4777_v0 }
0x1f4d   :  { %v1800_v44 = vpop.f32.mrf.mxu1 }
0x1f4e   :  { %v5326_v60 = vadd.f32 %v5323_v45, %v1800_v44 }
0x1f4f   :  { %v4180_v48 = vpop.f32.mrf.mxu1 }
0x1f50   :  { %v1811_v50 = vrot.slane %v5326_v60, %v4987_v47 }
0x1f52   :  { %v1812_v51 = vcombine.high %v1811_v50, %v1811_v50  ;;  %v1819_v53 = vrot.slane %v1811_v50, %v4987_v47 }
0x1f54   :  { %v1826_v1 = vrot.slane %v1812_v51, %v4987_v47  ;;  %v1830_v61 = vrot.slane %v1819_v53, %v4994_v52 }
0x1f56   :  { %v1834_v55 = vrot.slane %v1826_v1, %v4994_v52  ;;  %v1837_v63 = vadd.f32 %v5334_v58, %v1830_v61  ;;  %v5368_v1 = vld [vmem:[#allocation7 + $0x8] sm:$0xff] }
0x1f58   :  { %v1838_v3 = vadd.f32 %v5337_v29, %v1834_v55  ;;  %4422 = vtanh.f32 %v1837_v63 }
0x1f5a   :  { %4424 = vtanh.f32 %v1838_v3 }
0x1f65   :  { %v4423_v5 = vpop.eup %4422 }
0x1f66   :  { %v1841_v6 = vmul.f32 %v5343_v30, %v4423_v5 }
0x1f67   :  { %v4425_v31 = vpop.eup %4424 }
0x1f68   :  { %v1843_v62 = vsel %vm273_vm2, %v1841_v6, 0.0  ;;  %v1842_v40 = vmul.f32 %v5343_v30, %v4425_v31 }
0x1f69   :  { %1844 = vadd.xlane.f32.xlu0 %v1843_v62 }
0x1f6a   :  { %v1846_v33 = vsel %vm273_vm2, %v1842_v40, 0.0 }
0x1f6b   :  { %1847 = vadd.xlane.f32.xlu1 %v1846_v33 }
0x1ff2   :  { %v1845_v9 = vpop.xlane.xlu0 %1844 }
0x1ff3   :  { %v1849_v49 = vadd.f32 %v1845_v9, %v5018_v11 }
0x1ff4   :  { %v1848_v34 = vpop.xlane.xlu1 %1847 }
0x1ff5   :  { %v1850_v10 = vadd.f32 %v1848_v34, %v5018_v11  ;;  %v1856_v12 = vrot.slane %v1849_v49, %v5020_v13 }
0x1ff7   :  { %v1860_v15 = vrot.slane %v1850_v10, %v5020_v13 }
0x1ff9   :  { %v1861_v16 = vsel %vm523_vm4, %v1860_v15, %v1856_v12 }
0x1ffa   :  { %v1863_v17 = vsel %vm526_vm5, %v1861_v16, -inf  ;;  %v5381_v16 = vld [vmem:[#allocation13 + $0x18] sm:$0xff] }
0x1ffb   :  { %1864 = vmax.xlane.f32.xlu0 %v1863_v17  ;;  %v5387_v17 = vld [vmem:[#allocation13 + $0x10] sm:$0xff] }
0x2084   :  { %v1865_v18 = vpop.xlane.xlu0 %1864 }
0x2085   :  { %v1870_v19 = vrot.slane %v1865_v18, %v4994_v52  ;;  %v1874_v20 = vrot.slane %v1865_v18, %v5028_v23  ;;  %v5391_v18 = vld [vmem:[#allocation13 + $0x8] sm:$0xff] }
0x2087   :  { %v1877_v2 = vsub.f32 %v1849_v49, %v1870_v19  ;;  %v1878_v21 = vsub.f32 %v1850_v10, %v1874_v20  ;;  %v5395_v19 = vld [vmem:[#allocation13] sm:$0xff] }
0x2089   :  { %v1879_v22 = vmul.f32 1.442695, %v1877_v2  ;;  %v1881_v56 = vmul.f32 1.442695, %v1878_v21  ;;  %v5402_v2 = vld [vmem:[%s5803_s11] ss:$0 sm:$0xff] }
0x208b   :  { %4426 = vpow2.f32 %v1879_v22 }
0x208c   :  { %4428 = vpow2.f32 %v1881_v56 }
0x2098   :  { %v4427_v24 = vpop.eup %4426 }
0x2099   :  { %v4429_v57 = vpop.eup %4428  ;;  %1886 = vperm.xlu0 %4343, %v4427_v24  }
0x209a   :  { %1889 = vperm.xlu1 %4342, %v4429_v57  }
0x2114   :  { %v1887_v14 = vpop.permute.xlu0 %1886 }
0x2115   :  { %v1890_v25 = vpop.permute.xlu1 %1889  ;;  %v1894_v59 = vrot.slane %v1887_v14, %v5020_v13 }
0x2116   :  { %v1898_v26 = vrot.slane %v1890_v25, %v5020_v13 }
0x2118   :  { %v1899_v27 = vsel %vm523_vm4, %v1898_v26, %v1894_v59 }
0x2119   :  { %v1901_v28 = vsel %vm526_vm5, %v1899_v27, 0.0 }
0x211a   :  { %1902 = vadd.xlane.f32.xlu1 %v1901_v28 }
0x21a3   :  { %v1903_v32 = vpop.xlane.xlu1 %1902 }
0x21a4   :  { %v1908_v35 = vrot.slane %v1903_v32, %v4994_v52  ;;  %v1912_v36 = vrot.slane %v1903_v32, %v5028_v23 }
0x21a6   :  { %4430 = vrcp.f32 %v1908_v35 }
0x21a7   :  { %4432 = vrcp.f32 %v1912_v36 }
0x21b3   :  { %v4431_v37 = vpop.eup %4430 }
0x21b4   :  { %v1916_v38 = vmul.f32 %v4431_v37, %v4427_v24  ;;  %v4433_v39 = vpop.eup %4432 }
0x21b5   :  { %v1918_v4 = vmul.f32 %v4433_v39, %v4429_v57 }
0x21b6   :  { %1921 = vperm.xlu0 %4343, %v1916_v38  }
0x21ba   :  { %1926 = vperm.xlu0 %4343, %v1918_v4  }
0x2231   :  { %v1922_v41 = vpop.permute.xlu0 %1921 }
0x2232   :  { %v1929_v44 = vmul.f32 %v5363_v7, %v1922_v41  ;;  %v2060_v53 = vrot.slane %v1922_v41, %v5020_v13 }
0x2234   :  { %v1931_v48 = vsel %vm273_vm2, %v1929_v44, 0.0 }
0x2235   :  { %v1932_v50 = vrot.slane %v1931_v48, 4  ;;  %v1927_v51 = vpop.permute.xlu0 %1926 }
0x2236   :  { %v1930_v61 = vmul.f32 %v5368_v1, %v1927_v51  ;;  %v2064_v55 = vrot.slane %v1927_v51, %v5020_v13  ;;  %v5429_v51 = vld [vmem:[#allocation15] sm:$0xff] }
0x2237   :  { %v1933_v63 = vadd.f32 %v1932_v50, %v1931_v48  ;;  %v5421_v48 = vld [vmem:[#allocation15 + $0x10] sm:$0xff]  ;;  %v5425_v50 = vld [vmem:[#allocation15 + $0x8] sm:$0xff] }
0x2238   :  { %v1938_v3 = vsel %vm273_vm2, %v1930_v61, 0.0  ;;  %v2065_v5 = vsel %vm523_vm4, %v2064_v55, %v2060_v53 }
0x2239   :  { %v1934_v6 = vrot.slane %v1933_v63, 2  ;;  %v1939_v31 = vrot.slane %v1938_v3, 4  ;;  %2067 = vst.msk [vmem:[%s5807_s15 + $0x6] sm:$0x3] %vm526_vm5, %v2065_v5 }
0x223b   :  { %v1935_v62 = vadd.f32 %v1934_v6, %v1933_v63  ;;  %v1940_v40 = vadd.f32 %v1939_v31, %v1938_v3  ;;  %v2070_v63 = vld [vmem:[#allocation2 + $0x8] sm:$0x3] }
0x223d   :  { %v1941_v33 = vrot.slane %v1940_v40, 2  ;;  %v1936_v9 = vrot.slane %v1935_v62, 1 }
0x223f   :  { %v1942_v49 = vadd.f32 %v1941_v33, %v1940_v40  ;;  %v1937_v10 = vadd.f32 %v1936_v9, %v1935_v62 }
0x2241   :  { %v1943_v34 = vrot.slane %v1942_v49, 1 }
0x2243   :  { %v1944_v12 = vadd.f32 %v1943_v34, %v1942_v49 }
0x2245   :  { %v1947_v15 = vsel %vm523_vm4, %v1944_v12, %v1937_v10 }
0x2246   :  { %4190 = vmatmul.mubr.msk.f32.vlgmr.msra.gmra.mxu0 %vm273_vm2, %v1947_v15  ;;  %2069 = vst.msk [vmem:[#allocation17 + $0x6] sm:$0x3] %vm726_vm6, %v1947_v15 }
0x2247   :  { %4204 = vmatpush3.msra.mxu0 %v5381_v16  ;;  %4211 = vmatprep.mubr.msk.f32.mxu0 %vm4778_vm0, %v4777_v0 }
0x2248   :  { %4205 = vmatprep.subr.mxu0 %v4777_v0 }
0x2249   :  { %4206 = vmatpush3.msra.mxu0 %v5387_v17 }
0x224a   :  { %4207 = vmatprep.subr.mxu0 %v4777_v0 }
0x224b   :  { %4208 = vmatpush3.msra.mxu0 %v5391_v18 }
0x224c   :  { %4209 = vmatprep.subr.mxu0 %v4777_v0 }
0x224d   :  { %4210 = vmatpush3.msra.mxu0 %v5395_v19 }
0x224e   :  { %4225 = vmatprep.subr.mxu0 %v4777_v0 }
0x2306   :  { %v2016_v20 = vpop.f32.mrf.mxu0 }
0x2307   :  { %v2017_v21 = vadd.f32 %v5402_v2, %v2016_v20 }
0x2308   :  { %v4191_v22 = vpop.f32.mrf.mxu0 }
0x2309   :  { %2021 = vrot.lane.b32.xlu0 %v2017_v21, %s4781_s0 }
0x230d   :  { %2031 = vrot.lane.b32.xlu0 %v2017_v21, %s4780_s6 }
0x237b   :  { %v2022_v56 = vpop.permute.xlu0 %2021 }
0x237c   :  { %v2024_v24 = vadd.f32 %v2022_v56, %v5326_v60 }
0x237e   :  { %v3908_v57 = vmul.f32 -1.442695, %v2024_v24 }
0x237f   :  { %v2032_v26 = vpop.permute.xlu0 %2031 }
0x2380   :  { %4434 = vpow2.f32 %v3908_v57 }
0x238d   :  { %v4435_v14 = vpop.eup %4434 }
0x238e   :  { %v2028_v25 = vadd.f32 1.0, %v4435_v14 }
0x2390   :  { %4436 = vrcp.f32 %v2028_v25 }
0x239d   :  { %v4437_v59 = vpop.eup %4436 }
0x239e   :  { %v2034_v27 = vmul.f32 %v4437_v59, %v2032_v26  ;;  %v2041_v37 = vsub.f32 1.0, %v4437_v59 }
0x23a0   :  { %2036 = vrot.lane.b32.xlu0 %v2034_v27, %s4779_s30 }
0x2412   :  { %v2037_v28 = vpop.permute.xlu0 %2036 }
0x2413   :  { %v2039_v32 = vadd.f32 %v2037_v28, %v5326_v60  ;;  %v5415_v60 = vld [vmem:[#allocation15 + $0x18] sm:$0xff] }
0x2415   :  { %4438 = vtanh.f32 %v2039_v32 }
0x2422   :  { %v4439_v35 = vpop.eup %4438 }
0x2423   :  { %2043 = vrot.lane.b32.xlu0 %v4439_v35, %s4780_s6 }
0x2427   :  { %2047 = vrot.lane.b32.xlu0 %v1947_v15, %s4779_s30 }
0x2495   :  { %v2044_v36 = vpop.permute.xlu0 %2043 }
0x2496   :  { %v2046_v39 = vmul.f32 %v2044_v36, %v2041_v37 }
0x2499   :  { %v2048_v38 = vpop.permute.xlu0 %2047 }
0x249a   :  { %v2050_v4 = vmul.f32 %v4437_v59, %v2048_v38 }
0x249c   :  { %v2051_v41 = vadd.f32 %v2050_v4, %v2046_v39 }
0x249e   :  { %2053 = vrot.lane.b32.xlu0 %v2051_v41, %s4779_s30 }
0x2510   :  { %v2054_v44 = vpop.permute.xlu0 %2053 }
0x2511   :  { %2056 = vst.msk [vmem:[#allocation16 + $0x6] sm:$0x3] %vm726_vm6, %v2054_v44  ;;  %4201 = vmatmul.mubr.msk.f32.vlgmr.msra.gmra.mxu1 %vm273_vm2, %v2054_v44 }
0x2512   :  { %4215 = vmatpush3.msra.mxu1 %v5415_v60  ;;  %4222 = vmatprep.mubr.msk.f32.mxu1 %vm4778_vm0, %v4777_v0 }
0x2513   :  { %4216 = vmatprep.subr.mxu1 %v4777_v0 }
0x2514   :  { %4217 = vmatpush3.msra.mxu1 %v5421_v48 }
0x2515   :  { %4218 = vmatprep.subr.mxu1 %v4777_v0 }
0x2516   :  { %4219 = vmatpush3.msra.mxu1 %v5425_v50 }
0x2517   :  { %4220 = vmatprep.subr.mxu1 %v4777_v0 }
0x2518   :  { %4221 = vmatpush3.msra.mxu1 %v5429_v51 }
0x2519   :  { %4236 = vmatprep.subr.mxu1 %v4777_v0 }
0x25d1   :  { %v2139_v53 = vpop.f32.mrf.mxu1 }
0x25d2   :  { %v2140_v61 = vadd.f32 %v5293_v54, %v2139_v53 }
0x25d3   :  { %v4202_v55 = vpop.f32.mrf.mxu1 }
0x25d4   :  { %2151 = vrot.lane.b32.xlu0 %v2140_v61, %s4779_s30  ;;  %v2143_v3 = vadd.f32 %v2140_v61, %v2070_v63 }
0x25d6   :  { %v3910_v5 = vmul.f32 -1.442695, %v2143_v3 }
0x25d8   :  { %4440 = vpow2.f32 %v3910_v5 }
0x25e5   :  { %v4441_v6 = vpop.eup %4440 }
0x25e6   :  { %v2147_v31 = vadd.f32 1.0, %v4441_v6 }
0x25e8   :  { %4442 = vrcp.f32 %v2147_v31 }
0x25f5   :  { %v4443_v62 = vpop.eup %4442 }
0x25f6   :  { %v2161_v12 = vsub.f32 1.0, %v4443_v62 }
0x2646   :  { %v2152_v40 = vpop.permute.xlu0 %2151 }
0x2647   :  { %v2154_v33 = vmul.f32 %v4443_v62, %v2152_v40 }
0x2649   :  { %2156 = vrot.lane.b32.xlu1 %v2154_v33, %s4779_s30 }
0x26bb   :  { %v2157_v9 = vpop.permute.xlu1 %2156 }
0x26bc   :  { %v2159_v49 = vadd.f32 %v2157_v9, %v2070_v63 }
0x26be   :  { %4444 = vtanh.f32 %v2159_v49 }
0x26cb   :  { %v4445_v34 = vpop.eup %4444 }
0x26cc   :  { %2163 = vrot.lane.b32.xlu0 %v4445_v34, %s4780_s6 }
0x26d0   :  { %2167 = vrot.lane.b32.xlu0 %v2051_v41, %s4780_s6 }
0x273e   :  { %v2164_v10 = vpop.permute.xlu0 %2163 }
0x273f   :  { %v2166_v20 = vmul.f32 %v2164_v10, %v2161_v12 }
0x2742   :  { %v2168_v15 = vpop.permute.xlu0 %2167 }
0x2743   :  { %v2170_v21 = vmul.f32 %v4443_v62, %v2168_v15 }
0x2745   :  { %v2171_v22 = vadd.f32 %v2170_v21, %v2166_v20 }
0x2747   :  { %2173 = vrot.lane.b32.xlu0 %v2171_v22, %s4780_s6 }
0x27b9   :  { %v2174_v56 = vpop.permute.xlu0 %2173 }
0x27ba   :  { %4212 = vmatmul.mubr.msk.f32.vlgmr.msra.gmra.mxu0 %vm273_vm2, %v2174_v56 }
0x27bb   :  { %4226 = vmatpush3.msra.mxu0 %v5302_v42  ;;  %4233 = vmatprep.mubr.msk.f32.mxu0 %vm4778_vm0, %v4777_v0 }
0x27bc   :  { %4227 = vmatprep.subr.mxu0 %v4777_v0 }
0x27bd   :  { %4228 = vmatpush3.msra.mxu0 %v5308_v8 }
0x27be   :  { %4229 = vmatprep.subr.mxu0 %v4777_v0 }
0x27bf   :  { %4230 = vmatpush3.msra.mxu0 %v5312_v43 }
0x27c0   :  { %4231 = vmatprep.subr.mxu0 %v4777_v0 }
0x27c1   :  { %4232 = vmatpush3.msra.mxu0 %v5316_v46 }
0x27c2   :  { %4247 = vmatprep.subr.mxu0 %v4777_v0 }
0x287a   :  { %v2243_v24 = vpop.f32.mrf.mxu0 }
0x287b   :  { %v5451_v57 = vadd.f32 %v5323_v45, %v2243_v24 }
0x287c   :  { %v4213_v14 = vpop.f32.mrf.mxu0 }
0x287d   :  { %v2254_v25 = vrot.slane %v5451_v57, %v4987_v47 }
0x287f   :  { %v2255_v59 = vcombine.high %v2254_v25, %v2254_v25  ;;  %v2262_v26 = vrot.slane %v2254_v25, %v4987_v47 }
0x2881   :  { %v2269_v27 = vrot.slane %v2255_v59, %v4987_v47  ;;  %v2273_v28 = vrot.slane %v2262_v26, %v4994_v52 }
0x2883   :  { %v2277_v32 = vrot.slane %v2269_v27, %v4994_v52  ;;  %v2280_v35 = vadd.f32 %v5334_v58, %v2273_v28 }
0x2885   :  { %v2281_v36 = vadd.f32 %v5337_v29, %v2277_v32  ;;  %4446 = vtanh.f32 %v2280_v35 }
0x2887   :  { %4448 = vtanh.f32 %v2281_v36 }
0x2892   :  { %v4447_v37 = vpop.eup %4446 }
0x2893   :  { %v2284_v38 = vmul.f32 %v5343_v30, %v4447_v37 }
0x2894   :  { %v4449_v39 = vpop.eup %4448 }
0x2895   :  { %v2286_v4 = vsel %vm273_vm2, %v2284_v38, 0.0  ;;  %v2285_v41 = vmul.f32 %v5343_v30, %v4449_v39 }
0x2896   :  { %2287 = vadd.xlane.f32.xlu0 %v2286_v4 }
0x2897   :  { %v2289_v44 = vsel %vm273_vm2, %v2285_v41, 0.0 }
0x2898   :  { %2290 = vadd.xlane.f32.xlu1 %v2289_v44 }
0x291f   :  { %v2288_v53 = vpop.xlane.xlu0 %2287 }
0x2920   :  { %v2292_v61 = vadd.f32 %v2288_v53, %v5018_v11 }
0x2921   :  { %v2291_v55 = vpop.xlane.xlu1 %2290 }
0x2922   :  { %v2293_v63 = vadd.f32 %v2291_v55, %v5018_v11  ;;  %v2299_v3 = vrot.slane %v2292_v61, %v5020_v13 }
0x2924   :  { %v2303_v5 = vrot.slane %v2293_v63, %v5020_v13 }
0x2926   :  { %v2304_v6 = vsel %vm523_vm4, %v2303_v5, %v2299_v3 }
0x2927   :  { %v2306_v31 = vsel %vm526_vm5, %v2304_v6, -inf }
0x2928   :  { %2307 = vmax.xlane.f32.xlu0 %v2306_v31 }
0x29b1   :  { %v2308_v62 = vpop.xlane.xlu0 %2307 }
0x29b2   :  { %v2313_v40 = vrot.slane %v2308_v62, %v4994_v52  ;;  %v2317_v33 = vrot.slane %v2308_v62, %v5028_v23 }
0x29b4   :  { %v2320_v9 = vsub.f32 %v2292_v61, %v2313_v40  ;;  %v2321_v49 = vsub.f32 %v2293_v63, %v2317_v33 }
0x29b6   :  { %v2322_v34 = vmul.f32 1.442695, %v2320_v9  ;;  %v2324_v10 = vmul.f32 1.442695, %v2321_v49 }
0x29b8   :  { %4450 = vpow2.f32 %v2322_v34 }
0x29b9   :  { %4452 = vpow2.f32 %v2324_v10 }
0x29c5   :  { %v4451_v12 = vpop.eup %4450 }
0x29c6   :  { %v4453_v15 = vpop.eup %4452  ;;  %2329 = vperm.xlu0 %4343, %v4451_v12  }
0x29c7   :  { %2332 = vperm.xlu1 %4342, %v4453_v15  }
0x2a41   :  { %v2330_v20 = vpop.permute.xlu0 %2329 }
0x2a42   :  { %v2333_v21 = vpop.permute.xlu1 %2332  ;;  %v2337_v22 = vrot.slane %v2330_v20, %v5020_v13 }
0x2a43   :  { %v2341_v56 = vrot.slane %v2333_v21, %v5020_v13 }
0x2a45   :  { %v2342_v24 = vsel %vm523_vm4, %v2341_v56, %v2337_v22 }
0x2a46   :  { %v2344_v14 = vsel %vm526_vm5, %v2342_v24, 0.0 }
0x2a47   :  { %2345 = vadd.xlane.f32.xlu1 %v2344_v14 }
0x2ad0   :  { %v2346_v25 = vpop.xlane.xlu1 %2345 }
0x2ad1   :  { %v2351_v59 = vrot.slane %v2346_v25, %v4994_v52  ;;  %v2355_v26 = vrot.slane %v2346_v25, %v5028_v23 }
0x2ad3   :  { %4454 = vrcp.f32 %v2351_v59 }
0x2ad4   :  { %4456 = vrcp.f32 %v2355_v26 }
0x2ae0   :  { %v4455_v27 = vpop.eup %4454 }
0x2ae1   :  { %v2359_v28 = vmul.f32 %v4455_v27, %v4451_v12  ;;  %v4457_v32 = vpop.eup %4456 }
0x2ae2   :  { %v2361_v35 = vmul.f32 %v4457_v32, %v4453_v15 }
0x2ae3   :  { %2364 = vperm.xlu0 %4343, %v2359_v28  }
0x2ae7   :  { %2369 = vperm.xlu0 %4343, %v2361_v35  }
0x2b5e   :  { %v2365_v36 = vpop.permute.xlu0 %2364 }
0x2b5f   :  { %v2372_v37 = vmul.f32 %v5363_v7, %v2365_v36  ;;  %v2503_v41 = vrot.slane %v2365_v36, %v5020_v13 }
0x2b61   :  { %v2374_v38 = vsel %vm273_vm2, %v2372_v37, 0.0 }
0x2b62   :  { %v2375_v39 = vrot.slane %v2374_v38, 4  ;;  %v2370_v4 = vpop.permute.xlu0 %2369 }
0x2b63   :  { %v2373_v44 = vmul.f32 %v5368_v1, %v2370_v4  ;;  %v2507_v53 = vrot.slane %v2370_v4, %v5020_v13 }
0x2b64   :  { %v2376_v61 = vadd.f32 %v2375_v39, %v2374_v38 }
0x2b65   :  { %v2381_v55 = vsel %vm273_vm2, %v2373_v44, 0.0  ;;  %v2508_v63 = vsel %vm523_vm4, %v2507_v53, %v2503_v41 }
0x2b66   :  { %v2377_v3 = vrot.slane %v2376_v61, 2  ;;  %v2382_v5 = vrot.slane %v2381_v55, 4  ;;  %2510 = vst.msk [vmem:[%s5807_s15 + $0x8] sm:$0x3] %vm526_vm5, %v2508_v63 }
0x2b68   :  { %v2378_v6 = vadd.f32 %v2377_v3, %v2376_v61  ;;  %v2383_v31 = vadd.f32 %v2382_v5, %v2381_v55  ;;  %v2513_v61 = vld [vmem:[#allocation2 + $0xa] sm:$0x3] }
0x2b6a   :  { %v2384_v62 = vrot.slane %v2383_v31, 2  ;;  %v2379_v40 = vrot.slane %v2378_v6, 1 }
0x2b6c   :  { %v2385_v33 = vadd.f32 %v2384_v62, %v2383_v31  ;;  %v2380_v49 = vadd.f32 %v2379_v40, %v2378_v6 }
0x2b6e   :  { %v2386_v9 = vrot.slane %v2385_v33, 1 }
0x2b70   :  { %v2387_v34 = vadd.f32 %v2386_v9, %v2385_v33 }
0x2b72   :  { %v2390_v10 = vsel %vm523_vm4, %v2387_v34, %v2380_v49 }
0x2b73   :  { %4223 = vmatmul.mubr.msk.f32.vlgmr.msra.gmra.mxu1 %vm273_vm2, %v2390_v10  ;;  %2512 = vst.msk [vmem:[#allocation17 + $0x8] sm:$0x3] %vm726_vm6, %v2390_v10 }
0x2b74   :  { %4237 = vmatpush3.msra.mxu1 %v5381_v16  ;;  %4244 = vmatprep.mubr.msk.f32.mxu1 %vm4778_vm0, %v4777_v0 }
0x2b75   :  { %4238 = vmatprep.subr.mxu1 %v4777_v0 }
0x2b76   :  { %4239 = vmatpush3.msra.mxu1 %v5387_v17 }
0x2b77   :  { %4240 = vmatprep.subr.mxu1 %v4777_v0 }
0x2b78   :  { %4241 = vmatpush3.msra.mxu1 %v5391_v18 }
0x2b79   :  { %4242 = vmatprep.subr.mxu1 %v4777_v0 }
0x2b7a   :  { %4243 = vmatpush3.msra.mxu1 %v5395_v19 }
0x2b7b   :  { %4258 = vmatprep.subr.mxu1 %v4777_v0 }
0x2c33   :  { %v2459_v12 = vpop.f32.mrf.mxu1 }
0x2c34   :  { %v2460_v15 = vadd.f32 %v5402_v2, %v2459_v12 }
0x2c35   :  { %v4224_v20 = vpop.f32.mrf.mxu1 }
0x2c36   :  { %2464 = vrot.lane.b32.xlu0 %v2460_v15, %s4781_s0 }
0x2c3a   :  { %2474 = vrot.lane.b32.xlu0 %v2460_v15, %s4780_s6 }
0x2ca8   :  { %v2465_v21 = vpop.permute.xlu0 %2464 }
0x2ca9   :  { %v2467_v22 = vadd.f32 %v2465_v21, %v5451_v57 }
0x2cab   :  { %v3913_v56 = vmul.f32 -1.442695, %v2467_v22 }
0x2cac   :  { %v2475_v59 = vpop.permute.xlu0 %2474 }
0x2cad   :  { %4458 = vpow2.f32 %v3913_v56 }
0x2cba   :  { %v4459_v24 = vpop.eup %4458 }
0x2cbb   :  { %v2471_v14 = vadd.f32 1.0, %v4459_v24 }
0x2cbd   :  { %4460 = vrcp.f32 %v2471_v14 }
0x2cca   :  { %v4461_v25 = vpop.eup %4460 }
0x2ccb   :  { %v2477_v26 = vmul.f32 %v4461_v25, %v2475_v59  ;;  %v2484_v36 = vsub.f32 1.0, %v4461_v25 }
0x2ccd   :  { %2479 = vrot.lane.b32.xlu0 %v2477_v26, %s4779_s30 }
0x2d3f   :  { %v2480_v27 = vpop.permute.xlu0 %2479 }
0x2d40   :  { %v2482_v28 = vadd.f32 %v2480_v27, %v5451_v57 }
0x2d42   :  { %4462 = vtanh.f32 %v2482_v28 }
0x2d4f   :  { %v4463_v32 = vpop.eup %4462 }
0x2d50   :  { %2486 = vrot.lane.b32.xlu0 %v4463_v32, %s4780_s6 }
0x2d54   :  { %2490 = vrot.lane.b32.xlu0 %v2390_v10, %s4779_s30 }
0x2dc2   :  { %v2487_v35 = vpop.permute.xlu0 %2486 }
0x2dc3   :  { %v2489_v38 = vmul.f32 %v2487_v35, %v2484_v36 }
0x2dc6   :  { %v2491_v37 = vpop.permute.xlu0 %2490 }
0x2dc7   :  { %v2493_v39 = vmul.f32 %v4461_v25, %v2491_v37 }
0x2dc9   :  { %v2494_v4 = vadd.f32 %v2493_v39, %v2489_v38 }
0x2dcb   :  { %2496 = vrot.lane.b32.xlu0 %v2494_v4, %s4779_s30 }
0x2e3d   :  { %v2497_v41 = vpop.permute.xlu0 %2496 }
0x2e3e   :  { %2499 = vst.msk [vmem:[#allocation16 + $0x8] sm:$0x3] %vm726_vm6, %v2497_v41  ;;  %4234 = vmatmul.mubr.msk.f32.vlgmr.msra.gmra.mxu0 %vm273_vm2, %v2497_v41 }
0x2e3f   :  { %4248 = vmatpush3.msra.mxu0 %v5415_v60  ;;  %4255 = vmatprep.mubr.msk.f32.mxu0 %vm4778_vm0, %v4777_v0 }
0x2e40   :  { %4249 = vmatprep.subr.mxu0 %v4777_v0 }
0x2e41   :  { %4250 = vmatpush3.msra.mxu0 %v5421_v48 }
0x2e42   :  { %4251 = vmatprep.subr.mxu0 %v4777_v0 }
0x2e43   :  { %4252 = vmatpush3.msra.mxu0 %v5425_v50 }
0x2e44   :  { %4253 = vmatprep.subr.mxu0 %v4777_v0 }
0x2e45   :  { %4254 = vmatpush3.msra.mxu0 %v5429_v51 }
0x2e46   :  { %4269 = vmatprep.subr.mxu0 %v4777_v0 }
0x2efe   :  { %v2582_v57 = vpop.f32.mrf.mxu0 }
0x2eff   :  { %v2583_v44 = vadd.f32 %v5293_v54, %v2582_v57 }
0x2f00   :  { %v4235_v53 = vpop.f32.mrf.mxu0 }
0x2f01   :  { %2594 = vrot.lane.b32.xlu0 %v2583_v44, %s4779_s30  ;;  %v2586_v55 = vadd.f32 %v2583_v44, %v2513_v61 }
0x2f03   :  { %v3915_v63 = vmul.f32 -1.442695, %v2586_v55 }
0x2f05   :  { %4464 = vpow2.f32 %v3915_v63 }
0x2f12   :  { %v4465_v3 = vpop.eup %4464 }
0x2f13   :  { %v2590_v5 = vadd.f32 1.0, %v4465_v3 }
0x2f15   :  { %4466 = vrcp.f32 %v2590_v5 }
0x2f22   :  { %v4467_v6 = vpop.eup %4466 }
0x2f23   :  { %v2604_v49 = vsub.f32 1.0, %v4467_v6 }
0x2f73   :  { %v2595_v31 = vpop.permute.xlu0 %2594 }
0x2f74   :  { %v2597_v62 = vmul.f32 %v4467_v6, %v2595_v31 }
0x2f76   :  { %2599 = vrot.lane.b32.xlu1 %v2597_v62, %s4779_s30 }
0x2fe8   :  { %v2600_v40 = vpop.permute.xlu1 %2599 }
0x2fe9   :  { %v2602_v33 = vadd.f32 %v2600_v40, %v2513_v61 }
0x2feb   :  { %4468 = vtanh.f32 %v2602_v33 }
0x2ff8   :  { %v4469_v9 = vpop.eup %4468 }
0x2ff9   :  { %2606 = vrot.lane.b32.xlu0 %v4469_v9, %s4780_s6 }
0x2ffd   :  { %2610 = vrot.lane.b32.xlu0 %v2494_v4, %s4780_s6 }
0x306b   :  { %v2607_v54 = vpop.permute.xlu0 %2606 }
0x306c   :  { %v2609_v10 = vmul.f32 %v2607_v54, %v2604_v49 }
0x306f   :  { %v2611_v34 = vpop.permute.xlu0 %2610 }
0x3070   :  { %v2613_v12 = vmul.f32 %v4467_v6, %v2611_v34 }
0x3072   :  { %v2614_v15 = vadd.f32 %v2613_v12, %v2609_v10 }
0x3074   :  { %2616 = vrot.lane.b32.xlu0 %v2614_v15, %s4780_s6 }
0x30e6   :  { %v2617_v20 = vpop.permute.xlu0 %2616 }
0x30e7   :  { %4245 = vmatmul.mubr.msk.f32.vlgmr.msra.gmra.mxu1 %vm273_vm2, %v2617_v20 }
0x30e8   :  { %4259 = vmatpush3.msra.mxu1 %v5302_v42  ;;  %4266 = vmatprep.mubr.msk.f32.mxu1 %vm4778_vm0, %v4777_v0 }
0x30e9   :  { %4260 = vmatprep.subr.mxu1 %v4777_v0 }
0x30ea   :  { %4261 = vmatpush3.msra.mxu1 %v5308_v8 }
0x30eb   :  { %4262 = vmatprep.subr.mxu1 %v4777_v0 }
0x30ec   :  { %4263 = vmatpush3.msra.mxu1 %v5312_v43 }
0x30ed   :  { %4264 = vmatprep.subr.mxu1 %v4777_v0 }
0x30ee   :  { %4265 = vmatpush3.msra.mxu1 %v5316_v46 }
0x30ef   :  { %4280 = vmatprep.subr.mxu1 %v4777_v0 }
0x31a7   :  { %v2686_v21 = vpop.f32.mrf.mxu1 }
0x31a8   :  { %v5542_v42 = vadd.f32 %v5323_v45, %v2686_v21 }
0x31a9   :  { %v4246_v22 = vpop.f32.mrf.mxu1 }
0x31aa   :  { %v2697_v56 = vrot.slane %v5542_v42, %v4987_v47 }
0x31ac   :  { %v2698_v24 = vcombine.high %v2697_v56, %v2697_v56  ;;  %v2705_v8 = vrot.slane %v2697_v56, %v4987_v47 }
0x31ae   :  { %v2712_v14 = vrot.slane %v2698_v24, %v4987_v47  ;;  %v2716_v43 = vrot.slane %v2705_v8, %v4994_v52 }
0x31b0   :  { %v2720_v25 = vrot.slane %v2712_v14, %v4994_v52  ;;  %v2723_v46 = vadd.f32 %v5334_v58, %v2716_v43 }
0x31b2   :  { %v2724_v59 = vadd.f32 %v5337_v29, %v2720_v25  ;;  %4470 = vtanh.f32 %v2723_v46 }
0x31b4   :  { %4472 = vtanh.f32 %v2724_v59 }
0x31bf   :  { %v4471_v45 = vpop.eup %4470 }
0x31c0   :  { %v2727_v26 = vmul.f32 %v5343_v30, %v4471_v45 }
0x31c1   :  { %v4473_v27 = vpop.eup %4472 }
0x31c2   :  { %v2729_v28 = vsel %vm273_vm2, %v2727_v26, 0.0  ;;  %v2728_v32 = vmul.f32 %v5343_v30, %v4473_v27 }
0x31c3   :  { %2730 = vadd.xlane.f32.xlu0 %v2729_v28 }
0x31c4   :  { %v2732_v35 = vsel %vm273_vm2, %v2728_v32, 0.0 }
0x31c5   :  { %2733 = vadd.xlane.f32.xlu1 %v2732_v35 }
0x324c   :  { %v2731_v36 = vpop.xlane.xlu0 %2730 }
0x324d   :  { %v2735_v37 = vadd.f32 %v2731_v36, %v5018_v11 }
0x324e   :  { %v2734_v58 = vpop.xlane.xlu1 %2733 }
0x324f   :  { %v2736_v29 = vadd.f32 %v2734_v58, %v5018_v11  ;;  %v2742_v38 = vrot.slane %v2735_v37, %v5020_v13 }
0x3251   :  { %v2746_v39 = vrot.slane %v2736_v29, %v5020_v13 }
0x3253   :  { %v2747_v4 = vsel %vm523_vm4, %v2746_v39, %v2742_v38 }
0x3254   :  { %v2749_v41 = vsel %vm526_vm5, %v2747_v4, -inf }
0x3255   :  { %2750 = vmax.xlane.f32.xlu0 %v2749_v41 }
0x32de   :  { %v2751_v30 = vpop.xlane.xlu0 %2750 }
0x32df   :  { %v2756_v57 = vrot.slane %v2751_v30, %v4994_v52  ;;  %v2760_v44 = vrot.slane %v2751_v30, %v5028_v23 }
0x32e1   :  { %v2763_v53 = vsub.f32 %v2735_v37, %v2756_v57  ;;  %v2764_v61 = vsub.f32 %v2736_v29, %v2760_v44 }
0x32e3   :  { %v2765_v55 = vmul.f32 1.442695, %v2763_v53  ;;  %v2767_v63 = vmul.f32 1.442695, %v2764_v61 }
0x32e5   :  { %4474 = vpow2.f32 %v2765_v55 }
0x32e6   :  { %4476 = vpow2.f32 %v2767_v63 }
0x32f2   :  { %v4475_v3 = vpop.eup %4474 }
0x32f3   :  { %v4477_v5 = vpop.eup %4476  ;;  %2772 = vperm.xlu0 %4343, %v4475_v3  }
0x32f4   :  { %2775 = vperm.xlu1 %4342, %v4477_v5  }
0x336e   :  { %v2773_v6 = vpop.permute.xlu0 %2772 }
0x336f   :  { %v2776_v31 = vpop.permute.xlu1 %2775  ;;  %v2780_v62 = vrot.slane %v2773_v6, %v5020_v13 }
0x3370   :  { %v2784_v40 = vrot.slane %v2776_v31, %v5020_v13 }
0x3372   :  { %v2785_v33 = vsel %vm523_vm4, %v2784_v40, %v2780_v62 }
0x3373   :  { %v2787_v9 = vsel %vm526_vm5, %v2785_v33, 0.0 }
0x3374   :  { %2788 = vadd.xlane.f32.xlu1 %v2787_v9 }
0x33fd   :  { %v2789_v54 = vpop.xlane.xlu1 %2788 }
0x33fe   :  { %v2794_v49 = vrot.slane %v2789_v54, %v4994_v52  ;;  %v2798_v34 = vrot.slane %v2789_v54, %v5028_v23 }
0x3400   :  { %4478 = vrcp.f32 %v2794_v49 }
0x3401   :  { %4480 = vrcp.f32 %v2798_v34 }
0x340d   :  { %v4479_v10 = vpop.eup %4478 }
0x340e   :  { %v2802_v12 = vmul.f32 %v4479_v10, %v4475_v3  ;;  %v4481_v15 = vpop.eup %4480 }
0x340f   :  { %v2804_v20 = vmul.f32 %v4481_v15, %v4477_v5 }
0x3410   :  { %2807 = vperm.xlu0 %4343, %v2802_v12  }
0x3414   :  { %2812 = vperm.xlu0 %4343, %v2804_v20  }
0x348b   :  { %v2808_v21 = vpop.permute.xlu0 %2807 }
0x348c   :  { %v2815_v22 = vmul.f32 %v5363_v7, %v2808_v21  ;;  %v2946_v14 = vrot.slane %v2808_v21, %v5020_v13 }
0x348e   :  { %v2817_v56 = vsel %vm273_vm2, %v2815_v22, 0.0 }
0x348f   :  { %v2818_v24 = vrot.slane %v2817_v56, 4  ;;  %v2813_v8 = vpop.permute.xlu0 %2812 }
0x3490   :  { %v2816_v43 = vmul.f32 %v5368_v1, %v2813_v8  ;;  %v2950_v25 = vrot.slane %v2813_v8, %v5020_v13 }
0x3491   :  { %v2819_v46 = vadd.f32 %v2818_v24, %v2817_v56 }
0x3492   :  { %v2824_v59 = vsel %vm273_vm2, %v2816_v43, 0.0  ;;  %v2951_v45 = vsel %vm523_vm4, %v2950_v25, %v2946_v14  ;;  %v4557_v25 = vld [vmem:[#allocation12 + $0x18] sm:$0xff] }
0x3493   :  { %v2820_v26 = vrot.slane %v2819_v46, 2  ;;  %v2825_v27 = vrot.slane %v2824_v59, 4  ;;  %2953 = vst.msk [vmem:[%s5807_s15 + $0xa] sm:$0x3] %vm526_vm5, %v2951_v45  ;;  %v4560_v45 = vld [vmem:[#allocation12] sm:$0xff] }
0x3495   :  { %v2821_v7 = vadd.f32 %v2820_v26, %v2819_v46  ;;  %v2826_v28 = vadd.f32 %v2825_v27, %v2824_v59  ;;  %v4558_v46 = vld [vmem:[#allocation12 + $0x10] sm:$0xff]  ;;  %v4559_v59 = vld [vmem:[#allocation12 + $0x8] sm:$0xff] }
0x3496   :  { %v5636_v27 = vld [vmem:[%s5801_s9] ss:$0 sm:$0xff] }
0x3497   :  { %v2827_v32 = vrot.slane %v2826_v28, 2  ;;  %v2822_v35 = vrot.slane %v2821_v7, 1 }
0x3499   :  { %v2828_v36 = vadd.f32 %v2827_v32, %v2826_v28  ;;  %v2823_v37 = vadd.f32 %v2822_v35, %v2821_v7 }
0x349b   :  { %v2829_v1 = vrot.slane %v2828_v36, 1 }
0x349d   :  { %v2830_v58 = vadd.f32 %v2829_v1, %v2828_v36 }
0x349f   :  { %v2833_v29 = vsel %vm523_vm4, %v2830_v58, %v2823_v37 }
0x34a0   :  { %4256 = vmatmul.mubr.msk.f32.vlgmr.msra.gmra.mxu0 %vm273_vm2, %v2833_v29  ;;  %2955 = vst.msk [vmem:[#allocation17 + $0xa] sm:$0x3] %vm726_vm6, %v2833_v29 }
0x34a1   :  { %4270 = vmatpush3.msra.mxu0 %v5381_v16  ;;  %4277 = vmatprep.mubr.msk.f32.mxu0 %vm4778_vm0, %v4777_v0 }
0x34a2   :  { %4271 = vmatprep.subr.mxu0 %v4777_v0 }
0x34a3   :  { %4272 = vmatpush3.msra.mxu0 %v5387_v17 }
0x34a4   :  { %4273 = vmatprep.subr.mxu0 %v4777_v0 }
0x34a5   :  { %4274 = vmatpush3.msra.mxu0 %v5391_v18 }
0x34a6   :  { %4275 = vmatprep.subr.mxu0 %v4777_v0 }
0x34a7   :  { %4276 = vmatpush3.msra.mxu0 %v5395_v19 }
0x34a8   :  { %4291 = vmatprep.subr.mxu0 %v4777_v0 }
0x3560   :  { %v2902_v38 = vpop.f32.mrf.mxu0 }
0x3561   :  { %v2903_v16 = vadd.f32 %v5402_v2, %v2902_v38 }
0x3562   :  { %v4257_v39 = vpop.f32.mrf.mxu0 }
0x3563   :  { %2907 = vrot.lane.b32.xlu0 %v2903_v16, %s4781_s0 }
0x3567   :  { %2917 = vrot.lane.b32.xlu0 %v2903_v16, %s4780_s6  ;;  %v5650_v16 = vld [vmem:[#allocation9 + $0x8] sm:$0xff] }
0x35d5   :  { %v2908_v4 = vpop.permute.xlu0 %2907 }
0x35d6   :  { %v2910_v17 = vadd.f32 %v2908_v4, %v5542_v42 }
0x35d8   :  { %v3918_v41 = vmul.f32 -1.442695, %v2910_v17  ;;  %v5656_v17 = vld [vmem:[%s5804_s12] ss:$0 sm:$0xff] }
0x35d9   :  { %v2918_v19 = vpop.permute.xlu0 %2917 }
0x35da   :  { %4482 = vpow2.f32 %v3918_v41 }
0x35e7   :  { %v4483_v18 = vpop.eup %4482 }
0x35e8   :  { %v2914_v30 = vadd.f32 1.0, %v4483_v18 }
0x35ea   :  { %4484 = vrcp.f32 %v2914_v30 }
0x35f7   :  { %v4485_v57 = vpop.eup %4484 }
0x35f8   :  { %v2920_v44 = vmul.f32 %v4485_v57, %v2918_v19  ;;  %v2927_v63 = vsub.f32 1.0, %v4485_v57 }
0x35fa   :  { %2922 = vrot.lane.b32.xlu0 %v2920_v44, %s4779_s30 }
0x366c   :  { %v2923_v53 = vpop.permute.xlu0 %2922 }
0x366d   :  { %v2925_v2 = vadd.f32 %v2923_v53, %v5542_v42 }
0x366f   :  { %4486 = vtanh.f32 %v2925_v2 }
0x367c   :  { %v4487_v61 = vpop.eup %4486 }
0x367d   :  { %2929 = vrot.lane.b32.xlu0 %v4487_v61, %s4780_s6 }
0x3681   :  { %2933 = vrot.lane.b32.xlu0 %v2833_v29, %s4779_s30  ;;  %v5647_v29 = vld [vmem:[#allocation9] sm:$0xff] }
0x36ef   :  { %v2930_v55 = vpop.permute.xlu0 %2929 }
0x36f0   :  { %v2932_v5 = vmul.f32 %v2930_v55, %v2927_v63 }
0x36f3   :  { %v2934_v3 = vpop.permute.xlu0 %2933 }
0x36f4   :  { %v2936_v6 = vmul.f32 %v4485_v57, %v2934_v3 }
0x36f6   :  { %v2937_v31 = vadd.f32 %v2936_v6, %v2932_v5 }
0x36f8   :  { %2939 = vrot.lane.b32.xlu0 %v2937_v31, %s4779_s30 }
0x376a   :  { %v2940_v62 = vpop.permute.xlu0 %2939 }
0x376b   :  { %2942 = vst.msk [vmem:[#allocation16 + $0xa] sm:$0x3] %vm726_vm6, %v2940_v62  ;;  %4267 = vmatmul.mubr.msk.f32.vlgmr.msra.gmra.mxu1 %vm273_vm2, %v2940_v62 }
0x376c   :  { %4281 = vmatpush3.msra.mxu1 %v5415_v60  ;;  %4288 = vmatprep.mubr.msk.f32.mxu1 %vm4778_vm0, %v4777_v0  ;;  %v5618_v60 = vld [vmem:[%s5799_s7] ss:$0 sm:$0xff] }
0x376d   :  { %4282 = vmatprep.subr.mxu1 %v4777_v0 }
0x376e   :  { %4283 = vmatpush3.msra.mxu1 %v5421_v48  ;;  %v2956_v48 = vld [vmem:[#allocation2 + $0xc] sm:$0x3] }
0x376f   :  { %4284 = vmatprep.subr.mxu1 %v4777_v0 }
0x3770   :  { %4285 = vmatpush3.msra.mxu1 %v5425_v50 }
0x3771   :  { %4286 = vmatprep.subr.mxu1 %v4777_v0 }
0x3772   :  { %4287 = vmatpush3.msra.mxu1 %v5429_v51 }
0x3773   :  { %4302 = vmatprep.subr.mxu1 %v4777_v0 }
0x382b   :  { %v3025_v42 = vpop.f32.mrf.mxu1 }
0x382c   :  { %v3026_v40 = vadd.f32 %v5618_v60, %v3025_v42 }
0x382d   :  { %v4268_v33 = vpop.f32.mrf.mxu1 }
0x382e   :  { %3037 = vrot.lane.b32.xlu0 %v3026_v40, %s4779_s30  ;;  %v3029_v9 = vadd.f32 %v3026_v40, %v2956_v48 }
0x3830   :  { %v3920_v50 = vmul.f32 -1.442695, %v3029_v9 }
0x3832   :  { %4488 = vpow2.f32 %v3920_v50 }
0x383f   :  { %v4489_v54 = vpop.eup %4488 }
0x3840   :  { %v3033_v49 = vadd.f32 1.0, %v4489_v54 }
0x3842   :  { %4490 = vrcp.f32 %v3033_v49 }
0x384f   :  { %v4491_v51 = vpop.eup %4490 }
0x3850   :  { %v3047_v22 = vsub.f32 1.0, %v4491_v51 }
0x38a0   :  { %v3038_v34 = vpop.permute.xlu0 %3037 }
0x38a1   :  { %v3040_v10 = vmul.f32 %v4491_v51, %v3038_v34 }
0x38a3   :  { %3042 = vrot.lane.b32.xlu1 %v3040_v10, %s4779_s30 }
0x3915   :  { %v3043_v12 = vpop.permute.xlu1 %3042 }
0x3916   :  { %v3045_v15 = vadd.f32 %v3043_v12, %v2956_v48 }
0x3918   :  { %4492 = vtanh.f32 %v3045_v15 }
0x3925   :  { %v4493_v20 = vpop.eup %4492 }
0x3926   :  { %3049 = vrot.lane.b32.xlu0 %v4493_v20, %s4780_s6 }
0x392a   :  { %3053 = vrot.lane.b32.xlu0 %v2937_v31, %s4780_s6 }
0x3998   :  { %v3050_v21 = vpop.permute.xlu0 %3049 }
0x3999   :  { %v3052_v24 = vmul.f32 %v3050_v21, %v3047_v22 }
0x399c   :  { %v3054_v56 = vpop.permute.xlu0 %3053 }
0x399d   :  { %v3056_v8 = vmul.f32 %v4491_v51, %v3054_v56 }
0x399f   :  { %v3057_v14 = vadd.f32 %v3056_v8, %v3052_v24 }
0x39a1   :  { %3059 = vrot.lane.b32.xlu0 %v3057_v14, %s4780_s6 }
0x3a13   :  { %v3060_v43 = vpop.permute.xlu0 %3059 }
0x3a14   :  { %4278 = vmatmul.mubr.msk.f32.vlgmr.msra.gmra.mxu0 %vm273_vm2, %v3060_v43  ;;  %v5676_v43 = vld [vmem:[#allocation7] sm:$0xff] }
0x3a15   :  { %4292 = vmatpush3.msra.mxu0 %v4557_v25  ;;  %4299 = vmatprep.mubr.msk.f32.mxu0 %vm4778_vm0, %v4777_v0 }
0x3a16   :  { %4293 = vmatprep.subr.mxu0 %v4777_v0 }
0x3a17   :  { %4294 = vmatpush3.msra.mxu0 %v4558_v46 }
0x3a18   :  { %4295 = vmatprep.subr.mxu0 %v4777_v0 }
0x3a19   :  { %4296 = vmatpush3.msra.mxu0 %v4559_v59 }
0x3a1a   :  { %4297 = vmatprep.subr.mxu0 %v4777_v0 }
0x3a1b   :  { %4298 = vmatpush3.msra.mxu0 %v4560_v45 }
0x3a1c   :  { %4313 = vmatprep.subr.mxu0 %v4777_v0 }
0x3ad4   :  { %v3129_v26 = vpop.f32.mrf.mxu0 }
0x3ad5   :  { %v5639_v7 = vadd.f32 %v5636_v27, %v3129_v26 }
0x3ad6   :  { %v4279_v28 = vpop.f32.mrf.mxu0 }
0x3ad7   :  { %v3140_v32 = vrot.slane %v5639_v7, %v4987_v47  ;;  %v5681_v28 = vld [vmem:[#allocation7 + $0x8] sm:$0xff] }
0x3ad9   :  { %v3141_v35 = vcombine.high %v3140_v32, %v3140_v32  ;;  %v3148_v36 = vrot.slane %v3140_v32, %v4987_v47 }
0x3adb   :  { %v3155_v1 = vrot.slane %v3141_v35, %v4987_v47  ;;  %v3159_v37 = vrot.slane %v3148_v36, %v4994_v52 }
0x3add   :  { %v3163_v58 = vrot.slane %v3155_v1, %v4994_v52  ;;  %v3166_v38 = vadd.f32 %v5647_v29, %v3159_v37 }
0x3adf   :  { %v3167_v39 = vadd.f32 %v5650_v16, %v3163_v58  ;;  %4494 = vtanh.f32 %v3166_v38 }
0x3ae1   :  { %4496 = vtanh.f32 %v3167_v39 }
0x3aec   :  { %v4495_v4 = vpop.eup %4494 }
0x3aed   :  { %v3170_v41 = vmul.f32 %v5656_v17, %v4495_v4 }
0x3aee   :  { %v4497_v18 = vpop.eup %4496 }
0x3aef   :  { %v3172_v30 = vsel %vm273_vm2, %v3170_v41, 0.0  ;;  %v3171_v57 = vmul.f32 %v5656_v17, %v4497_v18 }
0x3af0   :  { %3173 = vadd.xlane.f32.xlu0 %v3172_v30 }
0x3af1   :  { %v3175_v19 = vsel %vm273_vm2, %v3171_v57, 0.0 }
0x3af2   :  { %3176 = vadd.xlane.f32.xlu1 %v3175_v19 }
0x3b79   :  { %v3174_v44 = vpop.xlane.xlu0 %3173 }
0x3b7a   :  { %v3178_v53 = vadd.f32 %v3174_v44, %v5018_v11 }
0x3b7b   :  { %v3177_v2 = vpop.xlane.xlu1 %3176 }
0x3b7c   :  { %v3179_v61 = vadd.f32 %v3177_v2, %v5018_v11  ;;  %v3185_v55 = vrot.slane %v3178_v53, %v5020_v13  ;;  %v4567_v2 = vld [vmem:[#allocation13 + $0x18] sm:$0xff] }
0x3b7e   :  { %v3189_v63 = vrot.slane %v3179_v61, %v5020_v13 }
0x3b80   :  { %v3190_v3 = vsel %vm523_vm4, %v3189_v63, %v3185_v55  ;;  %v4569_v55 = vld [vmem:[#allocation13 + $0x8] sm:$0xff]  ;;  %v4570_v63 = vld [vmem:[#allocation13] sm:$0xff] }
0x3b81   :  { %v3192_v5 = vsel %vm526_vm5, %v3190_v3, -inf }
0x3b82   :  { %3193 = vmax.xlane.f32.xlu0 %v3192_v5  ;;  %v5702_v5 = vld [vmem:[%s5803_s11] ss:$0 sm:$0xff] }
0x3c0b   :  { %v3194_v6 = vpop.xlane.xlu0 %3193 }
0x3c0c   :  { %v3199_v31 = vrot.slane %v3194_v6, %v4994_v52  ;;  %v3203_v62 = vrot.slane %v3194_v6, %v5028_v23 }
0x3c0e   :  { %v3206_v42 = vsub.f32 %v3178_v53, %v3199_v31  ;;  %v3207_v40 = vsub.f32 %v3179_v61, %v3203_v62  ;;  %v4568_v61 = vld [vmem:[#allocation13 + $0x10] sm:$0xff] }
0x3c10   :  { %v3208_v33 = vmul.f32 1.442695, %v3206_v42  ;;  %v3210_v48 = vmul.f32 1.442695, %v3207_v40 }
0x3c12   :  { %4498 = vpow2.f32 %v3208_v33 }
0x3c13   :  { %4500 = vpow2.f32 %v3210_v48 }
0x3c1f   :  { %v4499_v9 = vpop.eup %4498 }
0x3c20   :  { %v4501_v50 = vpop.eup %4500  ;;  %3215 = vperm.xlu0 %4343, %v4499_v9  }
0x3c21   :  { %3218 = vperm.xlu1 %4342, %v4501_v50  }
0x3c9b   :  { %v3216_v54 = vpop.permute.xlu0 %3215 }
0x3c9c   :  { %v3219_v49 = vpop.permute.xlu1 %3218  ;;  %v3223_v51 = vrot.slane %v3216_v54, %v5020_v13 }
0x3c9d   :  { %v3227_v34 = vrot.slane %v3219_v49, %v5020_v13 }
0x3c9f   :  { %v3228_v10 = vsel %vm523_vm4, %v3227_v34, %v3223_v51 }
0x3ca0   :  { %v3230_v12 = vsel %vm526_vm5, %v3228_v10, 0.0 }
0x3ca1   :  { %3231 = vadd.xlane.f32.xlu0 %v3230_v12 }
0x3d2a   :  { %v3232_v15 = vpop.xlane.xlu0 %3231 }
0x3d2b   :  { %v3237_v20 = vrot.slane %v3232_v15, %v4994_v52  ;;  %v3241_v21 = vrot.slane %v3232_v15, %v5028_v23 }
0x3d2d   :  { %4502 = vrcp.f32 %v3237_v20 }
0x3d2e   :  { %4504 = vrcp.f32 %v3241_v21 }
0x3d3a   :  { %v4503_v22 = vpop.eup %4502 }
0x3d3b   :  { %v3245_v56 = vmul.f32 %v4503_v22, %v4499_v9  ;;  %v4505_v24 = vpop.eup %4504 }
0x3d3c   :  { %v3247_v8 = vmul.f32 %v4505_v24, %v4501_v50  ;;  %v4573_v24 = vld [vmem:[#allocation15 + $0x10] sm:$0xff] }
0x3d3d   :  { %3250 = vperm.xlu1 %4342, %v3245_v56  }
0x3d41   :  { %3255 = vperm.xlu1 %4342, %v3247_v8   ;;  %v4574_v8 = vld [vmem:[#allocation15 + $0x8] sm:$0xff] }
0x3db8   :  { %v3251_v14 = vpop.permute.xlu1 %3250 }
0x3db9   :  { %v3258_v25 = vmul.f32 %v5676_v43, %v3251_v14  ;;  %v3389_v26 = vrot.slane %v3251_v14, %v5020_v13  ;;  %v4575_v14 = vld [vmem:[#allocation15] sm:$0xff] }
0x3dbb   :  { %v3260_v46 = vsel %vm273_vm2, %v3258_v25, 0.0 }
0x3dbc   :  { %v3261_v59 = vrot.slane %v3260_v46, 4  ;;  %v3256_v45 = vpop.permute.xlu1 %3255 }
0x3dbd   :  { %v3259_v32 = vmul.f32 %v5681_v28, %v3256_v45  ;;  %v3393_v35 = vrot.slane %v3256_v45, %v5020_v13  ;;  %v3399_v45 = vld [vmem:[#allocation2 + $0xe] sm:$0x3] }
0x3dbe   :  { %v3262_v36 = vadd.f32 %v3261_v59, %v3260_v46 }
0x3dbf   :  { %v3267_v1 = vsel %vm273_vm2, %v3259_v32, 0.0  ;;  %v3394_v37 = vsel %vm523_vm4, %v3393_v35, %v3389_v26 }
0x3dc0   :  { %v3263_v58 = vrot.slane %v3262_v36, 2  ;;  %v3268_v38 = vrot.slane %v3267_v1, 4  ;;  %3396 = vst.msk [vmem:[%s5807_s15 + $0xc] sm:$0x3] %vm526_vm5, %v3394_v37 }
0x3dc2   :  { %v3264_v39 = vadd.f32 %v3263_v58, %v3262_v36  ;;  %v3269_v4 = vadd.f32 %v3268_v38, %v3267_v1 }
0x3dc4   :  { %v3270_v41 = vrot.slane %v3269_v4, 2  ;;  %v3265_v18 = vrot.slane %v3264_v39, 1 }
0x3dc6   :  { %v3271_v30 = vadd.f32 %v3270_v41, %v3269_v4  ;;  %v3266_v19 = vadd.f32 %v3265_v18, %v3264_v39 }
0x3dc8   :  { %v3272_v57 = vrot.slane %v3271_v30, 1 }
0x3dca   :  { %v3273_v44 = vadd.f32 %v3272_v57, %v3271_v30 }
0x3dcc   :  { %v3276_v53 = vsel %vm523_vm4, %v3273_v44, %v3266_v19 }
0x3dcd   :  { %4289 = vmatmul.mubr.msk.f32.vlgmr.msra.gmra.mxu1 %vm273_vm2, %v3276_v53  ;;  %3398 = vst.msk [vmem:[#allocation17 + $0xc] sm:$0x3] %vm726_vm6, %v3276_v53 }
0x3dce   :  { %4303 = vmatpush3.msra.mxu1 %v4567_v2  ;;  %4310 = vmatprep.mubr.msk.f32.mxu1 %vm4778_vm0, %v4777_v0 }
0x3dcf   :  { %4304 = vmatprep.subr.mxu1 %v4777_v0 }
0x3dd0   :  { %4305 = vmatpush3.msra.mxu1 %v4568_v61 }
0x3dd1   :  { %4306 = vmatprep.subr.mxu1 %v4777_v0 }
0x3dd2   :  { %4307 = vmatpush3.msra.mxu1 %v4569_v55 }
0x3dd3   :  { %4308 = vmatprep.subr.mxu1 %v4777_v0 }
0x3dd4   :  { %4309 = vmatpush3.msra.mxu1 %v4570_v63 }
0x3e8d   :  { %v3345_v3 = vpop.f32.mrf.mxu1 }
0x3e8e   :  { %v3346_v6 = vadd.f32 %v5702_v5, %v3345_v3 }
0x3e8f   :  { %v4290_v31 = vpop.f32.mrf.mxu1 }
0x3e90   :  { %3350 = vrot.lane.b32.xlu1 %v3346_v6, %s4781_s0 }
0x3e94   :  { %3360 = vrot.lane.b32.xlu1 %v3346_v6, %s4780_s6 }
0x3f02   :  { %v3351_v62 = vpop.permute.xlu1 %3350 }
0x3f03   :  { %v3353_v42 = vadd.f32 %v3351_v62, %v5639_v7 }
0x3f05   :  { %v3923_v40 = vmul.f32 -1.442695, %v3353_v42 }
0x3f06   :  { %v3361_v50 = vpop.permute.xlu1 %3360 }
0x3f07   :  { %4506 = vpow2.f32 %v3923_v40 }
0x3f14   :  { %v4507_v33 = vpop.eup %4506 }
0x3f15   :  { %v3357_v48 = vadd.f32 1.0, %v4507_v33 }
0x3f17   :  { %4508 = vrcp.f32 %v3357_v48 }
0x3f24   :  { %v4509_v9 = vpop.eup %4508 }
0x3f25   :  { %v3363_v54 = vmul.f32 %v4509_v9, %v3361_v50  ;;  %v3370_v12 = vsub.f32 1.0, %v4509_v9 }
0x3f27   :  { %3365 = vrot.lane.b32.xlu1 %v3363_v54, %s4779_s30 }
0x3f99   :  { %v3366_v49 = vpop.permute.xlu1 %3365 }
0x3f9a   :  { %v3368_v51 = vadd.f32 %v3366_v49, %v5639_v7  ;;  %v4572_v7 = vld [vmem:[#allocation15 + $0x18] sm:$0xff] }
0x3f9c   :  { %4510 = vtanh.f32 %v3368_v51 }
0x3fa9   :  { %v4511_v34 = vpop.eup %4510 }
0x3faa   :  { %3372 = vrot.lane.b32.xlu1 %v4511_v34, %s4780_s6 }
0x3fae   :  { %3376 = vrot.lane.b32.xlu1 %v3276_v53, %s4779_s30 }
0x401c   :  { %v3373_v10 = vpop.permute.xlu1 %3372 }
0x401d   :  { %v3375_v20 = vmul.f32 %v3373_v10, %v3370_v12 }
0x4020   :  { %v3377_v15 = vpop.permute.xlu1 %3376 }
0x4021   :  { %v3379_v21 = vmul.f32 %v4509_v9, %v3377_v15 }
0x4023   :  { %v3380_v22 = vadd.f32 %v3379_v21, %v3375_v20 }
0x4025   :  { %3382 = vrot.lane.b32.xlu1 %v3380_v22, %s4779_s30 }
0x4097   :  { %v3383_v56 = vpop.permute.xlu1 %3382 }
0x4098   :  { %3385 = vst.msk [vmem:[#allocation16 + $0xc] sm:$0x3] %vm726_vm6, %v3383_v56  ;;  %4300 = vmatmul.mubr.msk.f32.vlgmr.msra.gmra.mxu0 %vm273_vm2, %v3383_v56 }
0x4099   :  { %4314 = vmatpush3.msra.mxu0 %v4572_v7  ;;  %4321 = vmatprep.mubr.msk.f32.mxu0 %vm4778_vm0, %v4777_v0 }
0x409a   :  { %4315 = vmatprep.subr.mxu0 %v4777_v0 }
0x409b   :  { %4316 = vmatpush3.msra.mxu0 %v4573_v24 }
0x409c   :  { %4317 = vmatprep.subr.mxu0 %v4777_v0 }
0x409d   :  { %4318 = vmatpush3.msra.mxu0 %v4574_v8 }
0x409e   :  { %4319 = vmatprep.subr.mxu0 %v4777_v0 }
0x409f   :  { %4320 = vmatpush3.msra.mxu0 %v4575_v14 }
0x4158   :  { %v3468_v25 = vpop.f32.mrf.mxu0 }
0x4159   :  { %v3469_v46 = vadd.f32 %v5618_v60, %v3468_v25 }
0x415a   :  { %v4301_v59 = vpop.f32.mrf.mxu0 }
0x415b   :  { %3480 = vrot.lane.b32.xlu0 %v3469_v46, %s4779_s30  ;;  %v3472_v26 = vadd.f32 %v3469_v46, %v3399_v45 }
0x415d   :  { %v3925_v32 = vmul.f32 -1.442695, %v3472_v26 }
0x415f   :  { %4512 = vpow2.f32 %v3925_v32 }
0x416c   :  { %v4513_v35 = vpop.eup %4512 }
0x416d   :  { %v3476_v36 = vadd.f32 1.0, %v4513_v35 }
0x416f   :  { %4514 = vrcp.f32 %v3476_v36 }
0x417c   :  { %v4515_v1 = vpop.eup %4514 }
0x417d   :  { %v3490_v4 = vsub.f32 1.0, %v4515_v1 }
0x41cd   :  { %v3481_v37 = vpop.permute.xlu0 %3480 }
0x41ce   :  { %v3483_v58 = vmul.f32 %v4515_v1, %v3481_v37 }
0x41d0   :  { %3485 = vrot.lane.b32.xlu1 %v3483_v58, %s4779_s30 }
0x4242   :  { %v3486_v0 = vpop.permute.xlu1 %3485 }
0x4243   :  { %v3488_v38 = vadd.f32 %v3486_v0, %v3399_v45 }
0x4245   :  { %4516 = vtanh.f32 %v3488_v38 }
0x4252   :  { %v4517_v39 = vpop.eup %4516 }
0x4253   :  { %3492 = vrot.lane.b32.xlu1 %v4517_v39, %s4780_s6 }
0x4257   :  { %3496 = vrot.lane.b32.xlu1 %v3380_v22, %s4780_s6 }
0x42c5   :  { %v3493_v60 = vpop.permute.xlu1 %3492 }
0x42c6   :  { %v3495_v18 = vmul.f32 %v3493_v60, %v3490_v4 }
0x42c9   :  { %v3497_v41 = vpop.permute.xlu1 %3496 }
0x42ca   :  { %v3499_v30 = vmul.f32 %v4515_v1, %v3497_v41 }
0x42cc   :  { %v3500_v57 = vadd.f32 %v3499_v30, %v3495_v18 }
0x42ce   :  { %3502 = vrot.lane.b32.xlu1 %v3500_v57, %s4780_s6 }
0x4340   :  { %v3503_v19 = vpop.permute.xlu1 %3502 }
0x4341   :  { %4311 = vmatmul.mubr.msk.f32.vlgmr.msra.gmra.mxu1 %vm273_vm2, %v3503_v19 }
0x4401   :  { %v3572_v44 = vpop.f32.mrf.mxu1 }
0x4402   :  { %v5728_v53 = vadd.f32 %v5636_v27, %v3572_v44 }
0x4403   :  { %v4312_v2 = vpop.f32.mrf.mxu1 }
0x4404   :  { %v3583_v61 = vrot.slane %v5728_v53, %v4987_v47 }
0x4406   :  { %v3584_v55 = vcombine.high %v3583_v61, %v3583_v61  ;;  %v3591_v63 = vrot.slane %v3583_v61, %v4987_v47 }
0x4408   :  { %v3598_v3 = vrot.slane %v3584_v55, %v4987_v47  ;;  %v3602_v6 = vrot.slane %v3591_v63, %v4994_v52 }
0x440a   :  { %v3606_v31 = vrot.slane %v3598_v3, %v4994_v52  ;;  %v3609_v62 = vadd.f32 %v5647_v29, %v3602_v6 }
0x440c   :  { %v3610_v42 = vadd.f32 %v5650_v16, %v3606_v31  ;;  %4518 = vtanh.f32 %v3609_v62 }
0x440e   :  { %4520 = vtanh.f32 %v3610_v42 }
0x4419   :  { %v4519_v27 = vpop.eup %4518 }
0x441a   :  { %v3613_v40 = vmul.f32 %v5656_v17, %v4519_v27 }
0x441b   :  { %v4521_v33 = vpop.eup %4520 }
0x441c   :  { %v3615_v48 = vsel %vm273_vm2, %v3613_v40, 0.0  ;;  %v3614_v9 = vmul.f32 %v5656_v17, %v4521_v33 }
0x441d   :  { %3616 = vadd.xlane.f32.xlu1 %v3615_v48 }
0x441e   :  { %v3618_v47 = vsel %vm273_vm2, %v3614_v9, 0.0 }
0x441f   :  { %3619 = vadd.xlane.f32.xlu0 %v3618_v47 }
0x44a6   :  { %v3617_v50 = vpop.xlane.xlu1 %3616 }
0x44a7   :  { %v3621_v54 = vadd.f32 %v3617_v50, %v5018_v11 }
0x44a8   :  { %v3620_v29 = vpop.xlane.xlu0 %3619 }
0x44a9   :  { %v3622_v16 = vadd.f32 %v3620_v29, %v5018_v11  ;;  %v3628_v49 = vrot.slane %v3621_v54, %v5020_v13 }
0x44ab   :  { %v3632_v51 = vrot.slane %v3622_v16, %v5020_v13 }
0x44ad   :  { %v3633_v34 = vsel %vm523_vm4, %v3632_v51, %v3628_v49 }
0x44ae   :  { %v3635_v10 = vsel %vm526_vm5, %v3633_v34, -inf }
0x44af   :  { %3636 = vmax.xlane.f32.xlu0 %v3635_v10 }
0x4538   :  { %v3637_v17 = vpop.xlane.xlu0 %3636 }
0x4539   :  { %v3642_v12 = vrot.slane %v3637_v17, %v4994_v52  ;;  %v3646_v15 = vrot.slane %v3637_v17, %v5028_v23 }
0x453b   :  { %v3649_v20 = vsub.f32 %v3621_v54, %v3642_v12  ;;  %v3650_v21 = vsub.f32 %v3622_v16, %v3646_v15 }
0x453d   :  { %v3651_v22 = vmul.f32 1.442695, %v3649_v20  ;;  %v3653_v56 = vmul.f32 1.442695, %v3650_v21 }
0x453f   :  { %4522 = vpow2.f32 %v3651_v22 }
0x4540   :  { %4524 = vpow2.f32 %v3653_v56 }
0x454c   :  { %v4523_v11 = vpop.eup %4522 }
0x454d   :  { %v4525_v7 = vpop.eup %4524  ;;  %3658 = vperm.xlu1 %4342, %v4523_v11  }
0x454e   :  { %3661 = vperm.xlu0 %4343, %v4525_v7  }
0x45c8   :  { %v3659_v24 = vpop.permute.xlu1 %3658 }
0x45c9   :  { %v3662_v8 = vpop.permute.xlu0 %3661  ;;  %v3666_v14 = vrot.slane %v3659_v24, %v5020_v13 }
0x45ca   :  { %v3670_v25 = vrot.slane %v3662_v8, %v5020_v13 }
0x45cc   :  { %v3671_v46 = vsel %vm523_vm4, %v3670_v25, %v3666_v14 }
0x45cd   :  { %v3673_v59 = vsel %vm526_vm5, %v3671_v46, 0.0 }
0x45ce   :  { %3674 = vadd.xlane.f32.xlu1 %v3673_v59 }
0x4657   :  { %v3675_v45 = vpop.xlane.xlu1 %3674 }
0x4658   :  { %v3680_v26 = vrot.slane %v3675_v45, %v4994_v52  ;;  %v3684_v32 = vrot.slane %v3675_v45, %v5028_v23 }
0x465a   :  { %4526 = vrcp.f32 %v3680_v26 }
0x465b   :  { %4528 = vrcp.f32 %v3684_v32 }
0x4667   :  { %v4527_v35 = vpop.eup %4526 }
0x4668   :  { %v3688_v36 = vmul.f32 %v4527_v35, %v4523_v11  ;;  %v4529_v1 = vpop.eup %4528 }
0x4669   :  { %v3690_v37 = vmul.f32 %v4529_v1, %v4525_v7 }
0x466a   :  { %3693 = vperm.xlu0 %4343, %v3688_v36  }
0x466e   :  { %3698 = vperm.xlu0 %4343, %v3690_v37  }
0x46e5   :  { %v3694_v58 = vpop.permute.xlu0 %3693 }
0x46e6   :  { %v3701_v0 = vmul.f32 %v5676_v43, %v3694_v58  ;;  %v3832_v4 = vrot.slane %v3694_v58, %v5020_v13 }
0x46e8   :  { %v3703_v38 = vsel %vm273_vm2, %v3701_v0, 0.0 }
0x46e9   :  { %v3704_v39 = vrot.slane %v3703_v38, 4  ;;  %v3699_v60 = vpop.permute.xlu0 %3698 }
0x46ea   :  { %v3702_v52 = vmul.f32 %v5681_v28, %v3699_v60  ;;  %v3836_v23 = vrot.slane %v3699_v60, %v5020_v13 }
0x46eb   :  { %v3705_v41 = vadd.f32 %v3704_v39, %v3703_v38 }
0x46ec   :  { %v3710_v18 = vsel %vm273_vm2, %v3702_v52, 0.0  ;;  %v3837_v30 = vsel %vm523_vm4, %v3836_v23, %v3832_v4 }
0x46ed   :  { %v3706_v57 = vrot.slane %v3705_v41, 2  ;;  %v3711_v19 = vrot.slane %v3710_v18, 4  ;;  %3839 = vst.msk [vmem:[%s5807_s15 + $0xe] sm:$0x3] %vm526_vm5, %v3837_v30  ;;  %s4784_s15 = smov [#allocation17]  }
0x46ef   :  { %v3707_v43 = vadd.f32 %v3706_v57, %v3705_v41  ;;  %v3712_v44 = vadd.f32 %v3711_v19, %v3710_v18 }
0x46f1   :  { %v3713_v2 = vrot.slane %v3712_v44, 2  ;;  %v3708_v61 = vrot.slane %v3707_v43, 1 }
0x46f3   :  { %v3714_v55 = vadd.f32 %v3713_v2, %v3712_v44  ;;  %v3709_v63 = vadd.f32 %v3708_v61, %v3707_v43 }
0x46f5   :  { %v3715_v28 = vrot.slane %v3714_v55, 1 }
0x46f7   :  { %v3716_v13 = vadd.f32 %v3715_v28, %v3714_v55 }
0x46f9   :  { %v3719_v3 = vsel %vm523_vm4, %v3716_v13, %v3709_v63 }
0x46fa   :  { %4322 = vmatmul.mubr.msk.f32.vlgmr.msra.gmra.mxu0 %vm273_vm2, %v3719_v3  ;;  %3841 = vst.msk [vmem:[#allocation17 + $0xe] sm:$0x3] %vm726_vm6, %v3719_v3 }
0x47ba   :  { %v3788_v6 = vpop.f32.mrf.mxu0 }
0x47bb   :  { %v3789_v31 = vadd.f32 %v5702_v5, %v3788_v6 }
0x47bc   :  { %v4323_v62 = vpop.f32.mrf.mxu0 }
0x47bd   :  { %3793 = vrot.lane.b32.xlu0 %v3789_v31, %s4781_s0  ;;  %s3861_s0 = sshll.u32 %s4784_s15, 4  ;;  %s3862_s0 = int_to_ptr.vmem [resolvable:$true] %s3861_s0 }
0x47be   :  { %s4716_s28 = scalar_lea.vmem %s3862_s0, 256  ;;  %p4721_p8 = scmp.lt.s32.totalorder %s3862_s0, %s3862_s0 }
0x47bf   :  { %p4717_p7 = scmp.ne.s32.totalorder %s3862_s0, %s4716_s28  ;;  %p4722_p9 = scmp.lt.s32.totalorder %s4716_s28, %s4716_s28 }
0x47c1   :  { %3803 = vrot.lane.b32.xlu0 %v3789_v31, %s4780_s6  ;;  %p4723_p10 = por %p4722_p9, %p4721_p8 }
0x47c3   :  { %p4724_p11 = pnand %p4723_p10, %p4717_p7 }
0x482f   :  { %v3794_v42 = vpop.permute.xlu0 %3793 }
0x4830   :  { %v3796_v27 = vadd.f32 %v3794_v42, %v5728_v53 }
0x4832   :  { %v3928_v40 = vmul.f32 -1.442695, %v3796_v27 }
0x4833   :  { %v3804_v47 = vpop.permute.xlu0 %3803 }
0x4834   :  { %4530 = vpow2.f32 %v3928_v40 }
0x4841   :  { %v4531_v33 = vpop.eup %4530 }
0x4842   :  { %v3800_v48 = vadd.f32 1.0, %v4531_v33 }
0x4844   :  { %4532 = vrcp.f32 %v3800_v48 }
0x4851   :  { %v4533_v9 = vpop.eup %4532 }
0x4852   :  { %v3806_v50 = vmul.f32 %v4533_v9, %v3804_v47 }
0x4854   :  { %3808 = vrot.lane.b32.xlu0 %v3806_v50, %s4779_s30 }
0x48c6   :  { %v3809_v54 = vpop.permute.xlu0 %3808 }
0x48c7   :  { %v3811_v5 = vadd.f32 %v3809_v54, %v5728_v53 }
0x48c9   :  { %4534 = vtanh.f32 %v3811_v5 }
0x48d6   :  { %v4535_v29 = vpop.eup %4534 }
0x48d7   :  { %3815 = vrot.lane.b32.xlu0 %v4535_v29, %s4780_s6 }
0x48db   :  { %3819 = vrot.lane.b32.xlu0 %v3719_v3, %s4779_s30 }
0x48dc   :  { %4727 = shalt.err (!%p4724_p11)
}
0x48dd   :  { %3867 = dma.vmem_to_hbm [thread:$0]  %s3862_s0, 256, %s5808_s16, [#allocation18], %s4770_s26, %s4770_s26, %s4771_s27   ;;  %v3813_v16 = vsub.f32 1.0, %v4533_v9 }
0x48de   :  { %s4785_s6 = smov [#allocation16]  }
0x48df   :  { %s3847_s8 = sshll.u32 %s4785_s6, 4  ;;  %s3848_s8 = int_to_ptr.vmem [resolvable:$true] %s3847_s8 }
0x48e0   :  { %s4736_s18 = scalar_lea.vmem %s3848_s8, 256  ;;  %p4741_p13 = scmp.lt.s32.totalorder %s3848_s8, %s3848_s8 }
0x48e1   :  { %p4737_p12 = scmp.ne.s32.totalorder %s3848_s8, %s4736_s18  ;;  %p4742_p0 = scmp.lt.s32.totalorder %s4736_s18, %s4736_s18 }
0x48e3   :  { %p4743_p1 = por %p4742_p0, %p4741_p13 }
0x48e5   :  { %p4744_p2 = pnand %p4743_p1, %p4737_p12 }
0x4949   :  { %v3816_v53 = vpop.permute.xlu0 %3815 }
0x494a   :  { %v3818_v51 = vmul.f32 %v3816_v53, %v3813_v16 }
0x494d   :  { %v3820_v49 = vpop.permute.xlu0 %3819 }
0x494e   :  { %v3822_v34 = vmul.f32 %v4533_v9, %v3820_v49 }
0x4950   :  { %v3823_v10 = vadd.f32 %v3822_v34, %v3818_v51 }
0x4952   :  { %3825 = vrot.lane.b32.xlu1 %v3823_v10, %s4779_s30 }
0x49c4   :  { %v3826_v17 = vpop.permute.xlu1 %3825 }
0x49c5   :  { %3828 = vst.msk [vmem:[#allocation16 + $0xe] sm:$0x3] %vm726_vm6, %v3826_v17 }
0x49c6   :  { %4747 = shalt.err (!%p4744_p2)
}
0x49c7   :  { %3853 = dma.vmem_to_hbm [thread:$0]  %s3848_s8, 256, %s5806_s14, [#allocation6], %s4770_s26, %s4770_s26, %s4771_s27  }
0x49c8   :  { %4764 = dma.done.wait [#allocation6], 256  }
0x49c9   :  { %4765 = vsyncadd [#allocation6], 4294967040 }
0x49ca   :  { %4766 = dma.done.wait [#allocation18], 256  }
0x49cb   :  { %4767 = vsyncadd [#allocation18], 4294967040 }
0x49cc   :  { %3876 = vsyncpa [#allocation5], 1 }
0x49cd   :  { %3877 = vsyncpa [#allocation8], 1 }
0x49ce   :  { %3878 = vsyncpa [#allocation11], 1 }
0x49cf   :  { %3879 = vsyncpa [#allocation14], 1 }
0x49d0   :  { %3880 = vsyncpa [#allocation6], 1 }
0x49d1   :  { %3881 = vsyncpa [#allocation18], 1 }

</bundles_post_ra>
